<compile_context>
chip_gen: v6e
topology: v6e:2x2x1
jax: 0.10.0
libtpu: 0.0.40
codegen_flags: <defaults>
</compile_context>

<pallas_src>
import jax
import jax.numpy as jnp
from jax.experimental import pallas as pl
from jax.experimental.pallas import tpu as pltpu

EPS = 1e-5


# ----------------------------- fused block kernel -------------------------- #

def _make_resblock_kernel(N, H, W, Cin, Cout, stride, has_down):
    s = stride
    Ho = (H - 1) // s + 1          # 3x3 conv, pad=1, stride=s
    Wo = (W - 1) // s + 1
    M = N * Ho * Wo                # batch folded into the matmul M dimension

    def kernel(xph_ref, w1_ref, b1_ref, w2_ref, b2_ref, *rest):
        if has_down:
            wd_ref, bd_ref, out_ref, hpad_ref, pc1_ref, pc2_ref = rest
        else:
            out_ref, hpad_ref, pc1_ref, pc2_ref = rest

        # Phase-split padded input: (s*s*N, (H+2)/s, (W+2)/s, Cin), f32.
        xv = xph_ref[...]

        # ---- conv1 (stride s) as ONE im2col matmul, K = 9*Cin --------------
        # Tap (ky, kx) of the strided conv reads phase (ky % s, kx % s) of the
        # padded input at spatial offset (ky // s, kx // s): static unstrided
        # slices only, and exactly Ho*Wo outputs are computed.
        for ky in range(3):
            for kx in range(3):
                py, ay = ky % s, ky // s
                px, ax = kx % s, kx // s
                base = (py * s + px) * N
                patch = xv[base:base + N, ay:ay + Ho, ax:ax + Wo, :]
                t = ky * 3 + kx
                pc1_ref[:, t * Cin:(t + 1) * Cin] = patch.reshape(M, Cin)

        # Single wide MXU matmul in bf16, f32 accumulation.  BN1 scale is
        # already folded into w1; bias + ReLU in f32.
        h = jnp.dot(pc1_ref[...].astype(jnp.bfloat16), w1_ref[...],
                    preferred_element_type=jnp.float32)
        h = jnp.maximum(h + b1_ref[...], 0.0)

        # ---- conv2 input: zero-padded h kept entirely in VMEM --------------
        hpad_ref[...] = jnp.zeros_like(hpad_ref)
        hpad_ref[:, 1:Ho + 1, 1:Wo + 1, :] = h.reshape(N, Ho, Wo, Cout)
        hp = hpad_ref[...]

        # ---- conv2 (stride 1) as ONE im2col matmul, K = 9*Cout -------------
        for ky in range(3):
            for kx in range(3):
                t = ky * 3 + kx
                pc2_ref[:, t * Cout:(t + 1) * Cout] = (
                    hp[:, ky:ky + Ho, kx:kx + Wo, :].reshape(M, Cout))
        y = jnp.dot(pc2_ref[...].astype(jnp.bfloat16), w2_ref[...],
                    preferred_element_type=jnp.float32) + b2_ref[...]

        # ---- shortcut -------------------------------------------------------
        # x[:, s*oy, s*ox, :] == phase (1 % s, 1 % s) of the padded input at
        # offset (1 // s, 1 // s).
        sp = 1 % s
        so = 1 // s
        base = (sp * s + sp) * N
        xsc = xv[base:base + N, so:so + Ho, so:so + Wo, :].reshape(M, Cin)
        if has_down:
            sc = jnp.dot(xsc.astype(jnp.bfloat16), wd_ref[...],
                         preferred_element_type=jnp.float32) + bd_ref[...]
        else:
            sc = xsc                       # identity: stride == 1, Cin == Cout

        out_ref[...] = jnp.maximum(y + sc, 0.0).astype(out_ref.dtype)

    return kernel


# ----------------------------- wrapper -------------------------------------- #

def _fold_bn(params, name):
    gamma = params[name + "_gamma"]
    beta = params[name + "_beta"]
    mean = params[name + "_mean"]
    var = params[name + "_var"]
    scale = gamma / jnp.sqrt(var + EPS)
    bias = beta - mean * scale
    return scale, bias


def _phase_split(x_nhwc, stride):
    """pad=1 then split into the stride x stride spatial phases.

    Single tiny fused XLA prep pass over the (small) block input; everything
    downstream runs inside one Pallas kernel.
    """
    N, H, W, C = x_nhwc.shape
    s = stride
    xp = jnp.pad(x_nhwc, ((0, 0), (1, 1), (1, 1), (0, 0)))
    Hp, Wp = H + 2, W + 2
    assert Hp % s == 0 and Wp % s == 0, "H+2 / W+2 must be divisible by stride"
    xph = xp.reshape(N, Hp // s, s, Wp // s, s, C)
    xph = jnp.transpose(xph, (2, 4, 0, 1, 3, 5))        # (s, s, N, Hp/s, Wp/s, C)
    return xph.reshape(s * s * N, Hp // s, Wp // s, C)


def residual_block_forward(x_nchw, params):
    """ResidualBlock forward on an NCHW input (BN in inference mode)."""
    x = jnp.transpose(x_nchw, (0, 2, 3, 1)).astype(jnp.float32)   # NCHW -> NHWC
    N, H, W, Cin = x.shape
    s = int(params["stride"])
    w1 = params["w1"]
    Cout = w1.shape[-1]
    has_down = "wd" in params
    # Preserve the module's invariant: downsample exists iff stride!=1 or Cin!=Cout.
    assert has_down == (s != 1 or Cin != Cout), "inconsistent downsample params"

    Ho = (H - 1) // s + 1
    Wo = (W - 1) // s + 1
    M = N * Ho * Wo
    # Keeps the in-kernel (N,Ho,Wo,C) <-> (M,C) reshapes layout-trivial.
    assert Wo % 8 == 0, "W after striding must be a multiple of 8"

    # Fold BN scales into the conv weights host-side (free) and pre-cast the
    # matmul weights to bf16; biases stay f32.
    s1, b1 = _fold_bn(params, "bn1")
    s2, b2 = _fold_bn(params, "bn2")
    w1f = (w1 * s1).reshape(9 * Cin, Cout).astype(jnp.bfloat16)
    w2f = (params["w2"] * s2).reshape(9 * Cout, Cout).astype(jnp.bfloat16)

    args = [_phase_split(x, s), w1f, b1.reshape(1, Cout), w2f, b2.reshape(1, Cout)]
    if has_down:
        sd, bd = _fold_bn(params, "bnd")
        wdf = (params["wd"] * sd).astype(jnp.bfloat16)            # (Cin, Cout)
        args += [wdf, bd.reshape(1, Cout)]

    kernel = _make_resblock_kernel(N, H, W, Cin, Cout, s, has_down)
    out2d = pl.pallas_call(
        kernel,
        out_shape=jax.ShapeDtypeStruct((M, Cout), jnp.float32),
        # No grid: the whole block fits easily in VMEM, batch is folded into M.
        scratch_shapes=[
            pltpu.VMEM((N, Ho + 2, Wo + 2, Cout), jnp.float32),   # padded h (in-kernel pad)
            pltpu.VMEM((M, 9 * Cin), jnp.float32),                # conv1 im2col patches
            pltpu.VMEM((M, 9 * Cout), jnp.float32),               # conv2 im2col patches
        ],
    )(*args)

    out = out2d.reshape(N, Ho, Wo, Cout)
    return jnp.transpose(out, (0, 3, 1, 2))                       # NHWC -> NCHW


# ----------------------------- params / reference --------------------------- #

def init_residual_block_params(key, in_channels, out_channels, stride):
    keys = jax.random.split(key, 8)

    def conv_w(k, cin, cout, ksize):
        fan_in = cin * ksize * ksize
        w = jax.random.normal(k, (ksize, ksize, cin, cout), jnp.float32)
        return w * jnp.sqrt(2.0 / fan_in)

    def bn(k, c, prefix, out):
        k1, k2, k3, k4 = jax.random.split(k, 4)
        out[prefix + "_gamma"] = 1.0 + 0.1 * jax.random.normal(k1, (c,), jnp.float32)
        out[prefix + "_beta"] = 0.1 * jax.random.normal(k2, (c,), jnp.float32)
        out[prefix + "_mean"] = 0.1 * jax.random.normal(k3, (c,), jnp.float32)
        out[prefix + "_var"] = jax.random.uniform(k4, (c,), jnp.float32, 0.5, 1.5)

    p = {"stride": stride}
    p["w1"] = conv_w(keys[0], in_channels, out_channels, 3)
    bn(keys[1], out_channels, "bn1", p)
    p["w2"] = conv_w(keys[2], out_channels, out_channels, 3)
    bn(keys[3], out_channels, "bn2", p)
    if stride != 1 or in_channels != out_channels:
        p["wd"] = conv_w(keys[4], in_channels, out_channels, 1).reshape(
            in_channels, out_channels)
        bn(keys[5], out_channels, "bnd", p)
    return p


def residual_block_reference(x_nchw, params):
    """Pure-JAX f32 reference (lax.conv) mirroring the PyTorch module (eval BN)."""
    prec = jax.lax.Precision.HIGHEST
    x = jnp.transpose(x_nchw, (0, 2, 3, 1)).astype(jnp.float32)
    s = int(params["stride"])
    cin = x.shape[-1]
    cout = params["w1"].shape[-1]

    def conv(h, w, stride, pad):
        return jax.lax.conv_general_dilated(
            h, w, (stride, stride), ((pad, pad), (pad, pad)),
            dimension_numbers=("NHWC", "HWIO", "NHWC"), precision=prec)

    s1, b1 = _fold_bn(params, "bn1")
    s2, b2 = _fold_bn(params, "bn2")
    out = jnp.maximum(conv(x, params["w1"], s, 1) * s1 + b1, 0.0)
    out = conv(out, params["w2"], 1, 1) * s2 + b2
    if "wd" in params:
        sd, bd = _fold_bn(params, "bnd")
        w1x1 = params["wd"].reshape(1, 1, cin, cout)
        shortcut = conv(x, w1x1, s, 0) * sd + bd
    else:
        shortcut = x
    out = jnp.maximum(out + shortcut, 0.0)
    return jnp.transpose(out, (0, 3, 1, 2))


# ----------------------------- main ----------------------------------------- #

if __name__ == "__main__":
    root = jax.random.PRNGKey(0)
    kp_a, kx_a, kp_b, kx_b = jax.random.split(root, 4)

    # Downsample branch: ResidualBlock(16, 32, stride=2), input (2, 16, 16, 16) NCHW.
    params_a = init_residual_block_params(kp_a, 16, 32, 2)
    x_a = jax.random.normal(kx_a, (2, 16, 16, 16), jnp.float32)
    out_a = jax.block_until_ready(residual_block_forward(x_a, params_a))
    ref_a = residual_block_reference(x_a, params_a)
    assert out_a.shape == (2, 32, 8, 8), out_a.shape
    assert jnp.allclose(out_a, ref_a, atol=5e-2, rtol=5e-2), (
        float(jnp.max(jnp.abs(out_a - ref_a))))

    # Identity branch: ResidualBlock(32, 32, stride=1), input (2, 32, 8, 8) NCHW.
    params_b = init_residual_block_params(kp_b, 32, 32, 1)
    x_b = jax.random.normal(kx_b, (2, 32, 8, 8), jnp.float32)
    out_b = jax.block_until_ready(residual_block_forward(x_b, params_b))
    ref_b = residual_block_reference(x_b, params_b)
    assert out_b.shape == (2, 32, 8, 8), out_b.shape
    assert jnp.allclose(out_b, ref_b, atol=5e-2, rtol=5e-2), (
        float(jnp.max(jnp.abs(out_b - ref_b))))

    print("KERNEL_OK")
</pallas_src>

<mosaic_0001>
module attributes {stable_mosaic.version = 11 : i64} {
  func.func @kernel(%arg0: memref<8x9x9x16xf32, #tpu.memory_space<vmem>>, %arg1: memref<144x32xbf16, #tpu.memory_space<vmem>>, %arg2: memref<1x32xf32, #tpu.memory_space<vmem>>, %arg3: memref<288x32xbf16, #tpu.memory_space<vmem>>, %arg4: memref<1x32xf32, #tpu.memory_space<vmem>>, %arg5: memref<16x32xbf16, #tpu.memory_space<vmem>>, %arg6: memref<1x32xf32, #tpu.memory_space<vmem>>, %arg7: memref<128x32xf32, #tpu.memory_space<vmem>>, %arg8: memref<2x10x10x32xf32, #tpu.memory_space<vmem>>, %arg9: memref<128x144xf32, #tpu.memory_space<vmem>>, %arg10: memref<128x288xf32, #tpu.memory_space<vmem>>) attributes {dimension_semantics = [], scalar_prefetch = 0 : i64, scratch_operands = 3 : i64, tpu.core_type = #tpu.core_type<tc>} {
    %c0 = arith.constant 0 : index
    %c0_0 = arith.constant 0 : index
    %c0_1 = arith.constant 0 : index
    %c0_2 = arith.constant 0 : index
    %0 = vector.load %arg0[%c0, %c0_0, %c0_1, %c0_2] : memref<8x9x9x16xf32, #tpu.memory_space<vmem>>, vector<8x9x9x16xf32>
    %1 = vector.extract_strided_slice %0 {offsets = [0, 0, 0, 0], sizes = [2, 8, 8, 16], strides = [1, 1, 1, 1]} : vector<8x9x9x16xf32> to vector<2x8x8x16xf32>
    %2 = vector.shape_cast %1 : vector<2x8x8x16xf32> to vector<128x16xf32>
    %c0_3 = arith.constant 0 : index
    %c0_4 = arith.constant 0 : index
    %3 = vector.load %arg9[%c0_3, %c0_4] : memref<128x144xf32, #tpu.memory_space<vmem>>, vector<128x16xf32>
    tpu.vector_store %arg9[%c0_3, %c0_4], %2 {strides = array<i32>} : memref<128x144xf32, #tpu.memory_space<vmem>>, vector<128x16xf32>,
    %4 = vector.extract_strided_slice %0 {offsets = [2, 0, 0, 0], sizes = [2, 8, 8, 16], strides = [1, 1, 1, 1]} : vector<8x9x9x16xf32> to vector<2x8x8x16xf32>
    %5 = vector.shape_cast %4 : vector<2x8x8x16xf32> to vector<128x16xf32>
    %c0_5 = arith.constant 0 : index
    %c16 = arith.constant 16 : index
    %6 = vector.load %arg9[%c0_5, %c16] : memref<128x144xf32, #tpu.memory_space<vmem>>, vector<128x16xf32>
    tpu.vector_store %arg9[%c0_5, %c16], %5 {strides = array<i32>} : memref<128x144xf32, #tpu.memory_space<vmem>>, vector<128x16xf32>,
    %7 = vector.extract_strided_slice %0 {offsets = [0, 0, 1, 0], sizes = [2, 8, 8, 16], strides = [1, 1, 1, 1]} : vector<8x9x9x16xf32> to vector<2x8x8x16xf32>
    %8 = vector.shape_cast %7 : vector<2x8x8x16xf32> to vector<128x16xf32>
    %c0_6 = arith.constant 0 : index
    %c32 = arith.constant 32 : index
    %9 = vector.load %arg9[%c0_6, %c32] : memref<128x144xf32, #tpu.memory_space<vmem>>, vector<128x16xf32>
    tpu.vector_store %arg9[%c0_6, %c32], %8 {strides = array<i32>} : memref<128x144xf32, #tpu.memory_space<vmem>>, vector<128x16xf32>,
    %10 = vector.extract_strided_slice %0 {offsets = [4, 0, 0, 0], sizes = [2, 8, 8, 16], strides = [1, 1, 1, 1]} : vector<8x9x9x16xf32> to vector<2x8x8x16xf32>
    %11 = vector.shape_cast %10 : vector<2x8x8x16xf32> to vector<128x16xf32>
    %c0_7 = arith.constant 0 : index
    %c48 = arith.constant 48 : index
    %12 = vector.load %arg9[%c0_7, %c48] : memref<128x144xf32, #tpu.memory_space<vmem>>, vector<128x16xf32>
    tpu.vector_store %arg9[%c0_7, %c48], %11 {strides = array<i32>} : memref<128x144xf32, #tpu.memory_space<vmem>>, vector<128x16xf32>,
    %13 = vector.extract_strided_slice %0 {offsets = [6, 0, 0, 0], sizes = [2, 8, 8, 16], strides = [1, 1, 1, 1]} : vector<8x9x9x16xf32> to vector<2x8x8x16xf32>
    %14 = vector.shape_cast %13 : vector<2x8x8x16xf32> to vector<128x16xf32>
    %c0_8 = arith.constant 0 : index
    %c64 = arith.constant 64 : index
    %15 = vector.load %arg9[%c0_8, %c64] : memref<128x144xf32, #tpu.memory_space<vmem>>, vector<128x16xf32>
    tpu.vector_store %arg9[%c0_8, %c64], %14 {strides = array<i32>} : memref<128x144xf32, #tpu.memory_space<vmem>>, vector<128x16xf32>,
    %16 = vector.extract_strided_slice %0 {offsets = [4, 0, 1, 0], sizes = [2, 8, 8, 16], strides = [1, 1, 1, 1]} : vector<8x9x9x16xf32> to vector<2x8x8x16xf32>
    %17 = vector.shape_cast %16 : vector<2x8x8x16xf32> to vector<128x16xf32>
    %c0_9 = arith.constant 0 : index
    %c80 = arith.constant 80 : index
    %18 = vector.load %arg9[%c0_9, %c80] : memref<128x144xf32, #tpu.memory_space<vmem>>, vector<128x16xf32>
    tpu.vector_store %arg9[%c0_9, %c80], %17 {strides = array<i32>} : memref<128x144xf32, #tpu.memory_space<vmem>>, vector<128x16xf32>,
    %19 = vector.extract_strided_slice %0 {offsets = [0, 1, 0, 0], sizes = [2, 8, 8, 16], strides = [1, 1, 1, 1]} : vector<8x9x9x16xf32> to vector<2x8x8x16xf32>
    %20 = vector.shape_cast %19 : vector<2x8x8x16xf32> to vector<128x16xf32>
    %c0_10 = arith.constant 0 : index
    %c96 = arith.constant 96 : index
    %21 = vector.load %arg9[%c0_10, %c96] : memref<128x144xf32, #tpu.memory_space<vmem>>, vector<128x16xf32>
    tpu.vector_store %arg9[%c0_10, %c96], %20 {strides = array<i32>} : memref<128x144xf32, #tpu.memory_space<vmem>>, vector<128x16xf32>,
    %22 = vector.extract_strided_slice %0 {offsets = [2, 1, 0, 0], sizes = [2, 8, 8, 16], strides = [1, 1, 1, 1]} : vector<8x9x9x16xf32> to vector<2x8x8x16xf32>
    %23 = vector.shape_cast %22 : vector<2x8x8x16xf32> to vector<128x16xf32>
    %c0_11 = arith.constant 0 : index
    %c112 = arith.constant 112 : index
    %24 = vector.load %arg9[%c0_11, %c112] : memref<128x144xf32, #tpu.memory_space<vmem>>, vector<128x16xf32>
    tpu.vector_store %arg9[%c0_11, %c112], %23 {strides = array<i32>} : memref<128x144xf32, #tpu.memory_space<vmem>>, vector<128x16xf32>,
    %25 = vector.extract_strided_slice %0 {offsets = [0, 1, 1, 0], sizes = [2, 8, 8, 16], strides = [1, 1, 1, 1]} : vector<8x9x9x16xf32> to vector<2x8x8x16xf32>
    %26 = vector.shape_cast %25 : vector<2x8x8x16xf32> to vector<128x16xf32>
    %c0_12 = arith.constant 0 : index
    %c128 = arith.constant 128 : index
    %27 = vector.load %arg9[%c0_12, %c128] : memref<128x144xf32, #tpu.memory_space<vmem>>, vector<128x16xf32>
    tpu.vector_store %arg9[%c0_12, %c128], %26 {strides = array<i32>} : memref<128x144xf32, #tpu.memory_space<vmem>>, vector<128x16xf32>,
    %c0_13 = arith.constant 0 : index
    %c0_14 = arith.constant 0 : index
    %28 = vector.load %arg9[%c0_13, %c0_14] : memref<128x144xf32, #tpu.memory_space<vmem>>, vector<128x144xf32>
    %29 = arith.truncf %28 : vector<128x144xf32> to vector<128x144xbf16>
    %c0_15 = arith.constant 0 : index
    %c0_16 = arith.constant 0 : index
    %30 = vector.load %arg1[%c0_15, %c0_16] : memref<144x32xbf16, #tpu.memory_space<vmem>>, vector<144x32xbf16>
    %cst = arith.constant dense<0.000000e+00> : vector<128x32xf32>
    %31 = tpu.matmul %29, %30, %cst {dimension_numbers = #tpu.dot_dimension_numbers<[1], [0], [0], [1], [0, 0, 1, 1], [], []>} : vector<128x144xbf16>, vector<144x32xbf16>, vector<128x32xf32> -> vector<128x32xf32>
    %c0_17 = arith.constant 0 : index
    %c0_18 = arith.constant 0 : index
    %32 = vector.load %arg2[%c0_17, %c0_18] : memref<1x32xf32, #tpu.memory_space<vmem>>, vector<1x32xf32>
    %33 = vector.broadcast %32 : vector<1x32xf32> to vector<128x32xf32>
    %34 = arith.addf %31, %33 : vector<128x32xf32>
    %cst_19 = arith.constant 0.000000e+00 : f32
    %35 = vector.broadcast %cst_19 : f32 to vector<128x32xf32>
    %36 = arith.maximumf %34, %35 : vector<128x32xf32>
    %cst_20 = arith.constant 0.000000e+00 : f32
    %37 = vector.broadcast %cst_20 : f32 to vector<2x10x10x32xf32>
    %c0_21 = arith.constant 0 : index
    %c0_22 = arith.constant 0 : index
    %c0_23 = arith.constant 0 : index
    %c0_24 = arith.constant 0 : index
    %38 = vector.load %arg8[%c0_21, %c0_22, %c0_23, %c0_24] : memref<2x10x10x32xf32, #tpu.memory_space<vmem>>, vector<2x10x10x32xf32>
    tpu.vector_store %arg8[%c0_21, %c0_22, %c0_23, %c0_24], %37 {strides = array<i32>} : memref<2x10x10x32xf32, #tpu.memory_space<vmem>>, vector<2x10x10x32xf32>,
    %39 = vector.shape_cast %36 : vector<128x32xf32> to vector<2x8x8x32xf32>
    %c0_25 = arith.constant 0 : index
    %c1 = arith.constant 1 : index
    %c1_26 = arith.constant 1 : index
    %c0_27 = arith.constant 0 : index
    %40 = vector.load %arg8[%c0_25, %c1, %c1_26, %c0_27] : memref<2x10x10x32xf32, #tpu.memory_space<vmem>>, vector<2x8x8x32xf32>
    tpu.vector_store %arg8[%c0_25, %c1, %c1_26, %c0_27], %39 {strides = array<i32>} : memref<2x10x10x32xf32, #tpu.memory_space<vmem>>, vector<2x8x8x32xf32>,
    %c0_28 = arith.constant 0 : index
    %c0_29 = arith.constant 0 : index
    %c0_30 = arith.constant 0 : index
    %c0_31 = arith.constant 0 : index
    %41 = vector.load %arg8[%c0_28, %c0_29, %c0_30, %c0_31] : memref<2x10x10x32xf32, #tpu.memory_space<vmem>>, vector<2x10x10x32xf32>
    %42 = vector.extract_strided_slice %41 {offsets = [0, 0, 0, 0], sizes = [2, 8, 8, 32], strides = [1, 1, 1, 1]} : vector<2x10x10x32xf32> to vector<2x8x8x32xf32>
    %43 = vector.shape_cast %42 : vector<2x8x8x32xf32> to vector<128x32xf32>
    %c0_32 = arith.constant 0 : index
    %c0_33 = arith.constant 0 : index
    %44 = vector.load %arg10[%c0_32, %c0_33] : memref<128x288xf32, #tpu.memory_space<vmem>>, vector<128x32xf32>
    tpu.vector_store %arg10[%c0_32, %c0_33], %43 {strides = array<i32>} : memref<128x288xf32, #tpu.memory_space<vmem>>, vector<128x32xf32>,
    %45 = vector.extract_strided_slice %41 {offsets = [0, 0, 1, 0], sizes = [2, 8, 8, 32], strides = [1, 1, 1, 1]} : vector<2x10x10x32xf32> to vector<2x8x8x32xf32>
    %46 = vector.shape_cast %45 : vector<2x8x8x32xf32> to vector<128x32xf32>
    %c0_34 = arith.constant 0 : index
    %c32_35 = arith.constant 32 : index
    %47 = vector.load %arg10[%c0_34, %c32_35] : memref<128x288xf32, #tpu.memory_space<vmem>>, vector<128x32xf32>
    tpu.vector_store %arg10[%c0_34, %c32_35], %46 {strides = array<i32>} : memref<128x288xf32, #tpu.memory_space<vmem>>, vector<128x32xf32>,
    %48 = vector.extract_strided_slice %41 {offsets = [0, 0, 2, 0], sizes = [2, 8, 8, 32], strides = [1, 1, 1, 1]} : vector<2x10x10x32xf32> to vector<2x8x8x32xf32>
    %49 = vector.shape_cast %48 : vector<2x8x8x32xf32> to vector<128x32xf32>
    %c0_36 = arith.constant 0 : index
    %c64_37 = arith.constant 64 : index
    %50 = vector.load %arg10[%c0_36, %c64_37] : memref<128x288xf32, #tpu.memory_space<vmem>>, vector<128x32xf32>
    tpu.vector_store %arg10[%c0_36, %c64_37], %49 {strides = array<i32>} : memref<128x288xf32, #tpu.memory_space<vmem>>, vector<128x32xf32>,
    %51 = vector.extract_strided_slice %41 {offsets = [0, 1, 0, 0], sizes = [2, 8, 8, 32], strides = [1, 1, 1, 1]} : vector<2x10x10x32xf32> to vector<2x8x8x32xf32>
    %52 = vector.shape_cast %51 : vector<2x8x8x32xf32> to vector<128x32xf32>
    %c0_38 = arith.constant 0 : index
    %c96_39 = arith.constant 96 : index
    %53 = vector.load %arg10[%c0_38, %c96_39] : memref<128x288xf32, #tpu.memory_space<vmem>>, vector<128x32xf32>
    tpu.vector_store %arg10[%c0_38, %c96_39], %52 {strides = array<i32>} : memref<128x288xf32, #tpu.memory_space<vmem>>, vector<128x32xf32>,
    %54 = vector.extract_strided_slice %41 {offsets = [0, 1, 1, 0], sizes = [2, 8, 8, 32], strides = [1, 1, 1, 1]} : vector<2x10x10x32xf32> to vector<2x8x8x32xf32>
    %55 = vector.shape_cast %54 : vector<2x8x8x32xf32> to vector<128x32xf32>
    %c0_40 = arith.constant 0 : index
    %c128_41 = arith.constant 128 : index
    %56 = vector.load %arg10[%c0_40, %c128_41] : memref<128x288xf32, #tpu.memory_space<vmem>>, vector<128x32xf32>
    tpu.vector_store %arg10[%c0_40, %c128_41], %55 {strides = array<i32>} : memref<128x288xf32, #tpu.memory_space<vmem>>, vector<128x32xf32>,
    %57 = vector.extract_strided_slice %41 {offsets = [0, 1, 2, 0], sizes = [2, 8, 8, 32], strides = [1, 1, 1, 1]} : vector<2x10x10x32xf32> to vector<2x8x8x32xf32>
    %58 = vector.shape_cast %57 : vector<2x8x8x32xf32> to vector<128x32xf32>
    %c0_42 = arith.constant 0 : index
    %c160 = arith.constant 160 : index
    %59 = vector.load %arg10[%c0_42, %c160] : memref<128x288xf32, #tpu.memory_space<vmem>>, vector<128x32xf32>
    tpu.vector_store %arg10[%c0_42, %c160], %58 {strides = array<i32>} : memref<128x288xf32, #tpu.memory_space<vmem>>, vector<128x32xf32>,
    %60 = vector.extract_strided_slice %41 {offsets = [0, 2, 0, 0], sizes = [2, 8, 8, 32], strides = [1, 1, 1, 1]} : vector<2x10x10x32xf32> to vector<2x8x8x32xf32>
    %61 = vector.shape_cast %60 : vector<2x8x8x32xf32> to vector<128x32xf32>
    %c0_43 = arith.constant 0 : index
    %c192 = arith.constant 192 : index
    %62 = vector.load %arg10[%c0_43, %c192] : memref<128x288xf32, #tpu.memory_space<vmem>>, vector<128x32xf32>
    tpu.vector_store %arg10[%c0_43, %c192], %61 {strides = array<i32>} : memref<128x288xf32, #tpu.memory_space<vmem>>, vector<128x32xf32>,
    %63 = vector.extract_strided_slice %41 {offsets = [0, 2, 1, 0], sizes = [2, 8, 8, 32], strides = [1, 1, 1, 1]} : vector<2x10x10x32xf32> to vector<2x8x8x32xf32>
    %64 = vector.shape_cast %63 : vector<2x8x8x32xf32> to vector<128x32xf32>
    %c0_44 = arith.constant 0 : index
    %c224 = arith.constant 224 : index
    %65 = vector.load %arg10[%c0_44, %c224] : memref<128x288xf32, #tpu.memory_space<vmem>>, vector<128x32xf32>
    tpu.vector_store %arg10[%c0_44, %c224], %64 {strides = array<i32>} : memref<128x288xf32, #tpu.memory_space<vmem>>, vector<128x32xf32>,
    %66 = vector.extract_strided_slice %41 {offsets = [0, 2, 2, 0], sizes = [2, 8, 8, 32], strides = [1, 1, 1, 1]} : vector<2x10x10x32xf32> to vector<2x8x8x32xf32>
    %67 = vector.shape_cast %66 : vector<2x8x8x32xf32> to vector<128x32xf32>
    %c0_45 = arith.constant 0 : index
    %c256 = arith.constant 256 : index
    %68 = vector.load %arg10[%c0_45, %c256] : memref<128x288xf32, #tpu.memory_space<vmem>>, vector<128x32xf32>
    tpu.vector_store %arg10[%c0_45, %c256], %67 {strides = array<i32>} : memref<128x288xf32, #tpu.memory_space<vmem>>, vector<128x32xf32>,
    %c0_46 = arith.constant 0 : index
    %c0_47 = arith.constant 0 : index
    %69 = vector.load %arg10[%c0_46, %c0_47] : memref<128x288xf32, #tpu.memory_space<vmem>>, vector<128x288xf32>
    %70 = arith.truncf %69 : vector<128x288xf32> to vector<128x288xbf16>
    %c0_48 = arith.constant 0 : index
    %c0_49 = arith.constant 0 : index
    %71 = vector.load %arg3[%c0_48, %c0_49] : memref<288x32xbf16, #tpu.memory_space<vmem>>, vector<288x32xbf16>
    %cst_50 = arith.constant dense<0.000000e+00> : vector<128x32xf32>
    %72 = tpu.matmul %70, %71, %cst_50 {dimension_numbers = #tpu.dot_dimension_numbers<[1], [0], [0], [1], [0, 0, 1, 1], [], []>} : vector<128x288xbf16>, vector<288x32xbf16>, vector<128x32xf32> -> vector<128x32xf32>
    %c0_51 = arith.constant 0 : index
    %c0_52 = arith.constant 0 : index
    %73 = vector.load %arg4[%c0_51, %c0_52] : memref<1x32xf32, #tpu.memory_space<vmem>>, vector<1x32xf32>
    %74 = vector.broadcast %73 : vector<1x32xf32> to vector<128x32xf32>
    %75 = arith.addf %72, %74 : vector<128x32xf32>
    %76 = vector.extract_strided_slice %0 {offsets = [6, 0, 0, 0], sizes = [2, 8, 8, 16], strides = [1, 1, 1, 1]} : vector<8x9x9x16xf32> to vector<2x8x8x16xf32>
    %77 = vector.shape_cast %76 : vector<2x8x8x16xf32> to vector<128x16xf32>
    %78 = arith.truncf %77 : vector<128x16xf32> to vector<128x16xbf16>
    %c0_53 = arith.constant 0 : index
    %c0_54 = arith.constant 0 : index
    %79 = vector.load %arg5[%c0_53, %c0_54] : memref<16x32xbf16, #tpu.memory_space<vmem>>, vector<16x32xbf16>
    %cst_55 = arith.constant dense<0.000000e+00> : vector<128x32xf32>
    %80 = tpu.matmul %78, %79, %cst_55 {dimension_numbers = #tpu.dot_dimension_numbers<[1], [0], [0], [1], [0, 0, 1, 1], [], []>} : vector<128x16xbf16>, vector<16x32xbf16>, vector<128x32xf32> -> vector<128x32xf32>
    %c0_56 = arith.constant 0 : index
    %c0_57 = arith.constant 0 : index
    %81 = vector.load %arg6[%c0_56, %c0_57] : memref<1x32xf32, #tpu.memory_space<vmem>>, vector<1x32xf32>
    %82 = vector.broadcast %81 : vector<1x32xf32> to vector<128x32xf32>
    %83 = arith.addf %80, %82 : vector<128x32xf32>
    %84 = arith.addf %75, %83 : vector<128x32xf32>
    %cst_58 = arith.constant 0.000000e+00 : f32
    %85 = vector.broadcast %cst_58 : f32 to vector<128x32xf32>
    %86 = arith.maximumf %84, %85 : vector<128x32xf32>
    %c0_59 = arith.constant 0 : index
    %c0_60 = arith.constant 0 : index
    %87 = vector.load %arg7[%c0_59, %c0_60] : memref<128x32xf32, #tpu.memory_space<vmem>>, vector<128x32xf32>
    tpu.vector_store %arg7[%c0_59, %c0_60], %86 {strides = array<i32>} : memref<128x32xf32, #tpu.memory_space<vmem>>, vector<128x32xf32>,
    return
  }
}

</mosaic_0001>

<bundles_post_ra>
// kernel: tpu_custom_call.1
= control target key start
LH: loop header
LB: loop body
LE: loop exit
PB: predicated region body
PF: predicated region fallthrough
CT: control target
= control target key end

     0   :  { %vm129_vm0 = vcmask 130048   ;;  %vm259_vm1 = vcmask 1046528   ;;  %v2689_v3 = vmov 0   ;;  %s2690_s30 = smov 16   ;;  %s2691_s18 = smov 32   ;;  %vm210_vm2 = vcmask 261248   ;;  %s4215_s0 = inlined_call_operand.vmem [shape: f32[8,9,9,16], index: 0, kind: input, shape index: {}]   ;;  %s4216_s1 = inlined_call_operand.vmem [shape: bf16[144,32], index: 1, kind: input, shape index: {}]   ;;  %s4217_s2 = inlined_call_operand.vmem [shape: f32[1,32], index: 2, kind: input, shape index: {}]   ;;  %s4218_s3 = inlined_call_operand.vmem [shape: bf16[288,32], index: 3, kind: input, shape index: {}]   ;;  %s4219_s5 = inlined_call_operand.vmem [shape: bf16[16,32], index: 5, kind: input, shape index: {}]   ;;  %s4220_s6 = inlined_call_operand.vmem [shape: f32[1,32], index: 6, kind: input, shape index: {}]   ;;  %s4221_s4 = inlined_call_operand.vmem [shape: f32[1,32], index: 4, kind: input, shape index: {}]   ;;  %s4222_s7 = inlined_call_operand.vmem [shape: f32[128,32], index: 7, kind: output, shape index: {}]  }
   0x1   :  { %v63_v0 = vld [vmem:[%s4215_s0 + $0x120] sm:$0xff]  ;;  %v28_v2 = vld [vmem:[%s4215_s0 + $0x8] sm:$0x1]  ;;  %989 = vmatprep.subr.bf16.mxu0 %v2689_v3  ;;  %v2752_v6 = vld [vmem:[%s4215_s0 + $0x10] sm:$0xff]  ;;  %s2692_s15 = smov 48   ;;  %s2693_s11 = smov 64  }
   0x2   :  { %v27_v1 = vld [vmem:[%s4215_s0] sm:$0xff]  ;;  %162 = vrot.lane.b32.xlu0 %v63_v0, %s2690_s30  ;;  %v261_v5 = vrot.slane %v28_v2, 1  ;;  %v30_v7 = vld [vmem:[%s4215_s0 + $0x18] sm:$0x1]  ;;  %v2761_v8 = vld [vmem:[%s4215_s0 + $0x130] sm:$0xff]  ;;  %v263_v9 = vrot.slane %v2752_v6, 1 }
   0x3   :  { %v260_v4 = vrot.slane %v27_v1, 1  ;;  %130 = vst.msk [vmem:[#allocation3] sm:$0xff] %vm129_vm0, %v27_v1  ;;  %v264_v10 = vrot.slane %v30_v7, 1  ;;  %131 = vst.msk [vmem:[#allocation3 + $0x10] sm:$0xff] %vm129_vm0, %v2752_v6  ;;  %v2770_v12 = vld [vmem:[%s4215_s0 + $0x360] sm:$0xff]  ;;  %v2775_v13 = vld [vmem:[%s4215_s0 + $0x370] sm:$0xff] }
   0x4   :  { %v2270_v15 = vpack.c.bf16 %v2775_v13, %v2770_v12  ;;  %v2784_v16 = vld [vmem:[%s4215_s0 + $0x20] sm:$0xff]  ;;  %v32_v19 = vld [vmem:[%s4215_s0 + $0x28] sm:$0x1]  ;;  %v2801_v20 = vld [vmem:[%s4215_s0 + $0x30] sm:$0xff]  ;;  %s2694_s24 = smov 80   ;;  %s2695_s14 = smov 96  }
   0x5   :  { %v262_v11 = vsel %vm259_vm1, %v260_v4, %v261_v5  ;;  %v265_v14 = vsel %vm259_vm1, %v263_v9, %v264_v10  ;;  %v81_v17 = vld [vmem:[%s4215_s0 + $0x240] sm:$0xff]  ;;  %v266_v18 = vrot.slane %v2784_v16, 1  ;;  %132 = vst.msk [vmem:[#allocation3 + $0x20] sm:$0xff] %vm129_vm0, %v2784_v16  ;;  %v82_v21 = vld [vmem:[%s4215_s0 + $0x248] sm:$0x1]  ;;  %v267_v22 = vrot.slane %v32_v19, 1 }
   0x6   :  { %308 = vrot.lane.b32.xlu1 %v262_v11, %s2691_s18  ;;  %164 = vrot.lane.b32.xlu0 %v2761_v8, %s2690_s30  ;;  %822 = vst.msk [vmem:[#allocation3 + $0x8] sm:$0xff] %vm129_vm0, %v265_v14  ;;  %v34_v23 = vld [vmem:[%s4215_s0 + $0x38] sm:$0x1]  ;;  %v269_v24 = vrot.slane %v2801_v20, 1  ;;  %133 = vst.msk [vmem:[#allocation3 + $0x30] sm:$0xff] %vm129_vm0, %v2801_v20  ;;  %v2815_v26 = vld [vmem:[%s4215_s0 + $0x380] sm:$0xff] }
   0x7   :  { %v270_v25 = vrot.slane %v34_v23, 1  ;;  %v2820_v27 = vld [vmem:[%s4215_s0 + $0x390] sm:$0xff]  ;;  %v2825_v28 = vld [vmem:[%s4215_s0 + $0x40] sm:$0xff]  ;;  %v2829_v29 = vsel %vm259_vm1, %v266_v18, %v267_v22  ;;  %v551_v32 = vrot.slane %v81_v17, 1  ;;  %v552_v34 = vrot.slane %v82_v21, 1  ;;  %v2651_v2 = vld [vmem:[%s4216_s1 + $0x38] sm:$0xff]  }
   0x8   :  { %v2271_v30 = vpack.c.bf16 %v2820_v27, %v2815_v26  ;;  %v272_v31 = vrot.slane %v2825_v28, 1  ;;  %134 = vst.msk [vmem:[#allocation3 + $0x40] sm:$0xff] %vm129_vm0, %v2825_v28  ;;  %v83_v33 = vld [vmem:[%s4215_s0 + $0x250] sm:$0xff]  ;;  %823 = vst.msk [vmem:[#allocation3 + $0x18] sm:$0xff] %vm129_vm0, %v2829_v29  ;;  %v36_v36 = vld [vmem:[%s4215_s0 + $0x48] sm:$0x1]  ;;  %990 = vmatpush1.bf16.msra.mxu0 %v2651_v2 }
   0x9   :  { %v2843_v35 = vsel %vm259_vm1, %v269_v24, %v270_v25  ;;  %v2851_v37 = vld [vmem:[%s4215_s0 + $0x50] sm:$0xff]  ;;  %v84_v38 = vld [vmem:[%s4215_s0 + $0x258] sm:$0x1]  ;;  %v273_v39 = vrot.slane %v36_v36, 1  ;;  %v2867_v43 = vld [vmem:[%s4215_s0 + $0x3a0] sm:$0xff]  ;;  %v554_v48 = vrot.slane %v83_v33, 1  ;;  %v553_v54 = vsel %vm259_vm1, %v551_v32, %v552_v34  ;;  %991 = vmatprep.subr.bf16.mxu0 %v2689_v3 }
   0xa   :  { %310 = vrot.lane.b32.xlu1 %v265_v14, %s2691_s18  ;;  %389 = vrot.lane.b32.xlu0 %v81_v17, %s2692_s15  ;;  %824 = vst.msk [vmem:[#allocation3 + $0x28] sm:$0xff] %vm129_vm0, %v2843_v35  ;;  %v38_v40 = vld [vmem:[%s4215_s0 + $0x58] sm:$0x1]  ;;  %v275_v41 = vrot.slane %v2851_v37, 1  ;;  %135 = vst.msk [vmem:[#allocation3 + $0x50] sm:$0xff] %vm129_vm0, %v2851_v37  ;;  %v2872_v44 = vld [vmem:[%s4215_s0 + $0x3b0] sm:$0xff] }
   0xb   :  { %v276_v42 = vrot.slane %v38_v40, 1  ;;  %v2876_v45 = vsel %vm259_vm1, %v272_v31, %v273_v39  ;;  %v2272_v46 = vpack.c.bf16 %v2872_v44, %v2867_v43  ;;  %v2883_v47 = vld [vmem:[%s4215_s0 + $0x60] sm:$0xff]  ;;  %v555_v49 = vrot.slane %v84_v38, 1  ;;  %v40_v52 = vld [vmem:[%s4215_s0 + $0x68] sm:$0x1]  ;;  %v2901_v53 = vld [vmem:[%s4215_s0 + $0x70] sm:$0xff] }
   0xc   :  { %825 = vst.msk [vmem:[#allocation3 + $0x38] sm:$0xff] %vm129_vm0, %v2876_v45  ;;  %v278_v51 = vrot.slane %v2883_v47, 1  ;;  %136 = vst.msk [vmem:[#allocation3 + $0x60] sm:$0xff] %vm129_vm0, %v2883_v47  ;;  %v279_v55 = vrot.slane %v40_v52, 1  ;;  %v42_v56 = vld [vmem:[%s4215_s0 + $0x78] sm:$0x1] }
   0xd   :  { %v2890_v50 = vsel %vm259_vm1, %v275_v41, %v276_v42  ;;  %v281_v57 = vrot.slane %v2901_v53, 1  ;;  %137 = vst.msk [vmem:[#allocation3 + $0x70] sm:$0xff] %vm129_vm0, %v2901_v53  ;;  %v282_v58 = vrot.slane %v42_v56, 1  ;;  %v2920_v60 = vld [vmem:[%s4215_s0 + $0x80] sm:$0xff]  ;;  %v44_v61 = vld [vmem:[%s4215_s0 + $0x88] sm:$0x1]  ;;  %v556_v62 = vsel %vm259_vm1, %v554_v48, %v555_v49 }
   0xe   :  { %391 = vrot.lane.b32.xlu1 %v83_v33, %s2692_s15  ;;  %470 = vrot.lane.b32.xlu0 %v2770_v12, %s2693_s11  ;;  %826 = vst.msk [vmem:[#allocation3 + $0x48] sm:$0xff] %vm129_vm0, %v2890_v50  ;;  %v2915_v59 = vsel %vm259_vm1, %v278_v51, %v279_v55  ;;  %v800_v0 = vrot.slane %v2920_v60, 1  ;;  %v801_v1 = vrot.slane %v44_v61, 1  ;;  %v2941_v4 = vld [vmem:[%s4215_s0 + $0x90] sm:$0xff]  ;;  %v2946_v5 = vld [vmem:[%s4215_s0 + $0xa0] sm:$0xff]  ;;  %s2696_s19 = smov 112  }
   0xf   :  { %827 = vst.msk [vmem:[#allocation3 + $0x58] sm:$0xff] %vm129_vm0, %v2915_v59  ;;  %v2930_v63 = vsel %vm259_vm1, %v281_v57, %v282_v58  ;;  %138 = vst.msk [vmem:[#allocation3 + $0x80] sm:$0xff] %vm129_vm0, %v2941_v4  ;;  %v48_v9 = vld [vmem:[%s4215_s0 + $0xa8] sm:$0x1]  ;;  %v287_v10 = vrot.slane %v2946_v5, 1  ;;  %v2652_v11 = vld [vmem:[%s4216_s1 + $0x30] sm:$0xff]  }
  0x10   :  { %828 = vst.msk [vmem:[#allocation3 + $0x68] sm:$0xff] %vm129_vm0, %v2930_v63  ;;  %v802_v7 = vsel %vm259_vm1, %v800_v0, %v801_v1  ;;  %139 = vst.msk [vmem:[#allocation3 + $0x90] sm:$0xff] %vm129_vm0, %v2946_v5  ;;  %v288_v14 = vrot.slane %v48_v9, 1  ;;  %992 = vmatpush1.bf16.msra.mxu0 %v2652_v11  ;;  %v2653_v18 = vld [vmem:[%s4216_s1 + $0x28] sm:$0xff]   ;;  %v2996_v19 = vld [vmem:[%s4215_s0 + $0x150] sm:$0xff]  ;;  %vm356_vm3 = vcmask 392448  }
  0x11   :  { %829 = vst.msk [vmem:[#allocation3 + $0x78] sm:$0xff] %vm129_vm0, %v802_v7  ;;  %993 = vmatprep.subr.bf16.mxu0 %v2689_v3  ;;  %v50_v22 = vld [vmem:[%s4215_s0 + $0xb8] sm:$0x1]  ;;  %v3006_v24 = vld [vmem:[%s4215_s0 + $0xc0] sm:$0xff]  ;;  %v52_v25 = vld [vmem:[%s4215_s0 + $0xc8] sm:$0x1] }
  0x12   :  { %472 = vrot.lane.b32.xlu1 %v2775_v13, %s2693_s11  ;;  %599 = vrot.lane.b32.xlu0 %v553_v54, %s2694_s24  ;;  %v2966_v17 = vsel %vm259_vm1, %v287_v10, %v288_v14  ;;  %v291_v23 = vrot.slane %v50_v22, 1  ;;  %v2655_v31 = vld [vmem:[%s4216_s1 + $0x18] sm:$0xff]   ;;  %v293_v32 = vrot.slane %v3006_v24, 1  ;;  %v294_v33 = vrot.slane %v52_v25, 1  ;;  %141 = vst.msk [vmem:[#allocation3 + $0xb0] sm:$0xff] %vm129_vm0, %v3006_v24  ;;  %v839_v36 = vld [vmem:[#allocation3 + $0x8] sm:$0xff] }
  0x13   :  { %830 = vst.msk [vmem:[#allocation3 + $0x88] sm:$0xff] %vm129_vm0, %v2966_v17  ;;  %v841_v38 = vld [vmem:[#allocation3 + $0x18] sm:$0xff]  ;;  %v85_v39 = vld [vmem:[%s4215_s0 + $0x260] sm:$0xff]  ;;  %v3041_v42 = vld [vmem:[%s4215_s0 + $0xd0] sm:$0xff]  ;;  %vm437_vm4 = vcmask 523648   ;;  %vm518_vm5 = vcmask 654848  }
  0x14   :  { %994 = vmatpush1.bf16.msra.mxu0 %v2653_v18  ;;  %v3031_v40 = vsel %vm259_vm1, %v293_v32, %v294_v33  ;;  %v871_v41 = vpack.c.bf16 %v841_v38, %v839_v36  ;;  %v2656_v48 = vld [vmem:[%s4216_s1 + $0x10] sm:$0xff]   ;;  %142 = vst.msk [vmem:[#allocation3 + $0xc0] sm:$0xff] %vm129_vm0, %v3041_v42  ;;  %v557_v51 = vrot.slane %v85_v39, 1  ;;  %v2657_v54 = vld [vmem:[%s4216_s1 + $0x8] sm:$0xff]   ;;  %v2658_v58 = vld [vmem:[%s4216_s1] sm:$0xff]   ;;  %v296_v61 = vrot.slane %v3041_v42, 1 }
  0x15   :  { %995 = vmatprep.subr.bf16.mxu0 %v2689_v3  ;;  %832 = vst.msk [vmem:[#allocation3 + $0xa8] sm:$0xff] %vm129_vm0, %v3031_v40  ;;  %v87_v49 = vld [vmem:[%s4215_s0 + $0x270] sm:$0xff]  ;;  %v3079_v0 = vld [vmem:[%s4215_s0 + $0xe0] sm:$0xff]  ;;  %v56_v1 = vld [vmem:[%s4215_s0 + $0xe8] sm:$0x1]  ;;  %vm647_vm6 = vcmask 786048  }
  0x16   :  { %601 = vrot.lane.b32.xlu1 %v556_v62, %s2694_s24  ;;  %666 = vrot.lane.b32.xlu0 %v2752_v6, %s2695_s14  ;;  %v65_v6 = vld [vmem:[%s4215_s0 + $0x140] sm:$0xff]  ;;  %v560_v55 = vrot.slane %v87_v49, 1  ;;  %v54_v62 = vld [vmem:[%s4215_s0 + $0xd8] sm:$0x1]  ;;  %v299_v9 = vrot.slane %v3079_v0, 1  ;;  %v300_v10 = vrot.slane %v56_v1, 1 }
  0x17   :  { %2476 = vmatprep.mubr.msk.bf16.mxu0 %vm129_vm0, %v871_v41  ;;  %v297_v7 = vrot.slane %v54_v62, 1  ;;  %143 = vst.msk [vmem:[#allocation3 + $0xd0] sm:$0xff] %vm129_vm0, %v3079_v0  ;;  %v2659_v18 = vld [vmem:[%s4216_s1 + $0x40] sm:$0xff]   ;;  %v92_v22 = vld [vmem:[%s4215_s0 + $0x298] sm:$0x1]  ;;  %vm714_vm7 = vcmask 917248  }
  0x18   :  { %v3094_v14 = vsel %vm259_vm1, %v299_v9, %v300_v10  ;;  %v58_v32 = vld [vmem:[%s4215_s0 + $0xf8] sm:$0x1]  ;;  %v3157_v33 = vld [vmem:[%s4215_s0 + $0x100] sm:$0xff]  ;;  %v60_v36 = vld [vmem:[%s4215_s0 + $0x108] sm:$0x1]  ;;  %vm781_vm8 = vcmask 1048448  }
  0x19   :  { %v3091_v11 = vsel %vm259_vm1, %v296_v61, %v297_v7  ;;  %834 = vst.msk [vmem:[#allocation3 + $0xc8] sm:$0xff] %vm129_vm0, %v3094_v14  ;;  %v305_v41 = vrot.slane %v3157_v33, 1  ;;  %145 = vst.msk [vmem:[#allocation3 + $0xf0] sm:$0xff] %vm129_vm0, %v3157_v33  ;;  %v96_v62 = vld [vmem:[%s4215_s0 + $0x2b8] sm:$0x1]  ;;  %vm1102_vm9 = vcmask 261120  }
  0x1a   :  { %668 = vrot.lane.b32.xlu1 %v2784_v16, %s2695_s14  ;;  %733 = vrot.lane.b32.xlu0 %v2761_v8, %s2696_s19  ;;  %v2984_v16 = vld [vmem:[%s4215_s0 + $0xb0] sm:$0xff]  ;;  %v2654_v8 = vld [vmem:[%s4216_s1 + $0x20] sm:$0xff]   ;;  %833 = vst.msk [vmem:[#allocation3 + $0xb8] sm:$0xff] %vm129_vm0, %v3091_v11  ;;  %v573_v7 = vrot.slane %v96_v62, 1  ;;  %vm1104_vm10 = vcmask 254976   ;;  %vm1362_vm11 = vcmask 1045504  }
  0x1b   :  { %140 = vst.msk [vmem:[#allocation3 + $0xa0] sm:$0xff] %vm129_vm0, %v2984_v16  ;;  %v290_v21 = vrot.slane %v2984_v16, 1  ;;  %996 = vmatpush1.bf16.msra.mxu0 %v2654_v8  ;;  %v3131_v8 = vld [vmem:[%s4215_s0 + $0xf0] sm:$0xff]  ;;  %vm1345_vm12 = vcmask 523520   ;;  %vm1459_vm13 = vcmask 785920   ;;  %vm1526_vm14 = vcmask 1048320  }
  0x1c   :  { %997 = vmatprep.subr.bf16.mxu0 %v2689_v3  ;;  %144 = vst.msk [vmem:[#allocation3 + $0xe0] sm:$0xff] %vm129_vm0, %v3131_v8 }
  0x1d   :  { %v3023_v34 = vsel %vm259_vm1, %v290_v21, %v291_v23 }
  0x1e   :  { %735 = vrot.lane.b32.xlu1 %v65_v6, %s2696_s19  ;;  %166 = vrot.lane.b32.xlu0 %v65_v6, %s2690_s30  ;;  %831 = vst.msk [vmem:[#allocation3 + $0x98] sm:$0xff] %vm129_vm0, %v3023_v34  ;;  %v67_v6 = vld [vmem:[%s4215_s0 + $0x160] sm:$0xff] }
  0x1f   :  { %998 = vmatpush1.bf16.msra.mxu0 %v2655_v31  ;;  %v302_v31 = vrot.slane %v3131_v8, 1 }
  0x20   :  { %999 = vmatprep.subr.bf16.mxu0 %v2689_v3 }
  0x22   :  { %168 = vrot.lane.b32.xlu1 %v2996_v19, %s2690_s30  ;;  %312 = vrot.lane.b32.xlu0 %v2829_v29, %s2691_s18  ;;  %v86_v29 = vld [vmem:[%s4215_s0 + $0x268] sm:$0x1] }
  0x23   :  { %v558_v52 = vrot.slane %v86_v29, 1  ;;  %1000 = vmatpush1.bf16.msra.mxu0 %v2656_v48  ;;  %v306_v29 = vrot.slane %v60_v36, 1 }
  0x24   :  { %1001 = vmatprep.subr.bf16.mxu0 %v2689_v3 }
  0x25   :  { %v559_v57 = vsel %vm259_vm1, %v557_v51, %v558_v52  ;;  %v69_v51 = vld [vmem:[%s4215_s0 + $0x180] sm:$0xff]  ;;  %v70_v52 = vld [vmem:[%s4215_s0 + $0x190] sm:$0xff] }
  0x26   :  { %314 = vrot.lane.b32.xlu1 %v2843_v35, %s2691_s18  ;;  %393 = vrot.lane.b32.xlu0 %v85_v39, %s2692_s15  ;;  %v88_v35 = vld [vmem:[%s4215_s0 + $0x278] sm:$0x1]  ;;  %v303_v39 = vrot.slane %v58_v32, 1 }
  0x27   :  { %v561_v56 = vrot.slane %v88_v35, 1  ;;  %1002 = vmatpush1.bf16.msra.mxu0 %v2657_v54  ;;  %v3203_v35 = vld [vmem:[%s4215_s0 + $0x110] sm:$0xff]  ;;  %v62_v54 = vld [vmem:[%s4215_s0 + $0x118] sm:$0x1] }
  0x28   :  { %1003 = vmatprep.subr.bf16.mxu0 %v2689_v3  ;;  %v3168_v48 = vsel %vm259_vm1, %v302_v31, %v303_v39  ;;  %v121_v31 = vld [vmem:[%s4215_s0 + $0x3f0] sm:$0xff]  ;;  %v122_v39 = vld [vmem:[%s4215_s0 + $0x400] sm:$0xff] }
  0x29   :  { %v562_v2 = vsel %vm259_vm1, %v560_v55, %v561_v56  ;;  %835 = vst.msk [vmem:[#allocation3 + $0xd8] sm:$0xff] %vm129_vm0, %v3168_v48  ;;  %v804_v55 = vrot.slane %v62_v54, 1  ;;  %v95_v56 = vld [vmem:[%s4215_s0 + $0x2b0] sm:$0xff] }
  0x2a   :  { %395 = vrot.lane.b32.xlu1 %v87_v49, %s2692_s15  ;;  %474 = vrot.lane.b32.xlu0 %v2815_v26, %s2693_s11  ;;  %v3171_v49 = vsel %vm259_vm1, %v305_v41, %v306_v29  ;;  %v572_v1 = vrot.slane %v95_v56, 1 }
  0x2b   :  { %1004 = vmatpush1.bf16.msra.mxu0 %v2658_v58  ;;  %836 = vst.msk [vmem:[#allocation3 + $0xe8] sm:$0xff] %vm129_vm0, %v3171_v49  ;;  %v119_v58 = vld [vmem:[%s4215_s0 + $0x3c0] sm:$0xff] }
  0x2c   :  { %1019 = vmatprep.subr.bf16.mxu0 %v2689_v3  ;;  %v89_v3 = vld [vmem:[%s4215_s0 + $0x280] sm:$0xff]  ;;  %v574_v10 = vsel %vm259_vm1, %v572_v1, %v573_v7  ;;  %v843_v7 = vld [vmem:[#allocation3 + $0x28] sm:$0xff] }
  0x2e   :  { %476 = vrot.lane.b32.xlu1 %v2820_v27, %s2693_s11  ;;  %603 = vrot.lane.b32.xlu0 %v559_v57, %s2694_s24 }
  0x2f   :  { %1020 = vmatpush2.bf16.msra.mxu0 %v2659_v18  ;;  %v46_v18 = vld [vmem:[%s4215_s0 + $0x98] sm:$0x1] }
  0x32   :  { %605 = vrot.lane.b32.xlu1 %v562_v2, %s2694_s24  ;;  %670 = vrot.lane.b32.xlu0 %v2801_v20, %s2695_s14  ;;  %v68_v20 = vld [vmem:[%s4215_s0 + $0x170] sm:$0xff] }
  0x33   :  { %v120_v2 = vld [vmem:[%s4215_s0 + $0x3d0] sm:$0xff] }
  0x36   :  { %672 = vrot.lane.b32.xlu1 %v2825_v28, %s2695_s14  ;;  %737 = vrot.lane.b32.xlu0 %v2996_v19, %s2696_s19  ;;  %v90_v28 = vld [vmem:[%s4215_s0 + $0x288] sm:$0x1]  ;;  %v563_v19 = vrot.slane %v89_v3, 1 }
  0x37   :  { %v564_v21 = vrot.slane %v90_v28, 1 }
  0x39   :  { %v565_v25 = vsel %vm259_vm1, %v563_v19, %v564_v21  ;;  %v97_v19 = vld [vmem:[%s4215_s0 + $0x2d0] sm:$0xff] }
  0x3a   :  { %739 = vrot.lane.b32.xlu1 %v67_v6, %s2696_s19  ;;  %170 = vrot.lane.b32.xlu0 %v67_v6, %s2690_s30  ;;  %v71_v6 = vld [vmem:[%s4215_s0 + $0x1a0] sm:$0xff] }
  0x3e   :  { %172 = vrot.lane.b32.xlu1 %v68_v20, %s2690_s30  ;;  %316 = vrot.lane.b32.xlu0 %v2876_v45, %s2691_s18  ;;  %v91_v45 = vld [vmem:[%s4215_s0 + $0x290] sm:$0xff] }
  0x3f   :  { %v566_v23 = vrot.slane %v91_v45, 1 }
  0x42   :  { %318 = vrot.lane.b32.xlu1 %v2890_v50, %s2691_s18  ;;  %397 = vrot.lane.b32.xlu0 %v89_v3, %s2692_s15  ;;  %v567_v50 = vrot.slane %v92_v22, 1  ;;  %v284_v3 = vrot.slane %v2941_v4, 1  ;;  %v98_v22 = vld [vmem:[%s4215_s0 + $0x2d8] sm:$0x1] }
  0x43   :  { %v576_v32 = vrot.slane %v98_v22, 1 }
  0x44   :  { %v568_v38 = vsel %vm259_vm1, %v566_v23, %v567_v50  ;;  %v99_v23 = vld [vmem:[%s4215_s0 + $0x2e0] sm:$0xff] }
  0x46   :  { %399 = vrot.lane.b32.xlu1 %v91_v45, %s2692_s15  ;;  %478 = vrot.lane.b32.xlu0 %v2867_v43, %s2693_s11 }
  0x4a   :  { %480 = vrot.lane.b32.xlu1 %v2872_v44, %s2693_s11  ;;  %607 = vrot.lane.b32.xlu0 %v565_v25, %s2694_s24  ;;  %v575_v25 = vrot.slane %v97_v19, 1 }
  0x4e   :  { %609 = vrot.lane.b32.xlu1 %v568_v38, %s2694_s24  ;;  %674 = vrot.lane.b32.xlu0 %v2851_v37, %s2695_s14  ;;  %v93_v37 = vld [vmem:[%s4215_s0 + $0x2a0] sm:$0xff]  ;;  %v578_v38 = vrot.slane %v99_v23, 1 }
  0x4f   :  { %v569_v57 = vrot.slane %v93_v37, 1 }
  0x52   :  { %676 = vrot.lane.b32.xlu1 %v2883_v47, %s2695_s14  ;;  %741 = vrot.lane.b32.xlu0 %v68_v20, %s2696_s19  ;;  %v94_v47 = vld [vmem:[%s4215_s0 + $0x2a8] sm:$0x1]  ;;  %v72_v20 = vld [vmem:[%s4215_s0 + $0x1b0] sm:$0xff] }
  0x53   :  { %v570_v61 = vrot.slane %v94_v47, 1 }
  0x55   :  { %v571_v9 = vsel %vm259_vm1, %v569_v57, %v570_v61 }
  0x56   :  { %743 = vrot.lane.b32.xlu1 %v69_v51, %s2696_s19  ;;  %174 = vrot.lane.b32.xlu0 %v69_v51, %s2690_s30  ;;  %v577_v51 = vsel %vm259_vm1, %v575_v25, %v576_v32 }
  0x5a   :  { %176 = vrot.lane.b32.xlu1 %v70_v52, %s2690_s30  ;;  %320 = vrot.lane.b32.xlu0 %v2915_v59, %s2691_s18  ;;  %v803_v59 = vrot.slane %v3203_v35, 1 }
  0x5e   :  { %322 = vrot.lane.b32.xlu1 %v2930_v63, %s2691_s18  ;;  %401 = vrot.lane.b32.xlu0 %v93_v37, %s2692_s15  ;;  %v805_v63 = vsel %vm259_vm1, %v803_v59, %v804_v55 }
  0x5f   :  { %837 = vst.msk [vmem:[#allocation3 + $0xf8] sm:$0xff] %vm129_vm0, %v805_v63  ;;  %v101_v63 = vld [vmem:[%s4215_s0 + $0x2f0] sm:$0xff] }
  0x62   :  { %403 = vrot.lane.b32.xlu1 %v95_v56, %s2692_s15  ;;  %482 = vrot.lane.b32.xlu0 %v119_v58, %s2693_s11  ;;  %v74_v56 = vld [vmem:[%s4215_s0 + $0x1d0] sm:$0xff] }
  0x66   :  { %484 = vrot.lane.b32.xlu1 %v120_v2, %s2693_s11  ;;  %611 = vrot.lane.b32.xlu0 %v571_v9, %s2694_s24  ;;  %v102_v2 = vld [vmem:[%s4215_s0 + $0x2f8] sm:$0x1] }
  0x67   :  { %v845_v9 = vld [vmem:[#allocation3 + $0x38] sm:$0xff] }
  0x6a   :  { %613 = vrot.lane.b32.xlu1 %v574_v10, %s2694_s24  ;;  %678 = vrot.lane.b32.xlu0 %v2901_v53, %s2695_s14  ;;  %v285_v53 = vrot.slane %v46_v18, 1  ;;  %v103_v10 = vld [vmem:[%s4215_s0 + $0x300] sm:$0xff] }
  0x6c   :  { %v286_v28 = vsel %vm259_vm1, %v284_v3, %v285_v53  ;;  %v123_v3 = vld [vmem:[%s4215_s0 + $0x410] sm:$0xff]  ;;  %v582_v53 = vrot.slane %v102_v2, 1  ;;  %v126_v2 = vld [vmem:[%s4215_s0 + $0x440] sm:$0xff] }
  0x6e   :  { %680 = vrot.lane.b32.xlu1 %v2920_v60, %s2695_s14  ;;  %745 = vrot.lane.b32.xlu0 %v70_v52, %s2696_s19  ;;  %v73_v60 = vld [vmem:[%s4215_s0 + $0x1c0] sm:$0xff] }
  0x72   :  { %747 = vrot.lane.b32.xlu1 %v71_v6, %s2696_s19  ;;  %178 = vrot.lane.b32.xlu0 %v72_v20, %s2690_s30  ;;  %v581_v6 = vrot.slane %v101_v63, 1 }
  0x74   :  { %v163_v45 = vpop.permute.xlu0 %162 }
  0x75   :  { %211 = vst.msk [vmem:[#allocation3] sm:$0xff] %vm210_vm2, %v163_v45 }
  0x76   :  { %180 = vrot.lane.b32.xlu1 %v73_v60, %s2690_s30  ;;  %324 = vrot.lane.b32.xlu0 %v286_v28, %s2691_s18 }
  0x78   :  { %v309_v4 = vpop.permute.xlu1 %308  ;;  %v165_v21 = vpop.permute.xlu0 %164 }
  0x79   :  { %357 = vst.msk [vmem:[#allocation3] sm:$0xff] %vm356_vm3, %v309_v4  ;;  %v584_v4 = vrot.slane %v103_v10, 1 }
  0x7a   :  { %326 = vrot.lane.b32.xlu1 %v2966_v17, %s2691_s18  ;;  %212 = vst.msk [vmem:[#allocation3 + $0x10] sm:$0xff] %vm210_vm2, %v165_v21  ;;  %405 = vrot.lane.b32.xlu0 %v97_v19, %s2692_s15  ;;  %v100_v17 = vld [vmem:[%s4215_s0 + $0x2e8] sm:$0x1]  ;;  %v124_v19 = vld [vmem:[%s4215_s0 + $0x420] sm:$0xff] }
  0x7b   :  { %v579_v41 = vrot.slane %v100_v17, 1 }
  0x7c   :  { %v311_v50 = vpop.permute.xlu1 %310  ;;  %v390_v36 = vpop.permute.xlu0 %389 }
  0x7d   :  { %358 = vst.msk [vmem:[#allocation3 + $0x10] sm:$0xff] %vm356_vm3, %v311_v50  ;;  %v580_v37 = vsel %vm259_vm1, %v578_v38, %v579_v41  ;;  %v76_v38 = vld [vmem:[%s4215_s0 + $0x1f0] sm:$0xff] }
  0x7e   :  { %407 = vrot.lane.b32.xlu1 %v99_v23, %s2692_s15  ;;  %438 = vst.msk [vmem:[#allocation3] sm:$0xff] %vm437_vm4, %v390_v36  ;;  %486 = vrot.lane.b32.xlu0 %v121_v31, %s2693_s11  ;;  %v583_v23 = vsel %vm259_vm1, %v581_v6, %v582_v53 }
  0x80   :  { %v392_v29 = vpop.permute.xlu1 %391  ;;  %v471_v52 = vpop.permute.xlu0 %470 }
  0x81   :  { %439 = vst.msk [vmem:[#allocation3 + $0x10] sm:$0xff] %vm437_vm4, %v392_v29 }
  0x82   :  { %488 = vrot.lane.b32.xlu1 %v122_v39, %s2693_s11  ;;  %519 = vst.msk [vmem:[#allocation3] sm:$0xff] %vm518_vm5, %v471_v52  ;;  %615 = vrot.lane.b32.xlu0 %v577_v51, %s2694_s24  ;;  %v105_v52 = vld [vmem:[%s4215_s0 + $0x310] sm:$0xff] }
  0x84   :  { %v473_v47 = vpop.permute.xlu1 %472  ;;  %v600_v54 = vpop.permute.xlu0 %599 }
  0x85   :  { %520 = vst.msk [vmem:[#allocation3 + $0x10] sm:$0xff] %vm518_vm5, %v473_v47  ;;  %v106_v47 = vld [vmem:[%s4215_s0 + $0x318] sm:$0x1] }
  0x86   :  { %617 = vrot.lane.b32.xlu1 %v580_v37, %s2694_s24  ;;  %648 = vst.msk [vmem:[#allocation3] sm:$0xff] %vm647_vm6, %v600_v54  ;;  %682 = vrot.lane.b32.xlu0 %v2946_v5, %s2695_s14  ;;  %v847_v54 = vld [vmem:[#allocation3 + $0x48] sm:$0xff] }
  0x88   :  { %v602_v59 = vpop.permute.xlu1 %601  ;;  %v667_v55 = vpop.permute.xlu0 %666 }
  0x89   :  { %649 = vst.msk [vmem:[#allocation3 + $0x10] sm:$0xff] %vm647_vm6, %v602_v59  ;;  %v849_v59 = vld [vmem:[#allocation3 + $0x58] sm:$0xff] }
  0x8a   :  { %684 = vrot.lane.b32.xlu1 %v2984_v16, %s2695_s14  ;;  %715 = vst.msk [vmem:[#allocation3] sm:$0xff] %vm714_vm7, %v667_v55  ;;  %749 = vrot.lane.b32.xlu0 %v73_v60, %s2696_s19  ;;  %v75_v16 = vld [vmem:[%s4215_s0 + $0x1e0] sm:$0xff]  ;;  %v873_v60 = vpack.c.bf16 %v845_v9, %v843_v7 }
  0x8b   :  { %v107_v55 = vld [vmem:[%s4215_s0 + $0x320] sm:$0xff] }
  0x8c   :  { %v669_v57 = vpop.permute.xlu1 %668  ;;  %v734_v5 = vpop.permute.xlu0 %733 }
  0x8d   :  { %716 = vst.msk [vmem:[#allocation3 + $0x10] sm:$0xff] %vm714_vm7, %v669_v57  ;;  %v587_v57 = vrot.slane %v105_v52, 1 }
  0x8e   :  { %751 = vrot.lane.b32.xlu1 %v74_v56, %s2696_s19  ;;  %782 = vst.msk [vmem:[#allocation3] sm:$0xff] %vm781_vm8, %v734_v5  ;;  %182 = vrot.lane.b32.xlu0 %v74_v56, %s2690_s30 }
  0x90   :  { %v736_v58 = vpop.permute.xlu1 %735  ;;  %v167_v61 = vpop.permute.xlu0 %166 }
  0x91   :  { %783 = vst.msk [vmem:[#allocation3 + $0x10] sm:$0xff] %vm781_vm8, %v736_v58  ;;  %v588_v58 = vrot.slane %v106_v47, 1 }
  0x92   :  { %184 = vrot.lane.b32.xlu1 %v75_v16, %s2690_s30  ;;  %213 = vst.msk [vmem:[#allocation3 + $0x20] sm:$0xff] %vm210_vm2, %v167_v61  ;;  %328 = vrot.lane.b32.xlu0 %v3023_v34, %s2691_s18  ;;  %v875_v61 = vpack.c.bf16 %v849_v59, %v847_v54 }
  0x94   :  { %v169_v62 = vpop.permute.xlu1 %168  ;;  %v313_v1 = vpop.permute.xlu0 %312 }
  0x95   :  { %214 = vst.msk [vmem:[#allocation3 + $0x30] sm:$0xff] %vm210_vm2, %v169_v62  ;;  %v838_v34 = vld [vmem:[#allocation3] sm:$0xff] }
  0x96   :  { %330 = vrot.lane.b32.xlu1 %v3031_v40, %s2691_s18  ;;  %359 = vst.msk [vmem:[#allocation3 + $0x20] sm:$0xff] %vm356_vm3, %v313_v1  ;;  %409 = vrot.lane.b32.xlu0 %v101_v63, %s2692_s15  ;;  %v104_v40 = vld [vmem:[%s4215_s0 + $0x308] sm:$0x1]  ;;  %v590_v1 = vrot.slane %v107_v55, 1 }
  0x97   :  { %v585_v21 = vrot.slane %v104_v40, 1  ;;  %v78_v40 = vld [vmem:[%s4215_s0 + $0x210] sm:$0xff] }
  0x98   :  { %v315_v18 = vpop.permute.xlu1 %314  ;;  %v840_v20 = vld [vmem:[#allocation3 + $0x10] sm:$0xff]  ;;  %v394_v45 = vpop.permute.xlu0 %393 }
  0x99   :  { %360 = vst.msk [vmem:[#allocation3 + $0x30] sm:$0xff] %vm356_vm3, %v315_v18  ;;  %v870_v28 = vpack.c.bf16 %v840_v20, %v838_v34  ;;  %v586_v25 = vsel %vm259_vm1, %v584_v4, %v585_v21  ;;  %v589_v34 = vsel %vm259_vm1, %v587_v57, %v588_v58 }
  0x9a   :  { %411 = vrot.lane.b32.xlu1 %v103_v10, %s2692_s15  ;;  %440 = vst.msk [vmem:[#allocation3 + $0x20] sm:$0xff] %vm437_vm4, %v394_v45  ;;  %490 = vrot.lane.b32.xlu0 %v123_v3, %s2693_s11 }
  0x9b   :  { %1022 = vmatmul.mubr.bf16.vlgmr.msra.gmra.mxu0 %v870_v28 }
  0x9c   :  { %v396_v22 = vpop.permute.xlu1 %395  ;;  %2477 = vmatprep.mubr.msk.bf16.mxu0 %vm129_vm0, %v873_v60  ;;  %v475_v50 = vpop.permute.xlu0 %474 }
  0x9d   :  { %441 = vst.msk [vmem:[#allocation3 + $0x30] sm:$0xff] %vm437_vm4, %v396_v22  ;;  %v3445_v22 = vld [vmem:[%s4215_s0 + $0x338] sm:$0x1] }
  0x9e   :  { %492 = vrot.lane.b32.xlu1 %v124_v19, %s2693_s11  ;;  %521 = vst.msk [vmem:[#allocation3 + $0x20] sm:$0xff] %vm518_vm5, %v475_v50  ;;  %619 = vrot.lane.b32.xlu0 %v583_v23, %s2694_s24  ;;  %v3439_v19 = vld [vmem:[%s4215_s0 + $0x330] sm:$0xff]  ;;  %v3447_v23 = vld [vmem:[#allocation3 + $0x68] sm:$0xff]  ;;  %v3449_v50 = vld [vmem:[#allocation3 + $0x78] sm:$0xff] }
  0xa0   :  { %v477_v31 = vpop.permute.xlu1 %476  ;;  %v604_v32 = vpop.permute.xlu0 %603 }
  0xa1   :  { %522 = vst.msk [vmem:[#allocation3 + $0x30] sm:$0xff] %vm518_vm5, %v477_v31  ;;  %v111_v31 = vld [vmem:[%s4215_s0 + $0x340] sm:$0xff] }
  0xa2   :  { %621 = vrot.lane.b32.xlu1 %v586_v25, %s2694_s24  ;;  %650 = vst.msk [vmem:[#allocation3 + $0x20] sm:$0xff] %vm647_vm6, %v604_v32  ;;  %686 = vrot.lane.b32.xlu0 %v3006_v24, %s2695_s14  ;;  %v77_v24 = vld [vmem:[%s4215_s0 + $0x200] sm:$0xff] }
  0xa4   :  { %v606_v17 = vpop.permute.xlu1 %605  ;;  %v671_v36 = vpop.permute.xlu0 %670 }
  0xa5   :  { %651 = vst.msk [vmem:[#allocation3 + $0x30] sm:$0xff] %vm647_vm6, %v606_v17  ;;  %v593_v17 = vrot.slane %v3439_v19, 1 }
  0xa6   :  { %688 = vrot.lane.b32.xlu1 %v3041_v42, %s2695_s14  ;;  %717 = vst.msk [vmem:[#allocation3 + $0x20] sm:$0xff] %vm714_vm7, %v671_v36  ;;  %753 = vrot.lane.b32.xlu0 %v75_v16, %s2696_s19  ;;  %v125_v16 = vld [vmem:[%s4215_s0 + $0x430] sm:$0xff] }
  0xa8   :  { %v673_v39 = vpop.permute.xlu1 %672  ;;  %v738_v41 = vpop.permute.xlu0 %737 }
  0xa9   :  { %718 = vst.msk [vmem:[#allocation3 + $0x30] sm:$0xff] %vm714_vm7, %v673_v39  ;;  %v112_v39 = vld [vmem:[%s4215_s0 + $0x348] sm:$0x1] }
  0xaa   :  { %755 = vrot.lane.b32.xlu1 %v76_v38, %s2696_s19  ;;  %784 = vst.msk [vmem:[#allocation3 + $0x20] sm:$0xff] %vm781_vm8, %v738_v41  ;;  %186 = vrot.lane.b32.xlu0 %v76_v38, %s2690_s30  ;;  %v127_v38 = vld [vmem:[%s4215_s0 + $0x450] sm:$0xff]  ;;  %v877_v41 = vpack.c.bf16 %v3449_v50, %v3447_v23  ;;  %v855_v23 = vld [vmem:[#allocation3 + $0x88] sm:$0xff]  ;;  %v857_v50 = vld [vmem:[#allocation3 + $0x98] sm:$0xff] }
  0xac   :  { %v740_v42 = vpop.permute.xlu1 %739  ;;  %v171_v29 = vpop.permute.xlu0 %170 }
  0xad   :  { %785 = vst.msk [vmem:[#allocation3 + $0x30] sm:$0xff] %vm781_vm8, %v740_v42 }
  0xae   :  { %188 = vrot.lane.b32.xlu1 %v77_v24, %s2690_s30  ;;  %215 = vst.msk [vmem:[#allocation3 + $0x40] sm:$0xff] %vm210_vm2, %v171_v29  ;;  %332 = vrot.lane.b32.xlu0 %v3091_v11, %s2691_s18  ;;  %v596_v29 = vrot.slane %v111_v31, 1 }
  0xb0   :  { %v173_v51 = vpop.permute.xlu1 %172  ;;  %v317_v37 = vpop.permute.xlu0 %316 }
  0xb1   :  { %216 = vst.msk [vmem:[#allocation3 + $0x50] sm:$0xff] %vm210_vm2, %v173_v51  ;;  %v842_v11 = vld [vmem:[#allocation3 + $0x20] sm:$0xff] }
  0xb2   :  { %334 = vrot.lane.b32.xlu1 %v3094_v14, %s2691_s18  ;;  %361 = vst.msk [vmem:[#allocation3 + $0x40] sm:$0xff] %vm356_vm3, %v317_v37  ;;  %413 = vrot.lane.b32.xlu0 %v105_v52, %s2692_s15  ;;  %v108_v14 = vld [vmem:[%s4215_s0 + $0x328] sm:$0x1]  ;;  %v128_v51 = vld [vmem:[%s4215_s0 + $0x460] sm:$0xff]  ;;  %v597_v52 = vrot.slane %v112_v39, 1 }
  0xb3   :  { %v591_v7 = vrot.slane %v108_v14, 1 }
  0xb4   :  { %v319_v56 = vpop.permute.xlu1 %318  ;;  %v844_v5 = vld [vmem:[#allocation3 + $0x30] sm:$0xff]  ;;  %v398_v63 = vpop.permute.xlu0 %397 }
  0xb5   :  { %362 = vst.msk [vmem:[#allocation3 + $0x50] sm:$0xff] %vm356_vm3, %v319_v56  ;;  %v872_v62 = vpack.c.bf16 %v844_v5, %v842_v11  ;;  %v592_v18 = vsel %vm259_vm1, %v590_v1, %v591_v7  ;;  %v598_v11 = vsel %vm259_vm1, %v596_v29, %v597_v52 }
  0xb6   :  { %415 = vrot.lane.b32.xlu1 %v107_v55, %s2692_s15  ;;  %442 = vst.msk [vmem:[#allocation3 + $0x40] sm:$0xff] %vm437_vm4, %v398_v63  ;;  %494 = vrot.lane.b32.xlu0 %v125_v16, %s2693_s11 }
  0xb7   :  { %1030 = vmatmul.mubr.bf16.gmra.mxu0 %v872_v62 }
  0xb8   :  { %v400_v9 = vpop.permute.xlu1 %399  ;;  %2478 = vmatprep.mubr.msk.bf16.mxu0 %vm129_vm0, %v875_v61  ;;  %v479_v10 = vpop.permute.xlu0 %478 }
  0xb9   :  { %443 = vst.msk [vmem:[#allocation3 + $0x50] sm:$0xff] %vm437_vm4, %v400_v9 }
  0xba   :  { %496 = vrot.lane.b32.xlu1 %v126_v2, %s2693_s11  ;;  %523 = vst.msk [vmem:[#allocation3 + $0x40] sm:$0xff] %vm518_vm5, %v479_v10  ;;  %623 = vrot.lane.b32.xlu0 %v589_v34, %s2694_s24 }
  0xbc   :  { %v481_v6 = vpop.permute.xlu1 %480  ;;  %v608_v20 = vpop.permute.xlu0 %607 }
  0xbd   :  { %524 = vst.msk [vmem:[#allocation3 + $0x50] sm:$0xff] %vm518_vm5, %v481_v6 }
  0xbe   :  { %625 = vrot.lane.b32.xlu1 %v592_v18, %s2694_s24  ;;  %652 = vst.msk [vmem:[#allocation3 + $0x40] sm:$0xff] %vm647_vm6, %v608_v20  ;;  %690 = vrot.lane.b32.xlu0 %v3079_v0, %s2695_s14  ;;  %v3428_v0 = vld [vmem:[%s4215_s0 + $0x220] sm:$0xff] }
  0xc0   :  { %v610_v3 = vpop.permute.xlu1 %609  ;;  %v675_v53 = vpop.permute.xlu0 %674 }
  0xc1   :  { %653 = vst.msk [vmem:[#allocation3 + $0x50] sm:$0xff] %vm647_vm6, %v610_v3 }
  0xc2   :  { %692 = vrot.lane.b32.xlu1 %v3131_v8, %s2695_s14  ;;  %719 = vst.msk [vmem:[#allocation3 + $0x40] sm:$0xff] %vm714_vm7, %v675_v53  ;;  %757 = vrot.lane.b32.xlu0 %v77_v24, %s2696_s19 }
  0xc4   :  { %v677_v60 = vpop.permute.xlu1 %676  ;;  %v742_v28 = vpop.permute.xlu0 %741 }
  0xc5   :  { %720 = vst.msk [vmem:[#allocation3 + $0x50] sm:$0xff] %vm714_vm7, %v677_v60 }
  0xc6   :  { %759 = vrot.lane.b32.xlu1 %v78_v40, %s2696_s19  ;;  %786 = vst.msk [vmem:[#allocation3 + $0x40] sm:$0xff] %vm781_vm8, %v742_v28  ;;  %190 = vrot.lane.b32.xlu0 %v78_v40, %s2690_s30 }
  0xc8   :  { %v744_v8 = vpop.permute.xlu1 %743  ;;  %v175_v45 = vpop.permute.xlu0 %174 }
  0xc9   :  { %787 = vst.msk [vmem:[#allocation3 + $0x50] sm:$0xff] %vm781_vm8, %v744_v8 }
  0xca   :  { %192 = vrot.lane.b32.xlu1 %v3428_v0, %s2690_s30  ;;  %217 = vst.msk [vmem:[#allocation3 + $0x60] sm:$0xff] %vm210_vm2, %v175_v45  ;;  %336 = vrot.lane.b32.xlu0 %v3168_v48, %s2691_s18  ;;  %v2697_v48 = vmov 0.0  }
  0xcb   :  { %1103 = vst.msk [vmem:[#allocation2] sm:$0xff] %vm1102_vm9, %v2697_v48  ;;  %1106 = vst.msk [vmem:[#allocation2 + $0x10] sm:$0xff] %vm1102_vm9, %v2697_v48 }
  0xcc   :  { %v177_v4 = vpop.permute.xlu1 %176  ;;  %v321_v21 = vpop.permute.xlu0 %320  ;;  %1105 = vst.msk [vmem:[#allocation2 + $0x8] sm:$0x3] %vm1104_vm10, %v2697_v48  ;;  %1107 = vst.msk [vmem:[#allocation2 + $0x18] sm:$0x3] %vm1104_vm10, %v2697_v48 }
  0xcd   :  { %218 = vst.msk [vmem:[#allocation3 + $0x70] sm:$0xff] %vm210_vm2, %v177_v4  ;;  %v846_v25 = vld [vmem:[#allocation3 + $0x40] sm:$0xff] }
  0xce   :  { %1108 = vst.msk [vmem:[#allocation2 + $0x20] sm:$0xff] %vm1102_vm9, %v2697_v48  ;;  %1110 = vst.msk [vmem:[#allocation2 + $0x30] sm:$0xff] %vm1102_vm9, %v2697_v48  ;;  %338 = vrot.lane.b32.xlu1 %v3171_v49, %s2691_s18  ;;  %417 = vrot.lane.b32.xlu0 %v3439_v19, %s2692_s15  ;;  %v594_v49 = vrot.slane %v3445_v22, 1 }
  0xcf   :  { %1109 = vst.msk [vmem:[#allocation2 + $0x28] sm:$0x3] %vm1104_vm10, %v2697_v48  ;;  %1111 = vst.msk [vmem:[#allocation2 + $0x38] sm:$0x3] %vm1104_vm10, %v2697_v48 }
  0xd0   :  { %1112 = vst.msk [vmem:[#allocation2 + $0x40] sm:$0xff] %vm1102_vm9, %v2697_v48  ;;  %1114 = vst.msk [vmem:[#allocation2 + $0x50] sm:$0xff] %vm1102_vm9, %v2697_v48  ;;  %v323_v32 = vpop.permute.xlu1 %322  ;;  %v848_v36 = vld [vmem:[#allocation3 + $0x50] sm:$0xff]  ;;  %v402_v42 = vpop.permute.xlu0 %401  ;;  %v595_v47 = vsel %vm259_vm1, %v593_v17, %v594_v49  ;;  %v879_v17 = vpack.c.bf16 %v857_v50, %v855_v23 }
  0xd1   :  { %1113 = vst.msk [vmem:[#allocation2 + $0x48] sm:$0x3] %vm1104_vm10, %v2697_v48  ;;  %1115 = vst.msk [vmem:[#allocation2 + $0x58] sm:$0x3] %vm1104_vm10, %v2697_v48  ;;  %v874_v24 = vpack.c.bf16 %v848_v36, %v846_v25 }
  0xd2   :  { %1116 = vst.msk [vmem:[#allocation2 + $0x60] sm:$0xff] %vm1102_vm9, %v2697_v48  ;;  %1118 = vst.msk [vmem:[#allocation2 + $0x70] sm:$0xff] %vm1102_vm9, %v2697_v48  ;;  %419 = vrot.lane.b32.xlu1 %v111_v31, %s2692_s15  ;;  %498 = vrot.lane.b32.xlu0 %v127_v38, %s2693_s11  ;;  %v1161_v54 = vld [vmem:[#allocation2] sm:$0xff] }
  0xd3   :  { %1117 = vst.msk [vmem:[#allocation2 + $0x68] sm:$0x3] %vm1104_vm10, %v2697_v48  ;;  %1119 = vst.msk [vmem:[#allocation2 + $0x78] sm:$0x3] %vm1104_vm10, %v2697_v48  ;;  %1038 = vmatmul.mubr.bf16.gmra.mxu0 %v874_v24  ;;  %v1162_v57 = vld [vmem:[#allocation2 + $0x8] sm:$0x3] }
  0xd4   :  { %1120 = vst.msk [vmem:[#allocation2 + $0x80] sm:$0xff] %vm1102_vm9, %v2697_v48  ;;  %1122 = vst.msk [vmem:[#allocation2 + $0x90] sm:$0xff] %vm1102_vm9, %v2697_v48  ;;  %v404_v37 = vpop.permute.xlu1 %403  ;;  %2479 = vmatprep.mubr.msk.bf16.mxu0 %vm129_vm0, %v877_v41  ;;  %v483_v59 = vpop.permute.xlu0 %482  ;;  %v1249_v16 = vrot.slane %v1161_v54, 1  ;;  %v1250_v58 = vrot.slane %v1162_v57, 1  ;;  %v1363_v1 = vrot.slane %v1161_v54, 2  ;;  %v1364_v2 = vrot.slane %v1162_v57, 2 }
  0xd5   :  { %1121 = vst.msk [vmem:[#allocation2 + $0x88] sm:$0x3] %vm1104_vm10, %v2697_v48  ;;  %1123 = vst.msk [vmem:[#allocation2 + $0x98] sm:$0x3] %vm1104_vm10, %v2697_v48 }
  0xd6   :  { %1124 = vst.msk [vmem:[#allocation2 + $0xa0] sm:$0xff] %vm1102_vm9, %v2697_v48  ;;  %1126 = vst.msk [vmem:[#allocation2 + $0xb0] sm:$0xff] %vm1102_vm9, %v2697_v48  ;;  %500 = vrot.lane.b32.xlu1 %v128_v51, %s2693_s11  ;;  %627 = vrot.lane.b32.xlu0 %v595_v47, %s2694_s24  ;;  %v1251_v63 = vsel %vm259_vm1, %v1249_v16, %v1250_v58  ;;  %v1365_v3 = vsel %vm1362_vm11, %v1363_v1, %v1364_v2 }
  0xd7   :  { %1125 = vst.msk [vmem:[#allocation2 + $0xa8] sm:$0x3] %vm1104_vm10, %v2697_v48  ;;  %1127 = vst.msk [vmem:[#allocation2 + $0xb8] sm:$0x3] %vm1104_vm10, %v2697_v48 }
  0xd8   :  { %1128 = vst.msk [vmem:[#allocation2 + $0xc0] sm:$0xff] %vm1102_vm9, %v2697_v48  ;;  %1130 = vst.msk [vmem:[#allocation2 + $0xd0] sm:$0xff] %vm1102_vm9, %v2697_v48  ;;  %v485_v55 = vpop.permute.xlu1 %484  ;;  %v612_v56 = vpop.permute.xlu0 %611 }
  0xd9   :  { %1129 = vst.msk [vmem:[#allocation2 + $0xc8] sm:$0x3] %vm1104_vm10, %v2697_v48  ;;  %1131 = vst.msk [vmem:[#allocation2 + $0xd8] sm:$0x3] %vm1104_vm10, %v2697_v48 }
  0xda   :  { %1132 = vst.msk [vmem:[#allocation2 + $0xe0] sm:$0xff] %vm1102_vm9, %v2697_v48  ;;  %1134 = vst.msk [vmem:[#allocation2 + $0xf0] sm:$0xff] %vm1102_vm9, %v2697_v48  ;;  %629 = vrot.lane.b32.xlu1 %v598_v11, %s2694_s24  ;;  %694 = vrot.lane.b32.xlu0 %v3157_v33, %s2695_s14  ;;  %v80_v33 = vld [vmem:[%s4215_s0 + $0x230] sm:$0xff] }
  0xdb   :  { %1133 = vst.msk [vmem:[#allocation2 + $0xe8] sm:$0x3] %vm1104_vm10, %v2697_v48  ;;  %1135 = vst.msk [vmem:[#allocation2 + $0xf8] sm:$0x3] %vm1104_vm10, %v2697_v48  ;;  %v1179_v7 = vld [vmem:[#allocation2 + $0x90] sm:$0xff] }
  0xdc   :  { %1136 = vst.msk [vmem:[#allocation2 + $0x100] sm:$0xff] %vm1102_vm9, %v2697_v48  ;;  %1138 = vst.msk [vmem:[#allocation2 + $0x110] sm:$0xff] %vm1102_vm9, %v2697_v48  ;;  %v614_v5 = vpop.permute.xlu1 %613  ;;  %v679_v61 = vpop.permute.xlu0 %678  ;;  %v1180_v9 = vld [vmem:[#allocation2 + $0x98] sm:$0x3]  ;;  %v1791_v10 = vrot.slane %v1179_v7, 2  ;;  %v1721_v18 = vrot.slane %v1179_v7, 1 }
  0xdd   :  { %1137 = vst.msk [vmem:[#allocation2 + $0x108] sm:$0x3] %vm1104_vm10, %v2697_v48  ;;  %1139 = vst.msk [vmem:[#allocation2 + $0x118] sm:$0x3] %vm1104_vm10, %v2697_v48  ;;  %v1181_v14 = vld [vmem:[#allocation2 + $0xa0] sm:$0xff]  ;;  %v1722_v6 = vrot.slane %v1180_v9, 1 }
  0xde   :  { %1140 = vst.msk [vmem:[#allocation2 + $0x120] sm:$0xff] %vm1102_vm9, %v2697_v48  ;;  %1142 = vst.msk [vmem:[#allocation2 + $0x130] sm:$0xff] %vm1102_vm9, %v2697_v48  ;;  %696 = vrot.lane.b32.xlu1 %v3203_v35, %s2695_s14  ;;  %761 = vrot.lane.b32.xlu0 %v3428_v0, %s2696_s19  ;;  %v1182_v35 = vld [vmem:[#allocation2 + $0xa8] sm:$0x3]  ;;  %v1273_v53 = vrot.slane %v1181_v14, 1  ;;  %v1792_v60 = vrot.slane %v1180_v9, 2 }
  0xdf   :  { %1141 = vst.msk [vmem:[#allocation2 + $0x128] sm:$0x3] %vm1104_vm10, %v2697_v48  ;;  %1143 = vst.msk [vmem:[#allocation2 + $0x138] sm:$0x3] %vm1104_vm10, %v2697_v48  ;;  %v1274_v40 = vrot.slane %v1182_v35, 1  ;;  %v1723_v8 = vsel %vm259_vm1, %v1721_v18, %v1722_v6  ;;  %v1387_v19 = vrot.slane %v1181_v14, 2 }
  0xe0   :  { %363 = vst.msk [vmem:[#allocation3 + $0x60] sm:$0xff] %vm356_vm3, %v321_v21  ;;  %364 = vst.msk [vmem:[#allocation3 + $0x70] sm:$0xff] %vm356_vm3, %v323_v32  ;;  %v681_v62 = vpop.permute.xlu1 %680  ;;  %v746_v34 = vpop.permute.xlu0 %745  ;;  %v1793_v0 = vsel %vm1362_vm11, %v1791_v10, %v1792_v60  ;;  %v1388_v21 = vrot.slane %v1182_v35, 2 }
  0xe1   :  { %444 = vst.msk [vmem:[#allocation3 + $0x60] sm:$0xff] %vm437_vm4, %v402_v42  ;;  %445 = vst.msk [vmem:[#allocation3 + $0x70] sm:$0xff] %vm437_vm4, %v404_v37  ;;  %v1275_v4 = vsel %vm259_vm1, %v1273_v53, %v1274_v40 }
  0xe2   :  { %1201 = vst.msk [vmem:[#allocation4] sm:$0xff] %vm1102_vm9, %v1161_v54  ;;  %1209 = vst.msk [vmem:[#allocation4 + $0xc0] sm:$0xff] %vm1102_vm9, %v1181_v14  ;;  %763 = vrot.lane.b32.xlu1 %v80_v33, %s2696_s19  ;;  %1297 = vrot.lane.b32.xlu0 %v1251_v63, %s2691_s18  ;;  %v1389_v36 = vsel %vm1362_vm11, %v1387_v19, %v1388_v21 }
  0xe3   :  { %525 = vst.msk [vmem:[#allocation3 + $0x60] sm:$0xff] %vm518_vm5, %v483_v59  ;;  %526 = vst.msk [vmem:[#allocation3 + $0x70] sm:$0xff] %vm518_vm5, %v485_v55  ;;  %v859_v55 = vld [vmem:[#allocation3 + $0xa8] sm:$0xff] }
  0xe4   :  { %654 = vst.msk [vmem:[#allocation3 + $0x60] sm:$0xff] %vm647_vm6, %v612_v56  ;;  %655 = vst.msk [vmem:[#allocation3 + $0x70] sm:$0xff] %vm647_vm6, %v614_v5  ;;  %v748_v20 = vpop.permute.xlu1 %747  ;;  %v179_v28 = vpop.permute.xlu0 %178  ;;  %v861_v56 = vld [vmem:[#allocation3 + $0xb8] sm:$0xff] }
  0xe5   :  { %721 = vst.msk [vmem:[#allocation3 + $0x60] sm:$0xff] %vm714_vm7, %v679_v61  ;;  %722 = vst.msk [vmem:[#allocation3 + $0x70] sm:$0xff] %vm714_vm7, %v681_v62  ;;  %v3557_v25 = vld [vmem:[#allocation2 + $0x130] sm:$0xff]  ;;  %v881_v58 = vpack.c.bf16 %v861_v56, %v859_v55 }
  0xe6   :  { %788 = vst.msk [vmem:[#allocation3 + $0x60] sm:$0xff] %vm781_vm8, %v746_v34  ;;  %789 = vst.msk [vmem:[#allocation3 + $0x70] sm:$0xff] %vm781_vm8, %v748_v20  ;;  %1669 = vrot.lane.b32.xlu1 %v1179_v7, %s2693_s11  ;;  %1411 = vrot.lane.b32.xlu0 %v1365_v3, %s2693_s11  ;;  %v863_v20 = vld [vmem:[#allocation3 + $0xc8] sm:$0xff]  ;;  %v865_v3 = vld [vmem:[#allocation3 + $0xd8] sm:$0xff] }
  0xe7   :  { %219 = vst.msk [vmem:[#allocation3 + $0x80] sm:$0xff] %vm210_vm2, %v179_v28  ;;  %v883_v28 = vpack.c.bf16 %v865_v3, %v863_v20  ;;  %v2661_v20 = vld [vmem:[%s4218_s3 + $0x38] sm:$0xff]  }
  0xe8   :  { %1820 = vst.msk [vmem:[#allocation4 + $0xb8] sm:$0xff] %vm1102_vm9, %v1793_v0  ;;  %v181_v45 = vpop.permute.xlu1 %180  ;;  %v325_v22 = vpop.permute.xlu0 %324 }
  0xe9   :  { %220 = vst.msk [vmem:[#allocation3 + $0x90] sm:$0xff] %vm210_vm2, %v181_v45 }
  0xea   :  { %365 = vst.msk [vmem:[#allocation3 + $0x80] sm:$0xff] %vm356_vm3, %v325_v22  ;;  %1741 = vrot.lane.b32.xlu1 %v1723_v8, %s2695_s14  ;;  %1313 = vrot.lane.b32.xlu0 %v1275_v4, %s2691_s18 }
  0xec   :  { %v327_v31 = vpop.permute.xlu1 %326  ;;  %v406_v49 = vpop.permute.xlu0 %405 }
  0xed   :  { %v850_v48 = vld [vmem:[#allocation3 + $0x60] sm:$0xff]  ;;  %v852_v32 = vld [vmem:[#allocation3 + $0x70] sm:$0xff]  ;;  %366 = vst.msk [vmem:[#allocation3 + $0x90] sm:$0xff] %vm356_vm3, %v327_v31 }
  0xee   :  { %v876_v38 = vpack.c.bf16 %v852_v32, %v850_v48  ;;  %446 = vst.msk [vmem:[#allocation3 + $0x80] sm:$0xff] %vm437_vm4, %v406_v49  ;;  %1685 = vrot.lane.b32.xlu1 %v3557_v25, %s2693_s11  ;;  %1427 = vrot.lane.b32.xlu0 %v1389_v36, %s2693_s11  ;;  %v869_v49 = vld [vmem:[#allocation3 + $0xf8] sm:$0xff] }
  0xf0   :  { %1046 = vmatmul.mubr.bf16.gmra.mxu0 %v876_v38  ;;  %v408_v39 = vpop.permute.xlu1 %407  ;;  %v487_v41 = vpop.permute.xlu0 %486  ;;  %v867_v38 = vld [vmem:[#allocation3 + $0xe8] sm:$0xff] }
  0xf1   :  { %2480 = vmatprep.mubr.msk.bf16.mxu0 %vm129_vm0, %v879_v17  ;;  %447 = vst.msk [vmem:[#allocation3 + $0x90] sm:$0xff] %vm437_vm4, %v408_v39 }
  0xf2   :  { %527 = vst.msk [vmem:[#allocation3 + $0x80] sm:$0xff] %vm518_vm5, %v487_v41 }
  0xf4   :  { %v489_v24 = vpop.permute.xlu1 %488  ;;  %v616_v42 = vpop.permute.xlu0 %615 }
  0xf5   :  { %528 = vst.msk [vmem:[#allocation3 + $0x90] sm:$0xff] %vm518_vm5, %v489_v24 }
  0xf6   :  { %656 = vst.msk [vmem:[#allocation3 + $0x80] sm:$0xff] %vm647_vm6, %v616_v42  ;;  %v885_v42 = vpack.c.bf16 %v869_v49, %v867_v38  ;;  %v2668_v38 = vld [vmem:[%s4218_s3 + $0x58] sm:$0xff]  }
  0xf7   :  { %v2669_v49 = vld [vmem:[%s4218_s3 + $0x18] sm:$0xff]  }
  0xf8   :  { %v618_v29 = vpop.permute.xlu1 %617  ;;  %v683_v51 = vpop.permute.xlu0 %682 }
  0xf9   :  { %657 = vst.msk [vmem:[#allocation3 + $0x90] sm:$0xff] %vm647_vm6, %v618_v29 }
  0xfa   :  { %723 = vst.msk [vmem:[#allocation3 + $0x80] sm:$0xff] %vm714_vm7, %v683_v51 }
  0xfc   :  { %v685_v52 = vpop.permute.xlu1 %684  ;;  %v750_v37 = vpop.permute.xlu0 %749 }
  0xfd   :  { %724 = vst.msk [vmem:[#allocation3 + $0x90] sm:$0xff] %vm714_vm7, %v685_v52 }
  0xfe   :  { %790 = vst.msk [vmem:[#allocation3 + $0x80] sm:$0xff] %vm781_vm8, %v750_v37 }
 0x100   :  { %v752_v47 = vpop.permute.xlu1 %751  ;;  %v183_v54 = vpop.permute.xlu0 %182 }
 0x101   :  { %791 = vst.msk [vmem:[#allocation3 + $0x90] sm:$0xff] %vm781_vm8, %v752_v47 }
 0x102   :  { %221 = vst.msk [vmem:[#allocation3 + $0xa0] sm:$0xff] %vm210_vm2, %v183_v54 }
 0x104   :  { %v185_v59 = vpop.permute.xlu1 %184  ;;  %v329_v11 = vpop.permute.xlu0 %328 }
 0x105   :  { %222 = vst.msk [vmem:[#allocation3 + $0xb0] sm:$0xff] %vm210_vm2, %v185_v59  ;;  %v854_v57 = vld [vmem:[#allocation3 + $0x80] sm:$0xff] }
 0x106   :  { %367 = vst.msk [vmem:[#allocation3 + $0xa0] sm:$0xff] %vm356_vm3, %v329_v11 }
 0x108   :  { %v331_v5 = vpop.permute.xlu1 %330  ;;  %v856_v16 = vld [vmem:[#allocation3 + $0x90] sm:$0xff]  ;;  %v410_v61 = vpop.permute.xlu0 %409 }
 0x109   :  { %368 = vst.msk [vmem:[#allocation3 + $0xb0] sm:$0xff] %vm356_vm3, %v331_v5  ;;  %v878_v14 = vpack.c.bf16 %v856_v16, %v854_v57  ;;  %v3624_v16 = vld [vmem:[%s4217_s2] ss:$0 sm:$0xff] }
 0x10a   :  { %448 = vst.msk [vmem:[#allocation3 + $0xa0] sm:$0xff] %vm437_vm4, %v410_v61 }
 0x10b   :  { %1054 = vmatmul.mubr.bf16.gmra.mxu0 %v878_v14 }
 0x10c   :  { %v412_v33 = vpop.permute.xlu1 %411  ;;  %2481 = vmatprep.mubr.msk.bf16.mxu0 %vm129_vm0, %v881_v58  ;;  %v491_v62 = vpop.permute.xlu0 %490 }
 0x10d   :  { %449 = vst.msk [vmem:[#allocation3 + $0xb0] sm:$0xff] %vm437_vm4, %v412_v33 }
 0x10e   :  { %529 = vst.msk [vmem:[#allocation3 + $0xa0] sm:$0xff] %vm518_vm5, %v491_v62 }
 0x110   :  { %v493_v63 = vpop.permute.xlu1 %492  ;;  %v620_v1 = vpop.permute.xlu0 %619 }
 0x111   :  { %530 = vst.msk [vmem:[#allocation3 + $0xb0] sm:$0xff] %vm518_vm5, %v493_v63 }
 0x112   :  { %658 = vst.msk [vmem:[#allocation3 + $0xa0] sm:$0xff] %vm647_vm6, %v620_v1 }
 0x114   :  { %v622_v2 = vpop.permute.xlu1 %621  ;;  %v687_v7 = vpop.permute.xlu0 %686 }
 0x115   :  { %659 = vst.msk [vmem:[#allocation3 + $0xb0] sm:$0xff] %vm647_vm6, %v622_v2 }
 0x116   :  { %725 = vst.msk [vmem:[#allocation3 + $0xa0] sm:$0xff] %vm714_vm7, %v687_v7 }
 0x118   :  { %v689_v9 = vpop.permute.xlu1 %688  ;;  %v754_v34 = vpop.permute.xlu0 %753 }
 0x119   :  { %726 = vst.msk [vmem:[#allocation3 + $0xb0] sm:$0xff] %vm714_vm7, %v689_v9 }
 0x11a   :  { %792 = vst.msk [vmem:[#allocation3 + $0xa0] sm:$0xff] %vm781_vm8, %v754_v34 }
 0x11c   :  { %v756_v35 = vpop.permute.xlu1 %755  ;;  %v187_v10 = vpop.permute.xlu0 %186 }
 0x11d   :  { %793 = vst.msk [vmem:[#allocation3 + $0xb0] sm:$0xff] %vm781_vm8, %v756_v35 }
 0x11e   :  { %223 = vst.msk [vmem:[#allocation3 + $0xc0] sm:$0xff] %vm210_vm2, %v187_v10 }
 0x120   :  { %v189_v18 = vpop.permute.xlu1 %188  ;;  %v333_v6 = vpop.permute.xlu0 %332 }
 0x121   :  { %224 = vst.msk [vmem:[#allocation3 + $0xd0] sm:$0xff] %vm210_vm2, %v189_v18  ;;  %v858_v53 = vld [vmem:[#allocation3 + $0xa0] sm:$0xff] }
 0x122   :  { %369 = vst.msk [vmem:[#allocation3 + $0xc0] sm:$0xff] %vm356_vm3, %v333_v6  ;;  %v2660_v6 = vld [vmem:[%s4218_s3 + $0x78] sm:$0xff]  }
 0x123   :  { %2521 = vmatprep.subr.bf16.mxu1 %v2660_v6 }
 0x124   :  { %v335_v40 = vpop.permute.xlu1 %334  ;;  %v860_v60 = vld [vmem:[#allocation3 + $0xb0] sm:$0xff]  ;;  %v414_v8 = vpop.permute.xlu0 %413  ;;  %2522 = vmatpush3.bf16.msra.mxu1 %v2661_v20 }
 0x125   :  { %370 = vst.msk [vmem:[#allocation3 + $0xd0] sm:$0xff] %vm356_vm3, %v335_v40  ;;  %v880_v0 = vpack.c.bf16 %v860_v60, %v858_v53  ;;  %v2662_v60 = vld [vmem:[%s4218_s3 + $0x70] sm:$0xff]  }
 0x126   :  { %450 = vst.msk [vmem:[#allocation3 + $0xc0] sm:$0xff] %vm437_vm4, %v414_v8  ;;  %2523 = vmatprep.subr.bf16.mxu1 %v2662_v60 }
 0x127   :  { %1062 = vmatmul.mubr.bf16.gmra.mxu0 %v880_v0 }
 0x128   :  { %v416_v45 = vpop.permute.xlu1 %415  ;;  %2482 = vmatprep.mubr.msk.bf16.mxu0 %vm129_vm0, %v883_v28  ;;  %v495_v4 = vpop.permute.xlu0 %494  ;;  %v2663_v28 = vld [vmem:[%s4218_s3 + $0x30] sm:$0xff]  }
 0x129   :  { %451 = vst.msk [vmem:[#allocation3 + $0xd0] sm:$0xff] %vm437_vm4, %v416_v45  ;;  %2524 = vmatpush3.bf16.msra.mxu1 %v2663_v28 }
 0x12a   :  { %531 = vst.msk [vmem:[#allocation3 + $0xc0] sm:$0xff] %vm518_vm5, %v495_v4 }
 0x12c   :  { %v497_v19 = vpop.permute.xlu1 %496  ;;  %v624_v21 = vpop.permute.xlu0 %623 }
 0x12d   :  { %532 = vst.msk [vmem:[#allocation3 + $0xd0] sm:$0xff] %vm518_vm5, %v497_v19 }
 0x12e   :  { %660 = vst.msk [vmem:[#allocation3 + $0xc0] sm:$0xff] %vm647_vm6, %v624_v21 }
 0x130   :  { %v626_v22 = vpop.permute.xlu1 %625  ;;  %v691_v23 = vpop.permute.xlu0 %690 }
 0x131   :  { %661 = vst.msk [vmem:[#allocation3 + $0xd0] sm:$0xff] %vm647_vm6, %v626_v22 }
 0x132   :  { %727 = vst.msk [vmem:[#allocation3 + $0xc0] sm:$0xff] %vm714_vm7, %v691_v23 }
 0x134   :  { %v693_v50 = vpop.permute.xlu1 %692  ;;  %v758_v48 = vpop.permute.xlu0 %757 }
 0x135   :  { %728 = vst.msk [vmem:[#allocation3 + $0xd0] sm:$0xff] %vm714_vm7, %v693_v50  ;;  %v2664_v50 = vld [vmem:[%s4218_s3 + $0x68] sm:$0xff]  }
 0x136   :  { %794 = vst.msk [vmem:[#allocation3 + $0xc0] sm:$0xff] %vm781_vm8, %v758_v48  ;;  %v2665_v48 = vld [vmem:[%s4218_s3 + $0x28] sm:$0xff]   ;;  %2525 = vmatprep.subr.bf16.mxu1 %v2664_v50 }
 0x137   :  { %2526 = vmatpush3.bf16.msra.mxu1 %v2665_v48 }
 0x138   :  { %v760_v31 = vpop.permute.xlu1 %759  ;;  %v191_v32 = vpop.permute.xlu0 %190 }
 0x139   :  { %795 = vst.msk [vmem:[#allocation3 + $0xd0] sm:$0xff] %vm781_vm8, %v760_v31 }
 0x13a   :  { %225 = vst.msk [vmem:[#allocation3 + $0xe0] sm:$0xff] %vm210_vm2, %v191_v32 }
 0x13c   :  { %v193_v17 = vpop.permute.xlu1 %192  ;;  %v337_v36 = vpop.permute.xlu0 %336 }
 0x13d   :  { %226 = vst.msk [vmem:[#allocation3 + $0xf0] sm:$0xff] %vm210_vm2, %v193_v17  ;;  %v862_v39 = vld [vmem:[#allocation3 + $0xc0] sm:$0xff] }
 0x13e   :  { %371 = vst.msk [vmem:[#allocation3 + $0xe0] sm:$0xff] %vm356_vm3, %v337_v36  ;;  %v2666_v17 = vld [vmem:[%s4218_s3 + $0x60] sm:$0xff]  }
 0x13f   :  { %v2667_v36 = vld [vmem:[%s4218_s3 + $0x20] sm:$0xff]   ;;  %2527 = vmatprep.subr.bf16.mxu1 %v2666_v17 }
 0x140   :  { %v339_v41 = vpop.permute.xlu1 %338  ;;  %v864_v24 = vld [vmem:[#allocation3 + $0xd0] sm:$0xff]  ;;  %v418_v51 = vpop.permute.xlu0 %417  ;;  %2528 = vmatpush3.bf16.msra.mxu1 %v2667_v36 }
 0x141   :  { %372 = vst.msk [vmem:[#allocation3 + $0xf0] sm:$0xff] %vm356_vm3, %v339_v41  ;;  %v882_v29 = vpack.c.bf16 %v864_v24, %v862_v39  ;;  %2529 = vmatprep.subr.bf16.mxu1 %v2668_v38  ;;  %v2670_v24 = vld [vmem:[%s4218_s3 + $0x50] sm:$0xff]   ;;  %v1794_v38 = vrot.slane %v3557_v25, 2 }
 0x142   :  { %452 = vst.msk [vmem:[#allocation3 + $0xe0] sm:$0xff] %vm437_vm4, %v418_v51 }
 0x143   :  { %1070 = vmatmul.mubr.bf16.gmra.mxu0 %v882_v29  ;;  %v2671_v29 = vld [vmem:[%s4218_s3 + $0x10] sm:$0xff]  }
 0x144   :  { %v420_v52 = vpop.permute.xlu1 %419  ;;  %2483 = vmatprep.mubr.msk.bf16.mxu0 %vm129_vm0, %v885_v42  ;;  %v499_v37 = vpop.permute.xlu0 %498  ;;  %2530 = vmatpush3.bf16.msra.mxu1 %v2669_v49 }
 0x145   :  { %453 = vst.msk [vmem:[#allocation3 + $0xf0] sm:$0xff] %vm437_vm4, %v420_v52  ;;  %2531 = vmatprep.subr.bf16.mxu1 %v2670_v24 }
 0x146   :  { %533 = vst.msk [vmem:[#allocation3 + $0xe0] sm:$0xff] %vm518_vm5, %v499_v37 }
 0x148   :  { %v501_v47 = vpop.permute.xlu1 %500  ;;  %v628_v54 = vpop.permute.xlu0 %627  ;;  %2532 = vmatpush3.bf16.msra.mxu1 %v2671_v29 }
 0x149   :  { %534 = vst.msk [vmem:[#allocation3 + $0xf0] sm:$0xff] %vm518_vm5, %v501_v47  ;;  %v2672_v47 = vld [vmem:[%s4218_s3 + $0x48] sm:$0xff]  }
 0x14a   :  { %662 = vst.msk [vmem:[#allocation3 + $0xe0] sm:$0xff] %vm647_vm6, %v628_v54  ;;  %2533 = vmatprep.subr.bf16.mxu1 %v2672_v47 }
 0x14c   :  { %v630_v59 = vpop.permute.xlu1 %629  ;;  %v695_v11 = vpop.permute.xlu0 %694 }
 0x14d   :  { %663 = vst.msk [vmem:[#allocation3 + $0xf0] sm:$0xff] %vm647_vm6, %v630_v59  ;;  %v2673_v59 = vld [vmem:[%s4218_s3 + $0x8] sm:$0xff]  }
 0x14e   :  { %729 = vst.msk [vmem:[#allocation3 + $0xe0] sm:$0xff] %vm714_vm7, %v695_v11  ;;  %2534 = vmatpush3.bf16.msra.mxu1 %v2673_v59  ;;  %v1724_v59 = vrot.slane %v3557_v25, 1 }
 0x150   :  { %v697_v55 = vpop.permute.xlu1 %696  ;;  %v762_v56 = vpop.permute.xlu0 %761 }
 0x151   :  { %730 = vst.msk [vmem:[#allocation3 + $0xf0] sm:$0xff] %vm714_vm7, %v697_v55  ;;  %v2674_v55 = vld [vmem:[%s4218_s3 + $0x40] sm:$0xff]  }
 0x152   :  { %796 = vst.msk [vmem:[#allocation3 + $0xe0] sm:$0xff] %vm781_vm8, %v762_v56  ;;  %v2675_v56 = vld [vmem:[%s4218_s3] sm:$0xff]   ;;  %2535 = vmatprep.subr.bf16.mxu1 %v2674_v55 }
 0x153   :  { %2536 = vmatpush3.bf16.msra.mxu1 %v2675_v56 }
 0x154   :  { %v764_v57 = vpop.permute.xlu1 %763  ;;  %v1298_v5 = vpop.permute.xlu0 %1297 }
 0x155   :  { %797 = vst.msk [vmem:[#allocation3 + $0xf0] sm:$0xff] %vm781_vm8, %v764_v57 }
 0x156   :  { %1346 = vst.msk [vmem:[#allocation4] sm:$0xff] %vm1345_vm12, %v1298_v5 }
 0x158   :  { %v1412_v58 = vpop.permute.xlu0 %1411 }
 0x159   :  { %v866_v14 = vld [vmem:[#allocation3 + $0xe0] sm:$0xff]  ;;  %1460 = vst.msk [vmem:[#allocation4] sm:$0xff] %vm1459_vm13, %v1412_v58 }
 0x15b   :  { %v1023_v61 = vpop.f32.mrf.mxu0 }
 0x15c   :  { %v1024_v33 = vadd.f32 %v3624_v16, %v1023_v61  ;;  %v868_v62 = vld [vmem:[#allocation3 + $0xf0] sm:$0xff]  ;;  %v1314_v2 = vpop.permute.xlu0 %1313 }
 0x15d   :  { %v1025_v63 = vpop.f32.mrf.mxu0  ;;  %v884_v1 = vpack.c.bf16 %v868_v62, %v866_v14  ;;  %1354 = vst.msk [vmem:[#allocation4 + $0xc0] sm:$0xff] %vm1345_vm12, %v1314_v2 }
 0x15e   :  { %v1086_v7 = vmax.f32 %v1024_v33, 0.0 }
 0x15f   :  { %v1026_v9 = vpop.f32.mrf.mxu0  ;;  %1078 = vmatmul.mubr.bf16.gmra.mxu0 %v884_v1 }
 0x160   :  { %1145 = vst.msk [vmem:[#allocation2 + $0x11] sm:$0xff] %vm1102_vm9, %v1086_v7  ;;  %v1027_v34 = vadd.f32 %v3624_v16, %v1026_v9  ;;  %2626 = vmatprep.mubr.msk.bf16.mxu0 %vm129_vm0, %v2270_v15  ;;  %v1428_v10 = vpop.permute.xlu0 %1427 }
 0x161   :  { %v1028_v35 = vpop.f32.mrf.mxu0  ;;  %1468 = vst.msk [vmem:[#allocation4 + $0xc0] sm:$0xff] %vm1459_vm13, %v1428_v10 }
 0x162   :  { %v1087_v18 = vmax.f32 %v1027_v34, 0.0 }
 0x164   :  { %1146 = vst.msk [vmem:[#allocation2 + $0x21] sm:$0xff] %vm1102_vm9, %v1087_v18 }
 0x167   :  { %v1163_v3 = vld [vmem:[#allocation2 + $0x10] sm:$0xff]  ;;  %v1164_v12 = vld [vmem:[#allocation2 + $0x18] sm:$0x3] }
 0x168   :  { %1478 = vrot.lane.b32.xlu0 %v1163_v3, %s2695_s14  ;;  %v1252_v13 = vrot.slane %v1163_v3, 1  ;;  %v1366_v15 = vrot.slane %v1163_v3, 2  ;;  %1202 = vst.msk [vmem:[#allocation4 + $0x18] sm:$0xff] %vm1102_vm9, %v1163_v3  ;;  %v1253_v53 = vrot.slane %v1164_v12, 1  ;;  %v1367_v40 = vrot.slane %v1164_v12, 2 }
 0x16a   :  { %v1254_v0 = vsel %vm259_vm1, %v1252_v13, %v1253_v53  ;;  %v1368_v8 = vsel %vm1362_vm11, %v1366_v15, %v1367_v40 }
 0x16b   :  { %1299 = vrot.lane.b32.xlu1 %v1254_v0, %s2691_s18  ;;  %1567 = vst.msk [vmem:[#allocation4 + $0x8] sm:$0xff] %vm1102_vm9, %v1254_v0  ;;  %v1165_v45 = vld [vmem:[#allocation2 + $0x20] sm:$0xff]  ;;  %v1166_v4 = vld [vmem:[#allocation2 + $0x28] sm:$0x3] }
 0x16c   :  { %1589 = vrot.lane.b32.xlu0 %v1368_v8, %s2691_s18  ;;  %1203 = vst.msk [vmem:[#allocation4 + $0x30] sm:$0xff] %vm1102_vm9, %v1165_v45  ;;  %v1255_v19 = vrot.slane %v1165_v45, 1  ;;  %v1256_v21 = vrot.slane %v1166_v4, 1  ;;  %v1369_v22 = vrot.slane %v1165_v45, 2  ;;  %v1370_v23 = vrot.slane %v1166_v4, 2 }
 0x16e   :  { %v1257_v31 = vsel %vm259_vm1, %v1255_v19, %v1256_v21  ;;  %v1371_v32 = vsel %vm1362_vm11, %v1369_v22, %v1370_v23 }
 0x16f   :  { %1413 = vrot.lane.b32.xlu1 %v1368_v8, %s2693_s11  ;;  %1568 = vst.msk [vmem:[#allocation4 + $0x20] sm:$0xff] %vm1102_vm9, %v1257_v31  ;;  %1813 = vst.msk [vmem:[#allocation4 + $0x10] sm:$0xff] %vm1102_vm9, %v1371_v32 }
 0x170   :  { %1655 = vrot.lane.b32.xlu0 %v1165_v45, %s2693_s11 }
 0x173   :  { %1480 = vrot.lane.b32.xlu1 %v1165_v45, %s2695_s14 }
 0x174   :  { %1727 = vrot.lane.b32.xlu0 %v1257_v31, %s2695_s14 }
 0x177   :  { %v1031_v39 = vpop.f32.mrf.mxu0  ;;  %1591 = vrot.lane.b32.xlu1 %v1371_v32, %s2691_s18 }
 0x178   :  { %v1032_v41 = vadd.f32 %v3624_v16, %v1031_v39  ;;  %1301 = vrot.lane.b32.xlu0 %v1257_v31, %s2691_s18  ;;  %v1200_v39 = vld [vmem:[#allocation2 + $0x138] sm:$0x3] }
 0x179   :  { %v1033_v42 = vpop.f32.mrf.mxu0  ;;  %v1795_v24 = vrot.slane %v1200_v39, 2 }
 0x17a   :  { %v1088_v51 = vmax.f32 %v1032_v41, 0.0 }
 0x17b   :  { %v1034_v52 = vpop.f32.mrf.mxu0 }
 0x17c   :  { %1147 = vst.msk [vmem:[#allocation2 + $0x31] sm:$0xff] %vm1102_vm9, %v1088_v51  ;;  %v1035_v37 = vadd.f32 %v3624_v16, %v1034_v52  ;;  %1415 = vrot.lane.b32.xlu0 %v1371_v32, %s2693_s11  ;;  %v1796_v51 = vsel %vm1362_vm11, %v1794_v38, %v1795_v24 }
 0x17d   :  { %v1036_v54 = vpop.f32.mrf.mxu0  ;;  %1828 = vst.msk [vmem:[#allocation4 + $0x178] sm:$0xff] %vm1102_vm9, %v1796_v51 }
 0x17e   :  { %v1089_v11 = vmax.f32 %v1035_v37, 0.0 }
 0x180   :  { %1148 = vst.msk [vmem:[#allocation2 + $0x41] sm:$0xff] %vm1102_vm9, %v1089_v11 }
 0x183   :  { %v1167_v57 = vld [vmem:[#allocation2 + $0x30] sm:$0xff]  ;;  %v1168_v5 = vld [vmem:[#allocation2 + $0x38] sm:$0x3] }
 0x184   :  { %1482 = vrot.lane.b32.xlu0 %v1167_v57, %s2695_s14  ;;  %1204 = vst.msk [vmem:[#allocation4 + $0x48] sm:$0xff] %vm1102_vm9, %v1167_v57  ;;  %1657 = vrot.lane.b32.xlu1 %v1167_v57, %s2693_s11  ;;  %v1372_v58 = vrot.slane %v1167_v57, 2  ;;  %v1373_v14 = vrot.slane %v1168_v5, 2  ;;  %v1258_v61 = vrot.slane %v1167_v57, 1  ;;  %v1259_v33 = vrot.slane %v1168_v5, 1 }
 0x186   :  { %v1374_v62 = vsel %vm1362_vm11, %v1372_v58, %v1373_v14  ;;  %v1260_v63 = vsel %vm259_vm1, %v1258_v61, %v1259_v33  ;;  %v1725_v14 = vrot.slane %v1200_v39, 1 }
 0x187   :  { %1814 = vst.msk [vmem:[#allocation4 + $0x28] sm:$0xff] %vm1102_vm9, %v1374_v62  ;;  %1569 = vst.msk [vmem:[#allocation4 + $0x38] sm:$0xff] %vm1102_vm9, %v1260_v63  ;;  %v1169_v1 = vld [vmem:[#allocation2 + $0x40] sm:$0xff]  ;;  %v1170_v2 = vld [vmem:[#allocation2 + $0x48] sm:$0x3] }
 0x188   :  { %1593 = vrot.lane.b32.xlu0 %v1374_v62, %s2691_s18  ;;  %1729 = vrot.lane.b32.xlu1 %v1260_v63, %s2695_s14  ;;  %1205 = vst.msk [vmem:[#allocation4 + $0x60] sm:$0xff] %vm1102_vm9, %v1169_v1  ;;  %v1261_v7 = vrot.slane %v1169_v1, 1  ;;  %v1262_v9 = vrot.slane %v1170_v2, 1  ;;  %v1375_v34 = vrot.slane %v1169_v1, 2  ;;  %v1376_v35 = vrot.slane %v1170_v2, 2 }
 0x18a   :  { %v1263_v10 = vsel %vm259_vm1, %v1261_v7, %v1262_v9  ;;  %v1377_v18 = vsel %vm1362_vm11, %v1375_v34, %v1376_v35 }
 0x18b   :  { %1570 = vst.msk [vmem:[#allocation4 + $0x50] sm:$0xff] %vm1102_vm9, %v1263_v10  ;;  %1815 = vst.msk [vmem:[#allocation4 + $0x40] sm:$0xff] %vm1102_vm9, %v1377_v18 }
 0x18c   :  { %1659 = vrot.lane.b32.xlu0 %v1169_v1, %s2693_s11  ;;  %1303 = vrot.lane.b32.xlu1 %v1260_v63, %s2691_s18  ;;  %v3772_v63 = vsel %vm259_vm1, %v1724_v59, %v1725_v14 }
 0x190   :  { %1731 = vrot.lane.b32.xlu0 %v1263_v10, %s2695_s14  ;;  %1417 = vrot.lane.b32.xlu1 %v1374_v62, %s2693_s11 }
 0x193   :  { %v1039_v6 = vpop.f32.mrf.mxu0 }
 0x194   :  { %v1040_v20 = vadd.f32 %v3624_v16, %v1039_v6  ;;  %1305 = vrot.lane.b32.xlu0 %v1263_v10, %s2691_s18  ;;  %1484 = vrot.lane.b32.xlu1 %v1169_v1, %s2695_s14 }
 0x195   :  { %v1041_v3 = vpop.f32.mrf.mxu0 }
 0x196   :  { %v1090_v12 = vmax.f32 %v1040_v20, 0.0 }
 0x197   :  { %v1042_v13 = vpop.f32.mrf.mxu0 }
 0x198   :  { %1149 = vst.msk [vmem:[#allocation2 + $0x51] sm:$0xff] %vm1102_vm9, %v1090_v12  ;;  %v1043_v15 = vadd.f32 %v3624_v16, %v1042_v13  ;;  %1419 = vrot.lane.b32.xlu0 %v1377_v18, %s2693_s11  ;;  %1595 = vrot.lane.b32.xlu1 %v1377_v18, %s2691_s18  ;;  %v3784_v18 = vpop.permute.xlu1 %1669 }
 0x199   :  { %v1044_v53 = vpop.f32.mrf.mxu0 }
 0x19a   :  { %v1091_v40 = vmax.f32 %v1043_v15, 0.0 }
 0x19c   :  { %1150 = vst.msk [vmem:[#allocation2 + $0x61] sm:$0xff] %vm1102_vm9, %v1091_v40  ;;  %v3791_v53 = vpop.permute.xlu1 %1741 }
 0x19f   :  { %v1171_v60 = vld [vmem:[#allocation2 + $0x50] sm:$0xff]  ;;  %v1172_v28 = vld [vmem:[#allocation2 + $0x58] sm:$0x3] }
 0x1a0   :  { %1486 = vrot.lane.b32.xlu0 %v1171_v60, %s2695_s14  ;;  %1206 = vst.msk [vmem:[#allocation4 + $0x78] sm:$0xff] %vm1102_vm9, %v1171_v60  ;;  %1661 = vrot.lane.b32.xlu1 %v1171_v60, %s2693_s11  ;;  %v1378_v0 = vrot.slane %v1171_v60, 2  ;;  %v1379_v8 = vrot.slane %v1172_v28, 2  ;;  %v1264_v45 = vrot.slane %v1171_v60, 1  ;;  %v1265_v4 = vrot.slane %v1172_v28, 1  ;;  %v3794_v28 = vpop.permute.xlu1 %1685 }
 0x1a2   :  { %v1380_v19 = vsel %vm1362_vm11, %v1378_v0, %v1379_v8  ;;  %v1266_v21 = vsel %vm259_vm1, %v1264_v45, %v1265_v4 }
 0x1a3   :  { %1816 = vst.msk [vmem:[#allocation4 + $0x58] sm:$0xff] %vm1102_vm9, %v1380_v19  ;;  %1571 = vst.msk [vmem:[#allocation4 + $0x68] sm:$0xff] %vm1102_vm9, %v1266_v21  ;;  %v1173_v22 = vld [vmem:[#allocation2 + $0x60] sm:$0xff]  ;;  %v1174_v23 = vld [vmem:[#allocation2 + $0x68] sm:$0x3] }
 0x1a4   :  { %1597 = vrot.lane.b32.xlu0 %v1380_v19, %s2691_s18  ;;  %1733 = vrot.lane.b32.xlu1 %v1266_v21, %s2695_s14  ;;  %1207 = vst.msk [vmem:[#allocation4 + $0x90] sm:$0xff] %vm1102_vm9, %v1173_v22  ;;  %v1267_v50 = vrot.slane %v1173_v22, 1  ;;  %v1268_v48 = vrot.slane %v1174_v23, 1  ;;  %v1381_v31 = vrot.slane %v1173_v22, 2  ;;  %v1382_v32 = vrot.slane %v1174_v23, 2 }
 0x1a6   :  { %v1269_v17 = vsel %vm259_vm1, %v1267_v50, %v1268_v48  ;;  %v1383_v36 = vsel %vm1362_vm11, %v1381_v31, %v1382_v32 }
 0x1a7   :  { %1572 = vst.msk [vmem:[#allocation4 + $0x80] sm:$0xff] %vm1102_vm9, %v1269_v17  ;;  %1817 = vst.msk [vmem:[#allocation4 + $0x70] sm:$0xff] %vm1102_vm9, %v1383_v36 }
 0x1a8   :  { %1663 = vrot.lane.b32.xlu0 %v1173_v22, %s2693_s11  ;;  %1307 = vrot.lane.b32.xlu1 %v1266_v21, %s2691_s18 }
 0x1ac   :  { %1735 = vrot.lane.b32.xlu0 %v1269_v17, %s2695_s14  ;;  %1421 = vrot.lane.b32.xlu1 %v1380_v19, %s2693_s11 }
 0x1b0   :  { %v1047_v49 = vpop.f32.mrf.mxu0  ;;  %1309 = vrot.lane.b32.xlu0 %v1269_v17, %s2691_s18  ;;  %1488 = vrot.lane.b32.xlu1 %v1173_v22, %s2695_s14 }
 0x1b1   :  { %v1048_v41 = vadd.f32 %v3624_v16, %v1047_v49 }
 0x1b2   :  { %v1049_v42 = vpop.f32.mrf.mxu0 }
 0x1b3   :  { %v1092_v29 = vmax.f32 %v1048_v41, 0.0 }
 0x1b4   :  { %v1050_v52 = vpop.f32.mrf.mxu0  ;;  %1423 = vrot.lane.b32.xlu0 %v1383_v36, %s2693_s11  ;;  %1599 = vrot.lane.b32.xlu1 %v1383_v36, %s2691_s18 }
 0x1b5   :  { %1151 = vst.msk [vmem:[#allocation2 + $0x71] sm:$0xff] %vm1102_vm9, %v1092_v29  ;;  %v1051_v37 = vadd.f32 %v3624_v16, %v1050_v52 }
 0x1b6   :  { %v1052_v47 = vpop.f32.mrf.mxu0 }
 0x1b7   :  { %v1093_v54 = vmax.f32 %v1051_v37, 0.0 }
 0x1b9   :  { %1152 = vst.msk [vmem:[#allocation2 + $0x81] sm:$0xff] %vm1102_vm9, %v1093_v54 }
 0x1bc   :  { %v1175_v11 = vld [vmem:[#allocation2 + $0x70] sm:$0xff]  ;;  %v1176_v55 = vld [vmem:[#allocation2 + $0x78] sm:$0x3] }
 0x1bd   :  { %1490 = vrot.lane.b32.xlu0 %v1175_v11, %s2695_s14  ;;  %1208 = vst.msk [vmem:[#allocation4 + $0xa8] sm:$0xff] %vm1102_vm9, %v1175_v11  ;;  %1665 = vrot.lane.b32.xlu1 %v1175_v11, %s2693_s11  ;;  %v1384_v56 = vrot.slane %v1175_v11, 2  ;;  %v1385_v57 = vrot.slane %v1176_v55, 2  ;;  %v1270_v5 = vrot.slane %v1175_v11, 1  ;;  %v1271_v58 = vrot.slane %v1176_v55, 1 }
 0x1bf   :  { %v1386_v61 = vsel %vm1362_vm11, %v1384_v56, %v1385_v57  ;;  %v1272_v33 = vsel %vm259_vm1, %v1270_v5, %v1271_v58 }
 0x1c0   :  { %1818 = vst.msk [vmem:[#allocation4 + $0x88] sm:$0xff] %vm1102_vm9, %v1386_v61  ;;  %1573 = vst.msk [vmem:[#allocation4 + $0x98] sm:$0xff] %vm1102_vm9, %v1272_v33  ;;  %v1177_v25 = vld [vmem:[#allocation2 + $0x80] sm:$0xff]  ;;  %v1178_v62 = vld [vmem:[#allocation2 + $0x88] sm:$0x3] }
 0x1c1   :  { %1601 = vrot.lane.b32.xlu0 %v1386_v61, %s2691_s18  ;;  %1737 = vrot.lane.b32.xlu1 %v1272_v33, %s2695_s14  ;;  %v1545_v1 = vrot.slane %v1177_v25, 1  ;;  %v1583_v2 = vrot.slane %v1177_v25, 2  ;;  %v1546_v7 = vrot.slane %v1178_v62, 1  ;;  %v1584_v9 = vrot.slane %v1178_v62, 2 }
 0x1c3   :  { %v1547_v34 = vsel %vm259_vm1, %v1545_v1, %v1546_v7  ;;  %v1585_v35 = vsel %vm1362_vm11, %v1583_v2, %v1584_v9 }
 0x1c4   :  { %1574 = vst.msk [vmem:[#allocation4 + $0xb0] sm:$0xff] %vm1102_vm9, %v1547_v34  ;;  %1819 = vst.msk [vmem:[#allocation4 + $0xa0] sm:$0xff] %vm1102_vm9, %v1585_v35 }
 0x1c5   :  { %1667 = vrot.lane.b32.xlu0 %v1177_v25, %s2693_s11  ;;  %1311 = vrot.lane.b32.xlu1 %v1272_v33, %s2691_s18 }
 0x1c9   :  { %1739 = vrot.lane.b32.xlu0 %v1547_v34, %s2695_s14  ;;  %1425 = vrot.lane.b32.xlu1 %v1386_v61, %s2693_s11 }
 0x1cb   :  { %v1055_v10 = vpop.f32.mrf.mxu0 }
 0x1cc   :  { %v1056_v6 = vadd.f32 %v3624_v16, %v1055_v10 }
 0x1cd   :  { %1492 = vrot.lane.b32.xlu1 %v1177_v25, %s2695_s14  ;;  %v1057_v20 = vpop.f32.mrf.mxu0 }
 0x1ce   :  { %v1094_v3 = vmax.f32 %v1056_v6, 0.0 }
 0x1cf   :  { %v1058_v12 = vpop.f32.mrf.mxu0 }
 0x1d0   :  { %1153 = vst.msk [vmem:[#allocation2 + $0xb1] sm:$0xff] %vm1102_vm9, %v1094_v3  ;;  %v1059_v13 = vadd.f32 %v3624_v16, %v1058_v12 }
 0x1d1   :  { %1603 = vrot.lane.b32.xlu1 %v1585_v35, %s2691_s18  ;;  %v1060_v15 = vpop.f32.mrf.mxu0 }
 0x1d2   :  { %v1095_v40 = vmax.f32 %v1059_v13, 0.0 }
 0x1d4   :  { %1154 = vst.msk [vmem:[#allocation2 + $0xc1] sm:$0xff] %vm1102_vm9, %v1095_v40 }
 0x1d7   :  { %v1183_v60 = vld [vmem:[#allocation2 + $0xb0] sm:$0xff]  ;;  %v1184_v0 = vld [vmem:[#allocation2 + $0xb8] sm:$0x3] }
 0x1d8   :  { %v1276_v8 = vrot.slane %v1183_v60, 1  ;;  %v1390_v45 = vrot.slane %v1183_v60, 2  ;;  %1494 = vrot.lane.b32.xlu0 %v1183_v60, %s2695_s14  ;;  %1210 = vst.msk [vmem:[#allocation4 + $0xd8] sm:$0xff] %vm1102_vm9, %v1183_v60  ;;  %v1277_v4 = vrot.slane %v1184_v0, 1  ;;  %v1391_v19 = vrot.slane %v1184_v0, 2 }
 0x1da   :  { %v1479_v21 = vpop.permute.xlu0 %1478  ;;  %v1278_v22 = vsel %vm259_vm1, %v1276_v8, %v1277_v4  ;;  %v1392_v23 = vsel %vm1362_vm11, %v1390_v45, %v1391_v19 }
 0x1db   :  { %1527 = vst.msk [vmem:[#allocation4] sm:$0xff] %vm1526_vm14, %v1479_v21  ;;  %1315 = vrot.lane.b32.xlu1 %v1278_v22, %s2691_s18  ;;  %v1185_v50 = vld [vmem:[#allocation2 + $0xc0] sm:$0xff]  ;;  %v1186_v48 = vld [vmem:[#allocation2 + $0xc8] sm:$0x3] }
 0x1dc   :  { %1575 = vst.msk [vmem:[#allocation4 + $0xc8] sm:$0xff] %vm1102_vm9, %v1278_v22  ;;  %1605 = vrot.lane.b32.xlu0 %v1392_v23, %s2691_s18  ;;  %1211 = vst.msk [vmem:[#allocation4 + $0xf0] sm:$0xff] %vm1102_vm9, %v1185_v50  ;;  %v1279_v31 = vrot.slane %v1185_v50, 1  ;;  %v1280_v32 = vrot.slane %v1186_v48, 1  ;;  %v1393_v17 = vrot.slane %v1185_v50, 2  ;;  %v1394_v36 = vrot.slane %v1186_v48, 2 }
 0x1dd   :  { %v1300_v38 = vpop.permute.xlu1 %1299 }
 0x1de   :  { %1347 = vst.msk [vmem:[#allocation4 + $0x18] sm:$0xff] %vm1345_vm12, %v1300_v38  ;;  %v1590_v49 = vpop.permute.xlu0 %1589  ;;  %v1281_v39 = vsel %vm259_vm1, %v1279_v31, %v1280_v32  ;;  %v1395_v41 = vsel %vm1362_vm11, %v1393_v17, %v1394_v36 }
 0x1df   :  { %1637 = vst.msk [vmem:[#allocation4 + $0x8] sm:$0xff] %vm1345_vm12, %v1590_v49  ;;  %1429 = vrot.lane.b32.xlu1 %v1392_v23, %s2693_s11 }
 0x1e0   :  { %1576 = vst.msk [vmem:[#allocation4 + $0xe0] sm:$0xff] %vm1102_vm9, %v1281_v39  ;;  %1821 = vst.msk [vmem:[#allocation4 + $0xd0] sm:$0xff] %vm1102_vm9, %v1395_v41  ;;  %1671 = vrot.lane.b32.xlu0 %v1185_v50, %s2693_s11 }
 0x1e1   :  { %v1414_v24 = vpop.permute.xlu1 %1413 }
 0x1e2   :  { %1461 = vst.msk [vmem:[#allocation4 + $0x18] sm:$0xff] %vm1459_vm13, %v1414_v24  ;;  %v1656_v42 = vpop.permute.xlu0 %1655  ;;  %v1829_v48 = vld [vmem:[#allocation4] sm:$0xff] }
 0x1e3   :  { %1703 = vst.msk [vmem:[#allocation4 + $0x8] sm:$0xff] %vm1459_vm13, %v1656_v42  ;;  %1496 = vrot.lane.b32.xlu1 %v1185_v50, %s2695_s14 }
 0x1e4   :  { %1743 = vrot.lane.b32.xlu0 %v1281_v39, %s2695_s14 }
 0x1e5   :  { %v1481_v29 = vpop.permute.xlu1 %1480 }
 0x1e6   :  { %1528 = vst.msk [vmem:[#allocation4 + $0x18] sm:$0xff] %vm1526_vm14, %v1481_v29  ;;  %v1728_v51 = vpop.permute.xlu0 %1727  ;;  %v2677_v29 = vld [vmem:[%s4219_s5] sm:$0xff]  }
 0x1e7   :  { %1775 = vst.msk [vmem:[#allocation4 + $0x8] sm:$0xff] %vm1526_vm14, %v1728_v51  ;;  %v1063_v52 = vpop.f32.mrf.mxu0  ;;  %1607 = vrot.lane.b32.xlu1 %v1395_v41, %s2691_s18  ;;  %2624 = vmatprep.subr.bf16.mxu0 %v2677_v29 }
 0x1e8   :  { %v1064_v37 = vadd.f32 %v3624_v16, %v1063_v52  ;;  %1317 = vrot.lane.b32.xlu0 %v1281_v39, %s2691_s18  ;;  %2625 = vmatpush3.bf16.msra.mxu0 %v2677_v29 }
 0x1e9   :  { %v1065_v47 = vpop.f32.mrf.mxu0  ;;  %v1592_v54 = vpop.permute.xlu1 %1591 }
 0x1ea   :  { %v1096_v59 = vmax.f32 %v1064_v37, 0.0  ;;  %1638 = vst.msk [vmem:[#allocation4 + $0x20] sm:$0xff] %vm1345_vm12, %v1592_v54  ;;  %v1302_v11 = vpop.permute.xlu0 %1301 }
 0x1eb   :  { %1348 = vst.msk [vmem:[#allocation4 + $0x30] sm:$0xff] %vm1345_vm12, %v1302_v11  ;;  %v1066_v55 = vpop.f32.mrf.mxu0  ;;  %2627 = vmatmul.mubr.msk.bf16.vlgmr.msra.gmra.mxu0 %vm129_vm0, %v2271_v30  ;;  %v2679_v30 = vld [vmem:[%s4215_s0 + $0x3c0] sm:$0xff] }
 0x1ec   :  { %1155 = vst.msk [vmem:[#allocation2 + $0xd1] sm:$0xff] %vm1102_vm9, %v1096_v59  ;;  %v1067_v56 = vadd.f32 %v3624_v16, %v1066_v55  ;;  %1431 = vrot.lane.b32.xlu0 %v1395_v41, %s2693_s11  ;;  %v2676_v41 = vld [vmem:[%s4218_s3 + $0x88] sm:$0xff]   ;;  %2630 = vmatprep.mubr.msk.bf16.mxu0 %vm129_vm0, %v2272_v46 }
 0x1ed   :  { %v1068_v57 = vpop.f32.mrf.mxu0  ;;  %v1832_v45 = vld [vmem:[#allocation4 + $0x18] sm:$0xff]  ;;  %2604 = vmatprep.subr.bf16.mxu1 %v2676_v41 }
 0x1ee   :  { %v1097_v5 = vmax.f32 %v1067_v56, 0.0  ;;  %v1416_v58 = vpop.permute.xlu0 %1415  ;;  %v1830_v21 = vld [vmem:[#allocation4 + $0x8] sm:$0xff]  ;;  %v1877_v32 = vpack.c.bf16 %v1832_v45, %v1829_v48 }
 0x1ef   :  { %1462 = vst.msk [vmem:[#allocation4 + $0x30] sm:$0xff] %vm1459_vm13, %v1416_v58  ;;  %v2680_v58 = vld [vmem:[%s4215_s0 + $0x3d0] sm:$0xff] }
 0x1f0   :  { %1156 = vst.msk [vmem:[#allocation2 + $0xe1] sm:$0xff] %vm1102_vm9, %v1097_v5 }
 0x1f3   :  { %v1187_v14 = vld [vmem:[#allocation2 + $0xd0] sm:$0xff]  ;;  %v1188_v61 = vld [vmem:[#allocation2 + $0xd8] sm:$0x3] }
 0x1f4   :  { %1498 = vrot.lane.b32.xlu0 %v1187_v14, %s2695_s14  ;;  %1212 = vst.msk [vmem:[#allocation4 + $0x108] sm:$0xff] %vm1102_vm9, %v1187_v14  ;;  %1673 = vrot.lane.b32.xlu1 %v1187_v14, %s2693_s11  ;;  %v1396_v33 = vrot.slane %v1187_v14, 2  ;;  %v1397_v25 = vrot.slane %v1188_v61, 2  ;;  %v1282_v62 = vrot.slane %v1187_v14, 1  ;;  %v1283_v1 = vrot.slane %v1188_v61, 1 }
 0x1f5   :  { %v2273_v14 = vpack.c.bf16 %v2680_v58, %v2679_v30 }
 0x1f6   :  { %v1483_v2 = vpop.permute.xlu0 %1482  ;;  %v1658_v7 = vpop.permute.xlu1 %1657  ;;  %v1398_v9 = vsel %vm1362_vm11, %v1396_v33, %v1397_v25  ;;  %v1284_v34 = vsel %vm259_vm1, %v1282_v62, %v1283_v1  ;;  %v2681_v62 = vld [vmem:[%s4215_s0 + $0x3f0] sm:$0xff]  ;;  %v2682_v1 = vld [vmem:[%s4215_s0 + $0x400] sm:$0xff] }
 0x1f7   :  { %1529 = vst.msk [vmem:[#allocation4 + $0x30] sm:$0xff] %vm1526_vm14, %v1483_v2  ;;  %v1189_v35 = vld [vmem:[#allocation2 + $0xe0] sm:$0xff]  ;;  %v1190_v10 = vld [vmem:[#allocation2 + $0xe8] sm:$0x3]  ;;  %v2274_v2 = vpack.c.bf16 %v2682_v1, %v2681_v62  ;;  %2631 = vmatmul.mubr.msk.bf16.gmra.mxu0 %vm129_vm0, %v2273_v14 }
 0x1f8   :  { %1704 = vst.msk [vmem:[#allocation4 + $0x20] sm:$0xff] %vm1459_vm13, %v1658_v7  ;;  %1609 = vrot.lane.b32.xlu0 %v1398_v9, %s2691_s18  ;;  %1745 = vrot.lane.b32.xlu1 %v1284_v34, %s2695_s14  ;;  %v1285_v6 = vrot.slane %v1189_v35, 1  ;;  %v1286_v20 = vrot.slane %v1190_v10, 1  ;;  %v1399_v3 = vrot.slane %v1189_v35, 2  ;;  %v1400_v12 = vrot.slane %v1190_v10, 2 }
 0x1f9   :  { %1822 = vst.msk [vmem:[#allocation4 + $0xe8] sm:$0xff] %vm1102_vm9, %v1398_v9  ;;  %1577 = vst.msk [vmem:[#allocation4 + $0xf8] sm:$0xff] %vm1102_vm9, %v1284_v34  ;;  %2634 = vmatprep.mubr.msk.bf16.mxu0 %vm129_vm0, %v2274_v2 }
 0x1fa   :  { %1213 = vst.msk [vmem:[#allocation4 + $0x120] sm:$0xff] %vm1102_vm9, %v1189_v35  ;;  %v1594_v13 = vpop.permute.xlu0 %1593  ;;  %v1730_v15 = vpop.permute.xlu1 %1729  ;;  %v1287_v40 = vsel %vm259_vm1, %v1285_v6, %v1286_v20  ;;  %v1401_v60 = vsel %vm1362_vm11, %v1399_v3, %v1400_v12  ;;  %v2683_v20 = vld [vmem:[%s4215_s0 + $0x410] sm:$0xff]  ;;  %v2684_v3 = vld [vmem:[%s4215_s0 + $0x420] sm:$0xff] }
 0x1fb   :  { %1639 = vst.msk [vmem:[#allocation4 + $0x38] sm:$0xff] %vm1345_vm12, %v1594_v13  ;;  %v2275_v12 = vpack.c.bf16 %v2684_v3, %v2683_v20  ;;  %v2685_v13 = vld [vmem:[%s4215_s0 + $0x430] sm:$0xff] }
 0x1fc   :  { %1776 = vst.msk [vmem:[#allocation4 + $0x20] sm:$0xff] %vm1526_vm14, %v1730_v15  ;;  %1675 = vrot.lane.b32.xlu0 %v1189_v35, %s2693_s11  ;;  %1319 = vrot.lane.b32.xlu1 %v1284_v34, %s2691_s18  ;;  %v2686_v15 = vld [vmem:[%s4215_s0 + $0x440] sm:$0xff] }
 0x1fd   :  { %1578 = vst.msk [vmem:[#allocation4 + $0x110] sm:$0xff] %vm1102_vm9, %v1287_v40  ;;  %1823 = vst.msk [vmem:[#allocation4 + $0x100] sm:$0xff] %vm1102_vm9, %v1401_v60 }
 0x1fe   :  { %v1660_v0 = vpop.permute.xlu0 %1659  ;;  %v1304_v8 = vpop.permute.xlu1 %1303 }
 0x1ff   :  { %1705 = vst.msk [vmem:[#allocation4 + $0x38] sm:$0xff] %vm1459_vm13, %v1660_v0  ;;  %2635 = vmatmul.mubr.msk.bf16.gmra.mxu0 %vm129_vm0, %v2275_v12 }
 0x200   :  { %1349 = vst.msk [vmem:[#allocation4 + $0x48] sm:$0xff] %vm1345_vm12, %v1304_v8  ;;  %1747 = vrot.lane.b32.xlu0 %v1287_v40, %s2695_s14  ;;  %1433 = vrot.lane.b32.xlu1 %v1398_v9, %s2693_s11 }
 0x202   :  { %v1732_v4 = vpop.permute.xlu0 %1731  ;;  %v1418_v19 = vpop.permute.xlu1 %1417 }
 0x203   :  { %v1833_v22 = vld [vmem:[#allocation4 + $0x20] sm:$0xff]  ;;  %1777 = vst.msk [vmem:[#allocation4 + $0x38] sm:$0xff] %vm1526_vm14, %v1732_v4  ;;  %v1071_v23 = vpop.f32.mrf.mxu0 }
 0x204   :  { %1463 = vst.msk [vmem:[#allocation4 + $0x48] sm:$0xff] %vm1459_vm13, %v1418_v19  ;;  %v1878_v50 = vpack.c.bf16 %v1833_v22, %v1830_v21  ;;  %v1072_v31 = vadd.f32 %v3624_v16, %v1071_v23  ;;  %1321 = vrot.lane.b32.xlu0 %v1287_v40, %s2691_s18  ;;  %1500 = vrot.lane.b32.xlu1 %v1189_v35, %s2695_s14  ;;  %v1835_v22 = vld [vmem:[#allocation4 + $0x30] sm:$0xff] }
 0x205   :  { %v1073_v17 = vpop.f32.mrf.mxu0  ;;  %v2276_v40 = vpack.c.bf16 %v2686_v15, %v2685_v13 }
 0x206   :  { %2108 = vmatprep.mubr.bf16.mxu1 %v1878_v50  ;;  %v1098_v36 = vmax.f32 %v1072_v31, 0.0  ;;  %v1306_v38 = vpop.permute.xlu0 %1305  ;;  %v1485_v49 = vpop.permute.xlu1 %1484 }
 0x207   :  { %2109 = vmatmul.mubr.bf16.vlgmr.msra.gmra.mxu1 %v1877_v32  ;;  %1350 = vst.msk [vmem:[#allocation4 + $0x60] sm:$0xff] %vm1345_vm12, %v1306_v38  ;;  %v1074_v39 = vpop.f32.mrf.mxu0  ;;  %2638 = vmatprep.mubr.msk.bf16.mxu0 %vm129_vm0, %v2276_v40  ;;  %v2688_v38 = vld [vmem:[%s4215_s0 + $0x460] sm:$0xff] }
 0x208   :  { %1530 = vst.msk [vmem:[#allocation4 + $0x48] sm:$0xff] %vm1526_vm14, %v1485_v49  ;;  %v1075_v24 = vadd.f32 %v3624_v16, %v1074_v39  ;;  %1435 = vrot.lane.b32.xlu0 %v1401_v60, %s2693_s11  ;;  %1611 = vrot.lane.b32.xlu1 %v1401_v60, %s2691_s18 }
 0x209   :  { %1157 = vst.msk [vmem:[#allocation2 + $0xf1] sm:$0xff] %vm1102_vm9, %v1098_v36  ;;  %v1076_v42 = vpop.f32.mrf.mxu0  ;;  %2605 = vmatpush3.bf16.msra.mxu1 %v2676_v41  ;;  %v2687_v36 = vld [vmem:[%s4215_s0 + $0x450] sm:$0xff] }
 0x20a   :  { %v1099_v51 = vmax.f32 %v1075_v24, 0.0  ;;  %v1420_v52 = vpop.permute.xlu0 %1419  ;;  %v1596_v37 = vpop.permute.xlu1 %1595  ;;  %v1836_v45 = vld [vmem:[#allocation4 + $0x38] sm:$0xff]  ;;  %v2277_v49 = vpack.c.bf16 %v2688_v38, %v2687_v36 }
 0x20b   :  { %1464 = vst.msk [vmem:[#allocation4 + $0x60] sm:$0xff] %vm1459_vm13, %v1420_v52  ;;  %v2678_v52 = vld [vmem:[%s4218_s3 + $0x80] sm:$0xff]  }
 0x20c   :  { %1640 = vst.msk [vmem:[#allocation4 + $0x50] sm:$0xff] %vm1345_vm12, %v1596_v37  ;;  %2639 = vmatmul.mubr.msk.bf16.gmra.mxu0 %vm129_vm0, %v2277_v49  ;;  %2606 = vmatprep.subr.bf16.mxu1 %v2678_v52 }
 0x20d   :  { %1158 = vst.msk [vmem:[#allocation2 + $0x101] sm:$0xff] %vm1102_vm9, %v1099_v51  ;;  %2607 = vmatpush3.bf16.msra.mxu1 %v2678_v52 }
 0x20f   :  { %v1838_v60 = vld [vmem:[#allocation4 + $0x48] sm:$0xff] }
 0x210   :  { %v1191_v47 = vld [vmem:[#allocation2 + $0xf0] sm:$0xff]  ;;  %v1192_v54 = vld [vmem:[#allocation2 + $0xf8] sm:$0x3]  ;;  %v1880_v50 = vpack.c.bf16 %v1838_v60, %v1835_v22 }
 0x211   :  { %1502 = vrot.lane.b32.xlu0 %v1191_v47, %s2695_s14  ;;  %1214 = vst.msk [vmem:[#allocation4 + $0x138] sm:$0xff] %vm1102_vm9, %v1191_v47  ;;  %1677 = vrot.lane.b32.xlu1 %v1191_v47, %s2693_s11  ;;  %v1402_v59 = vrot.slane %v1191_v47, 2  ;;  %v1403_v11 = vrot.slane %v1192_v54, 2  ;;  %v1288_v55 = vrot.slane %v1191_v47, 1  ;;  %v1289_v56 = vrot.slane %v1192_v54, 1 }
 0x212   :  { %v1487_v57 = vpop.permute.xlu0 %1486  ;;  %v1662_v5 = vpop.permute.xlu1 %1661 }
 0x213   :  { %v1404_v26 = vsel %vm1362_vm11, %v1402_v59, %v1403_v11  ;;  %v1290_v27 = vsel %vm259_vm1, %v1288_v55, %v1289_v56  ;;  %1531 = vst.msk [vmem:[#allocation4 + $0x60] sm:$0xff] %vm1526_vm14, %v1487_v57 }
 0x214   :  { %1706 = vst.msk [vmem:[#allocation4 + $0x50] sm:$0xff] %vm1459_vm13, %v1662_v5  ;;  %v1193_v43 = vld [vmem:[#allocation2 + $0x100] sm:$0xff]  ;;  %v1194_v44 = vld [vmem:[#allocation2 + $0x108] sm:$0x3] }
 0x215   :  { %1824 = vst.msk [vmem:[#allocation4 + $0x118] sm:$0xff] %vm1102_vm9, %v1404_v26  ;;  %1579 = vst.msk [vmem:[#allocation4 + $0x128] sm:$0xff] %vm1102_vm9, %v1290_v27  ;;  %1613 = vrot.lane.b32.xlu0 %v1404_v26, %s2691_s18  ;;  %1749 = vrot.lane.b32.xlu1 %v1290_v27, %s2695_s14  ;;  %v1291_v46 = vrot.slane %v1193_v43, 1  ;;  %v1292_v61 = vrot.slane %v1194_v44, 1  ;;  %v1405_v33 = vrot.slane %v1193_v43, 2  ;;  %v1406_v25 = vrot.slane %v1194_v44, 2 }
 0x216   :  { %1215 = vst.msk [vmem:[#allocation4 + $0x150] sm:$0xff] %vm1102_vm9, %v1193_v43  ;;  %v1598_v7 = vpop.permute.xlu0 %1597  ;;  %v1734_v9 = vpop.permute.xlu1 %1733 }
 0x217   :  { %v1293_v34 = vsel %vm259_vm1, %v1291_v46, %v1292_v61  ;;  %v3907_v35 = vsel %vm1362_vm11, %v1405_v33, %v1406_v25  ;;  %1641 = vst.msk [vmem:[#allocation4 + $0x68] sm:$0xff] %vm1345_vm12, %v1598_v7 }
 0x218   :  { %1778 = vst.msk [vmem:[#allocation4 + $0x50] sm:$0xff] %vm1526_vm14, %v1734_v9 }
 0x219   :  { %1580 = vst.msk [vmem:[#allocation4 + $0x140] sm:$0xff] %vm1102_vm9, %v1293_v34  ;;  %1825 = vst.msk [vmem:[#allocation4 + $0x130] sm:$0xff] %vm1102_vm9, %v3907_v35  ;;  %1679 = vrot.lane.b32.xlu0 %v1193_v43, %s2693_s11  ;;  %1323 = vrot.lane.b32.xlu1 %v1290_v27, %s2691_s18 }
 0x21a   :  { %v1664_v10 = vpop.permute.xlu0 %1663  ;;  %v1308_v6 = vpop.permute.xlu1 %1307 }
 0x21b   :  { %1707 = vst.msk [vmem:[#allocation4 + $0x68] sm:$0xff] %vm1459_vm13, %v1664_v10 }
 0x21c   :  { %1351 = vst.msk [vmem:[#allocation4 + $0x78] sm:$0xff] %vm1345_vm12, %v1308_v6  ;;  %v1841_v6 = vld [vmem:[#allocation4 + $0x60] sm:$0xff] }
 0x21d   :  { %1751 = vrot.lane.b32.xlu0 %v1293_v34, %s2695_s14  ;;  %1437 = vrot.lane.b32.xlu1 %v1404_v26, %s2693_s11 }
 0x21e   :  { %v1736_v0 = vpop.permute.xlu0 %1735  ;;  %v1422_v8 = vpop.permute.xlu1 %1421 }
 0x21f   :  { %v1839_v4 = vld [vmem:[#allocation4 + $0x50] sm:$0xff]  ;;  %1779 = vst.msk [vmem:[#allocation4 + $0x68] sm:$0xff] %vm1526_vm14, %v1736_v0  ;;  %v1079_v19 = vpop.f32.mrf.mxu0 }
 0x220   :  { %1465 = vst.msk [vmem:[#allocation4 + $0x78] sm:$0xff] %vm1459_vm13, %v1422_v8  ;;  %v1881_v21 = vpack.c.bf16 %v1839_v4, %v1836_v45  ;;  %v1080_v23 = vadd.f32 %v3624_v16, %v1079_v19 }
 0x221   :  { %1325 = vrot.lane.b32.xlu0 %v1293_v34, %s2691_s18  ;;  %1504 = vrot.lane.b32.xlu1 %v1193_v43, %s2695_s14  ;;  %v1081_v48 = vpop.f32.mrf.mxu0 }
 0x222   :  { %2116 = vmatprep.mubr.bf16.mxu1 %v1881_v21  ;;  %v1100_v31 = vmax.f32 %v1080_v23, 0.0  ;;  %v1310_v32 = vpop.permute.xlu0 %1309  ;;  %v1489_v17 = vpop.permute.xlu1 %1488 }
 0x223   :  { %2117 = vmatmul.mubr.bf16.gmra.mxu1 %v1880_v50  ;;  %1352 = vst.msk [vmem:[#allocation4 + $0x90] sm:$0xff] %vm1345_vm12, %v1310_v32  ;;  %v1082_v39 = vpop.f32.mrf.mxu0 }
 0x224   :  { %1532 = vst.msk [vmem:[#allocation4 + $0x78] sm:$0xff] %vm1526_vm14, %v1489_v17  ;;  %v1083_v41 = vadd.f32 %v3624_v16, %v1082_v39 }
 0x225   :  { %1159 = vst.msk [vmem:[#allocation2 + $0x111] sm:$0xff] %vm1102_vm9, %v1100_v31  ;;  %1615 = vrot.lane.b32.xlu1 %v3907_v35, %s2691_s18  ;;  %v1084_v24 = vpop.f32.mrf.mxu0 }
 0x226   :  { %v1101_v42 = vmax.f32 %v1083_v41, 0.0  ;;  %v1424_v29 = vpop.permute.xlu0 %1423  ;;  %v1600_v51 = vpop.permute.xlu1 %1599  ;;  %v1842_v9 = vld [vmem:[#allocation4 + $0x68] sm:$0xff] }
 0x227   :  { %1466 = vst.msk [vmem:[#allocation4 + $0x90] sm:$0xff] %vm1459_vm13, %v1424_v29 }
 0x228   :  { %1642 = vst.msk [vmem:[#allocation4 + $0x80] sm:$0xff] %vm1345_vm12, %v1600_v51 }
 0x229   :  { %1160 = vst.msk [vmem:[#allocation2 + $0x121] sm:$0xff] %vm1102_vm9, %v1101_v42 }
 0x22b   :  { %v1844_v1 = vld [vmem:[#allocation4 + $0x78] sm:$0xff] }
 0x22c   :  { %v1195_v16 = vld [vmem:[#allocation2 + $0x110] sm:$0xff]  ;;  %v1196_v37 = vld [vmem:[#allocation2 + $0x118] sm:$0x3]  ;;  %v1883_v20 = vpack.c.bf16 %v1844_v1, %v1841_v6 }
 0x22d   :  { %1681 = vrot.lane.b32.xlu1 %v1195_v16, %s2693_s11  ;;  %1216 = vst.msk [vmem:[#allocation4 + $0x168] sm:$0xff] %vm1102_vm9, %v1195_v16  ;;  %v1408_v47 = vrot.slane %v1195_v16, 2  ;;  %v1409_v54 = vrot.slane %v1196_v37, 2  ;;  %v1294_v59 = vrot.slane %v1195_v16, 1  ;;  %v1295_v11 = vrot.slane %v1196_v37, 1 }
 0x22f   :  { %v1491_v55 = vpop.permute.xlu0 %1490  ;;  %v1666_v56 = vpop.permute.xlu1 %1665  ;;  %v1410_v57 = vsel %vm1362_vm11, %v1408_v47, %v1409_v54  ;;  %v1296_v5 = vsel %vm259_vm1, %v1294_v59, %v1295_v11 }
 0x230   :  { %1533 = vst.msk [vmem:[#allocation4 + $0x90] sm:$0xff] %vm1526_vm14, %v1491_v55  ;;  %1617 = vrot.lane.b32.xlu0 %v1410_v57, %s2691_s18  ;;  %v1197_v26 = vld [vmem:[#allocation2 + $0x120] sm:$0xff]  ;;  %v1198_v27 = vld [vmem:[#allocation2 + $0x128] sm:$0x3] }
 0x231   :  { %1708 = vst.msk [vmem:[#allocation4 + $0x80] sm:$0xff] %vm1459_vm13, %v1666_v56  ;;  %1753 = vrot.lane.b32.xlu1 %v1296_v5, %s2695_s14  ;;  %v1548_v30 = vrot.slane %v1197_v26, 1  ;;  %v1586_v58 = vrot.slane %v1197_v26, 2  ;;  %v1587_v14 = vrot.slane %v1198_v27, 2  ;;  %v1549_v43 = vrot.slane %v1198_v27, 1 }
 0x232   :  { %1826 = vst.msk [vmem:[#allocation4 + $0x148] sm:$0xff] %vm1102_vm9, %v1410_v57  ;;  %1581 = vst.msk [vmem:[#allocation4 + $0x158] sm:$0xff] %vm1102_vm9, %v1296_v5 }
 0x233   :  { %v1602_v44 = vpop.permute.xlu0 %1601  ;;  %v1738_v46 = vpop.permute.xlu1 %1737  ;;  %v1588_v61 = vsel %vm1362_vm11, %v1586_v58, %v1587_v14  ;;  %v1550_v33 = vsel %vm259_vm1, %v1548_v30, %v1549_v43 }
 0x234   :  { %1643 = vst.msk [vmem:[#allocation4 + $0x98] sm:$0xff] %vm1345_vm12, %v1602_v44  ;;  %1683 = vrot.lane.b32.xlu0 %v1197_v26, %s2693_s11 }
 0x235   :  { %1780 = vst.msk [vmem:[#allocation4 + $0x80] sm:$0xff] %vm1526_vm14, %v1738_v46  ;;  %1327 = vrot.lane.b32.xlu1 %v1296_v5, %s2691_s18 }
 0x236   :  { %1827 = vst.msk [vmem:[#allocation4 + $0x160] sm:$0xff] %vm1102_vm9, %v1588_v61  ;;  %1582 = vst.msk [vmem:[#allocation4 + $0x170] sm:$0xff] %vm1102_vm9, %v1550_v33 }
 0x237   :  { %v1668_v25 = vpop.permute.xlu0 %1667  ;;  %v1312_v62 = vpop.permute.xlu1 %1311 }
 0x238   :  { %1709 = vst.msk [vmem:[#allocation4 + $0x98] sm:$0xff] %vm1459_vm13, %v1668_v25  ;;  %1439 = vrot.lane.b32.xlu0 %v3907_v35, %s2693_s11 }
 0x239   :  { %1353 = vst.msk [vmem:[#allocation4 + $0xa8] sm:$0xff] %vm1345_vm12, %v1312_v62  ;;  %1619 = vrot.lane.b32.xlu1 %v1588_v61, %s2691_s18 }
 0x23b   :  { %v1740_v2 = vpop.permute.xlu0 %1739  ;;  %v1426_v7 = vpop.permute.xlu1 %1425 }
 0x23c   :  { %v1845_v34 = vld [vmem:[#allocation4 + $0x80] sm:$0xff]  ;;  %1781 = vst.msk [vmem:[#allocation4 + $0x98] sm:$0xff] %vm1526_vm14, %v1740_v2  ;;  %1755 = vrot.lane.b32.xlu0 %v1550_v33, %s2695_s14 }
 0x23d   :  { %1467 = vst.msk [vmem:[#allocation4 + $0xa8] sm:$0xff] %vm1459_vm13, %v1426_v7  ;;  %v1884_v10 = vpack.c.bf16 %v1845_v34, %v1842_v9  ;;  %1441 = vrot.lane.b32.xlu1 %v1410_v57, %s2693_s11 }
 0x23f   :  { %2124 = vmatprep.mubr.bf16.mxu1 %v1884_v10  ;;  %v1493_v35 = vpop.permute.xlu1 %1492 }
 0x240   :  { %2125 = vmatmul.mubr.bf16.gmra.mxu1 %v1883_v20  ;;  %1534 = vst.msk [vmem:[#allocation4 + $0xa8] sm:$0xff] %vm1526_vm14, %v1493_v35  ;;  %1506 = vrot.lane.b32.xlu0 %v1195_v16, %s2695_s14 }
 0x241   :  { %1757 = vrot.lane.b32.xlu1 %v3772_v63, %s2695_s14  ;;  %v1847_v63 = vld [vmem:[#allocation4 + $0x90] sm:$0xff] }
 0x243   :  { %v1604_v3 = vpop.permute.xlu1 %1603  ;;  %v1848_v15 = vld [vmem:[#allocation4 + $0x98] sm:$0xff] }
 0x244   :  { %1644 = vst.msk [vmem:[#allocation4 + $0xb0] sm:$0xff] %vm1345_vm12, %v1604_v3 }
 0x245   :  { %1710 = vst.msk [vmem:[#allocation4 + $0xb0] sm:$0xff] %vm1459_vm13, %v3784_v18  ;;  %1508 = vrot.lane.b32.xlu1 %v1197_v26, %s2695_s14 }
 0x246   :  { %1782 = vst.msk [vmem:[#allocation4 + $0xb0] sm:$0xff] %vm1526_vm14, %v3791_v53 }
 0x247   :  { %v1850_v13 = vld [vmem:[#allocation4 + $0xa8] sm:$0xff] }
 0x248   :  { %v1886_v45 = vpack.c.bf16 %v1850_v13, %v1847_v63 }
 0x24a   :  { %v1495_v12 = vpop.permute.xlu0 %1494 }
 0x24b   :  { %1535 = vst.msk [vmem:[#allocation4 + $0xc0] sm:$0xff] %vm1526_vm14, %v1495_v12 }
 0x24d   :  { %v1851_v40 = vld [vmem:[#allocation4 + $0xb0] sm:$0xff]  ;;  %v1316_v60 = vpop.permute.xlu1 %1315 }
 0x24e   :  { %v1887_v0 = vpack.c.bf16 %v1851_v40, %v1848_v15  ;;  %1355 = vst.msk [vmem:[#allocation4 + $0xd8] sm:$0xff] %vm1345_vm12, %v1316_v60  ;;  %v1606_v8 = vpop.permute.xlu0 %1605 }
 0x24f   :  { %1645 = vst.msk [vmem:[#allocation4 + $0xc8] sm:$0xff] %vm1345_vm12, %v1606_v8 }
 0x250   :  { %2132 = vmatprep.mubr.bf16.mxu1 %v1887_v0 }
 0x251   :  { %2133 = vmatmul.mubr.bf16.gmra.mxu1 %v1886_v45  ;;  %v1430_v18 = vpop.permute.xlu1 %1429  ;;  %v1834_v45 = vld [vmem:[#allocation4 + $0x28] sm:$0xff] }
 0x252   :  { %1469 = vst.msk [vmem:[#allocation4 + $0xd8] sm:$0xff] %vm1459_vm13, %v1430_v18  ;;  %v1672_v53 = vpop.permute.xlu0 %1671  ;;  %v1853_v29 = vld [vmem:[#allocation4 + $0xc0] sm:$0xff] }
 0x253   :  { %1711 = vst.msk [vmem:[#allocation4 + $0xc8] sm:$0xff] %vm1459_vm13, %v1672_v53 }
 0x255   :  { %v1497_v4 = vpop.permute.xlu1 %1496 }
 0x256   :  { %1536 = vst.msk [vmem:[#allocation4 + $0xd8] sm:$0xff] %vm1526_vm14, %v1497_v4  ;;  %v1744_v19 = vpop.permute.xlu0 %1743 }
 0x257   :  { %1783 = vst.msk [vmem:[#allocation4 + $0xc8] sm:$0xff] %vm1526_vm14, %v1744_v19  ;;  %v1831_v19 = vld [vmem:[#allocation4 + $0x10] sm:$0xff] }
 0x259   :  { %v1608_v21 = vpop.permute.xlu1 %1607 }
 0x25a   :  { %1646 = vst.msk [vmem:[#allocation4 + $0xe0] sm:$0xff] %vm1345_vm12, %v1608_v21  ;;  %v1318_v22 = vpop.permute.xlu0 %1317  ;;  %v1879_v21 = vpack.c.bf16 %v1834_v45, %v1831_v19 }
 0x25b   :  { %1356 = vst.msk [vmem:[#allocation4 + $0xf0] sm:$0xff] %vm1345_vm12, %v1318_v22  ;;  %v1840_v22 = vld [vmem:[#allocation4 + $0x58] sm:$0xff] }
 0x25d   :  { %v1856_v38 = vld [vmem:[#allocation4 + $0xd8] sm:$0xff] }
 0x25e   :  { %v1432_v23 = vpop.permute.xlu0 %1431  ;;  %v1854_v41 = vld [vmem:[#allocation4 + $0xc8] sm:$0xff]  ;;  %v1889_v51 = vpack.c.bf16 %v1856_v38, %v1853_v29  ;;  %v1861_v29 = vld [vmem:[#allocation4 + $0x100] sm:$0xff] }
 0x25f   :  { %1470 = vst.msk [vmem:[#allocation4 + $0xf0] sm:$0xff] %vm1459_vm13, %v1432_v23  ;;  %v1846_v23 = vld [vmem:[#allocation4 + $0x88] sm:$0xff] }
 0x260   :  { %v1858_v38 = vld [vmem:[#allocation4 + $0xe8] sm:$0xff] }
 0x266   :  { %v1499_v50 = vpop.permute.xlu0 %1498  ;;  %v1674_v48 = vpop.permute.xlu1 %1673 }
 0x267   :  { %1537 = vst.msk [vmem:[#allocation4 + $0xf0] sm:$0xff] %vm1526_vm14, %v1499_v50  ;;  %v1837_v50 = vld [vmem:[#allocation4 + $0x40] sm:$0xff] }
 0x268   :  { %1712 = vst.msk [vmem:[#allocation4 + $0xe0] sm:$0xff] %vm1459_vm13, %v1674_v48  ;;  %v1882_v48 = vpack.c.bf16 %v1840_v22, %v1837_v50  ;;  %v4098_v22 = vld [vmem:[%s4221_s4] ss:$0 sm:$0xff] }
 0x26a   :  { %v1610_v31 = vpop.permute.xlu0 %1609  ;;  %v1746_v32 = vpop.permute.xlu1 %1745 }
 0x26b   :  { %1647 = vst.msk [vmem:[#allocation4 + $0xf8] sm:$0xff] %vm1345_vm12, %v1610_v31  ;;  %v1843_v31 = vld [vmem:[#allocation4 + $0x70] sm:$0xff] }
 0x26c   :  { %1784 = vst.msk [vmem:[#allocation4 + $0xe0] sm:$0xff] %vm1526_vm14, %v1746_v32  ;;  %v1885_v32 = vpack.c.bf16 %v1846_v23, %v1843_v31 }
 0x26e   :  { %v1676_v17 = vpop.permute.xlu0 %1675  ;;  %v1320_v36 = vpop.permute.xlu1 %1319  ;;  %v1859_v43 = vld [vmem:[#allocation4 + $0xf0] sm:$0xff] }
 0x26f   :  { %1713 = vst.msk [vmem:[#allocation4 + $0xf8] sm:$0xff] %vm1459_vm13, %v1676_v17  ;;  %v1849_v17 = vld [vmem:[#allocation4 + $0xa0] sm:$0xff] }
 0x270   :  { %1357 = vst.msk [vmem:[#allocation4 + $0x108] sm:$0xff] %vm1345_vm12, %v1320_v36  ;;  %v1852_v36 = vld [vmem:[#allocation4 + $0xb8] sm:$0xff] }
 0x272   :  { %v1748_v49 = vpop.permute.xlu0 %1747  ;;  %v1434_v39 = vpop.permute.xlu1 %1433 }
 0x273   :  { %v1857_v24 = vld [vmem:[#allocation4 + $0xe0] sm:$0xff]  ;;  %1785 = vst.msk [vmem:[#allocation4 + $0xf8] sm:$0xff] %vm1526_vm14, %v1748_v49  ;;  %v1888_v49 = vpack.c.bf16 %v1852_v36, %v1849_v17 }
 0x274   :  { %1471 = vst.msk [vmem:[#allocation4 + $0x108] sm:$0xff] %vm1459_vm13, %v1434_v39  ;;  %v1890_v42 = vpack.c.bf16 %v1857_v24, %v1854_v41  ;;  %v1855_v39 = vld [vmem:[#allocation4 + $0xd0] sm:$0xff]  ;;  %v1864_v24 = vld [vmem:[#allocation4 + $0x118] sm:$0xff] }
 0x275   :  { %v1891_v41 = vpack.c.bf16 %v1858_v38, %v1855_v39 }
 0x276   :  { %2140 = vmatprep.mubr.bf16.mxu1 %v1890_v42  ;;  %v1322_v52 = vpop.permute.xlu0 %1321  ;;  %v1501_v16 = vpop.permute.xlu1 %1500  ;;  %v1870_v42 = vld [vmem:[#allocation4 + $0x148] sm:$0xff] }
 0x277   :  { %2141 = vmatmul.mubr.bf16.gmra.mxu1 %v1889_v51  ;;  %1358 = vst.msk [vmem:[#allocation4 + $0x120] sm:$0xff] %vm1345_vm12, %v1322_v52  ;;  %v1894_v51 = vpack.c.bf16 %v1864_v24, %v1861_v29  ;;  %v1867_v52 = vld [vmem:[#allocation4 + $0x130] sm:$0xff] }
 0x278   :  { %1538 = vst.msk [vmem:[#allocation4 + $0x108] sm:$0xff] %vm1526_vm14, %v1501_v16  ;;  %v1897_v16 = vpack.c.bf16 %v1870_v42, %v1867_v52 }
 0x27a   :  { %v1436_v37 = vpop.permute.xlu0 %1435  ;;  %v1612_v47 = vpop.permute.xlu1 %1611  ;;  %v1860_v30 = vld [vmem:[#allocation4 + $0xf8] sm:$0xff] }
 0x27b   :  { %1472 = vst.msk [vmem:[#allocation4 + $0x120] sm:$0xff] %vm1459_vm13, %v1436_v37  ;;  %v1873_v37 = vld [vmem:[#allocation4 + $0x160] sm:$0xff] }
 0x27c   :  { %1648 = vst.msk [vmem:[#allocation4 + $0x110] sm:$0xff] %vm1345_vm12, %v1612_v47  ;;  %v1876_v47 = vld [vmem:[#allocation4 + $0x178] sm:$0xff] }
 0x27f   :  { %v1862_v5 = vld [vmem:[#allocation4 + $0x108] sm:$0xff] }
 0x280   :  { %v1892_v44 = vpack.c.bf16 %v1862_v5, %v1859_v43 }
 0x283   :  { %v1503_v54 = vpop.permute.xlu0 %1502  ;;  %v1678_v59 = vpop.permute.xlu1 %1677 }
 0x284   :  { %1539 = vst.msk [vmem:[#allocation4 + $0x120] sm:$0xff] %vm1526_vm14, %v1503_v54  ;;  %v1900_v54 = vpack.c.bf16 %v1876_v47, %v1873_v37 }
 0x285   :  { %1714 = vst.msk [vmem:[#allocation4 + $0x110] sm:$0xff] %vm1459_vm13, %v1678_v59 }
 0x287   :  { %v1614_v11 = vpop.permute.xlu0 %1613  ;;  %v1750_v55 = vpop.permute.xlu1 %1749 }
 0x288   :  { %1649 = vst.msk [vmem:[#allocation4 + $0x128] sm:$0xff] %vm1345_vm12, %v1614_v11 }
 0x289   :  { %1786 = vst.msk [vmem:[#allocation4 + $0x110] sm:$0xff] %vm1526_vm14, %v1750_v55 }
 0x28b   :  { %v1680_v56 = vpop.permute.xlu0 %1679  ;;  %v1324_v57 = vpop.permute.xlu1 %1323  ;;  %v1865_v3 = vld [vmem:[#allocation4 + $0x120] sm:$0xff] }
 0x28c   :  { %1715 = vst.msk [vmem:[#allocation4 + $0x128] sm:$0xff] %vm1459_vm13, %v1680_v56 }
 0x28d   :  { %1359 = vst.msk [vmem:[#allocation4 + $0x138] sm:$0xff] %vm1345_vm12, %v1324_v57 }
 0x28f   :  { %v1752_v26 = vpop.permute.xlu0 %1751  ;;  %v1438_v27 = vpop.permute.xlu1 %1437 }
 0x290   :  { %v1863_v58 = vld [vmem:[#allocation4 + $0x110] sm:$0xff]  ;;  %1787 = vst.msk [vmem:[#allocation4 + $0x128] sm:$0xff] %vm1526_vm14, %v1752_v26 }
 0x291   :  { %1473 = vst.msk [vmem:[#allocation4 + $0x138] sm:$0xff] %vm1459_vm13, %v1438_v27  ;;  %v1893_v14 = vpack.c.bf16 %v1863_v58, %v1860_v30 }
 0x293   :  { %2148 = vmatprep.mubr.bf16.mxu1 %v1893_v14  ;;  %v1326_v46 = vpop.permute.xlu0 %1325  ;;  %v1505_v61 = vpop.permute.xlu1 %1504 }
 0x294   :  { %2149 = vmatmul.mubr.bf16.gmra.mxu1 %v1892_v44  ;;  %1360 = vst.msk [vmem:[#allocation4 + $0x150] sm:$0xff] %vm1345_vm12, %v1326_v46 }
 0x295   :  { %1540 = vst.msk [vmem:[#allocation4 + $0x138] sm:$0xff] %vm1526_vm14, %v1505_v61 }
 0x297   :  { %v1616_v33 = vpop.permute.xlu1 %1615  ;;  %v1866_v6 = vld [vmem:[#allocation4 + $0x128] sm:$0xff] }
 0x298   :  { %1650 = vst.msk [vmem:[#allocation4 + $0x140] sm:$0xff] %vm1345_vm12, %v1616_v33 }
 0x29c   :  { %v1868_v34 = vld [vmem:[#allocation4 + $0x138] sm:$0xff] }
 0x29d   :  { %v1895_v12 = vpack.c.bf16 %v1868_v34, %v1865_v3 }
 0x29f   :  { %v1682_v25 = vpop.permute.xlu1 %1681 }
 0x2a0   :  { %1716 = vst.msk [vmem:[#allocation4 + $0x140] sm:$0xff] %vm1459_vm13, %v1682_v25 }
 0x2a2   :  { %v1618_v62 = vpop.permute.xlu0 %1617 }
 0x2a3   :  { %1651 = vst.msk [vmem:[#allocation4 + $0x158] sm:$0xff] %vm1345_vm12, %v1618_v62  ;;  %v1754_v1 = vpop.permute.xlu1 %1753 }
 0x2a4   :  { %1788 = vst.msk [vmem:[#allocation4 + $0x140] sm:$0xff] %vm1526_vm14, %v1754_v1 }
 0x2a6   :  { %v1684_v2 = vpop.permute.xlu0 %1683 }
 0x2a7   :  { %1717 = vst.msk [vmem:[#allocation4 + $0x158] sm:$0xff] %vm1459_vm13, %v1684_v2  ;;  %v1328_v7 = vpop.permute.xlu1 %1327 }
 0x2a8   :  { %1361 = vst.msk [vmem:[#allocation4 + $0x168] sm:$0xff] %vm1345_vm12, %v1328_v7 }
 0x2aa   :  { %v1440_v9 = vpop.permute.xlu0 %1439 }
 0x2ab   :  { %1474 = vst.msk [vmem:[#allocation4 + $0x150] sm:$0xff] %vm1459_vm13, %v1440_v9  ;;  %v1620_v10 = vpop.permute.xlu1 %1619  ;;  %v1869_v20 = vld [vmem:[#allocation4 + $0x140] sm:$0xff]  ;;  %v2628_v34 = vpop.f32.mrf.mxu0 }
 0x2ac   :  { %1652 = vst.msk [vmem:[#allocation4 + $0x170] sm:$0xff] %vm1345_vm12, %v1620_v10  ;;  %v1896_v35 = vpack.c.bf16 %v1869_v20, %v1866_v6 }
 0x2ad   :  { %1718 = vst.msk [vmem:[#allocation4 + $0x170] sm:$0xff] %vm1459_vm13, %v3794_v28  ;;  %v2351_v6 = vpop.f32.mrf.mxu0 }
 0x2ae   :  { %v1756_v13 = vpop.permute.xlu0 %1755  ;;  %2156 = vmatprep.mubr.bf16.mxu1 %v1896_v35 }
 0x2af   :  { %1789 = vst.msk [vmem:[#allocation4 + $0x158] sm:$0xff] %vm1526_vm14, %v1756_v13  ;;  %v1442_v15 = vpop.permute.xlu1 %1441  ;;  %2157 = vmatmul.mubr.bf16.gmra.mxu1 %v1895_v12  ;;  %v2629_v35 = vpop.f32.mrf.mxu0 }
 0x2b0   :  { %1475 = vst.msk [vmem:[#allocation4 + $0x168] sm:$0xff] %vm1459_vm13, %v1442_v15 }
 0x2b1   :  { %v2354_v12 = vpop.f32.mrf.mxu0 }
 0x2b2   :  { %v1507_v40 = vpop.permute.xlu0 %1506 }
 0x2b3   :  { %1541 = vst.msk [vmem:[#allocation4 + $0x150] sm:$0xff] %vm1526_vm14, %v1507_v40  ;;  %v1758_v60 = vpop.permute.xlu1 %1757 }
 0x2b4   :  { %1790 = vst.msk [vmem:[#allocation4 + $0x170] sm:$0xff] %vm1526_vm14, %v1758_v60 }
 0x2b6   :  { %v1872_v63 = vld [vmem:[#allocation4 + $0x158] sm:$0xff] }
 0x2b7   :  { %v1509_v0 = vpop.permute.xlu1 %1508  ;;  %v2632_v15 = vpop.f32.mrf.mxu0 }
 0x2b8   :  { %1542 = vst.msk [vmem:[#allocation4 + $0x168] sm:$0xff] %vm1526_vm14, %v1509_v0 }
 0x2b9   :  { %v2367_v60 = vpop.f32.mrf.mxu0 }
 0x2ba   :  { %v1871_v18 = vld [vmem:[#allocation4 + $0x150] sm:$0xff] }
 0x2bb   :  { %v1875_v28 = vld [vmem:[#allocation4 + $0x170] sm:$0xff] }
 0x2bc   :  { %v1899_v8 = vpack.c.bf16 %v1875_v28, %v1872_v63  ;;  %v4082_v28 = vpop.f32.mrf.mxu0 }
 0x2be   :  { %2164 = vmatprep.mubr.bf16.mxu1 %v1899_v8 }
 0x2bf   :  { %v1874_v53 = vld [vmem:[#allocation4 + $0x168] sm:$0xff] }
 0x2c0   :  { %v1898_v4 = vpack.c.bf16 %v1874_v53, %v1871_v18  ;;  %v4089_v18 = vld [vmem:[%s4220_s6] ss:$0 sm:$0xff] }
 0x2c1   :  { %v2360_v50 = vadd.f32 %v2628_v34, %v4089_v18  ;;  %v2363_v47 = vadd.f32 %v2629_v35, %v4089_v18 }
 0x2c2   :  { %2165 = vmatmul.mubr.bf16.gmra.mxu1 %v1898_v4  ;;  %v2370_v4 = vpop.f32.mrf.mxu0 }
 0x2c3   :  { %2608 = vmatprep.mubr.msk.bf16.mxu1 %vm1102_vm9, %v1879_v21 }
 0x2c4   :  { %v2636_v17 = vpop.f32.mrf.mxu0 }
 0x2c6   :  { %v2383_v37 = vpop.f32.mrf.mxu0 }
 0x2c7   :  { %v2537_v59 = vpop.f32.mrf.mxu1 }
 0x2c8   :  { %v2637_v34 = vpop.f32.mrf.mxu0 }
 0x2c9   :  { %v2538_v11 = vpop.f32.mrf.mxu1 }
 0x2ca   :  { %2609 = vmatmul.mubr.msk.bf16.vlgmr.msra.gmra.mxu1 %vm1102_vm9, %v1882_v48  ;;  %v2539_v19 = vadd.f32 %v2538_v11, %v2537_v59 }
 0x2cb   :  { %2612 = vmatprep.mubr.msk.bf16.mxu1 %vm1102_vm9, %v1885_v32  ;;  %v2540_v55 = vpop.f32.mrf.mxu1 }
 0x2cc   :  { %v2111_v38 = vadd.f32 %v2539_v19, %v4098_v22 }
 0x2cd   :  { %v2541_v56 = vpop.f32.mrf.mxu1 }
 0x2ce   :  { %v2542_v31 = vadd.f32 %v2541_v56, %v2540_v55  ;;  %v2355_v55 = vadd.f32 %v4089_v18, %v2354_v12  ;;  %v2376_v56 = vadd.f32 %v2632_v15, %v4089_v18  ;;  %v2368_v15 = vadd.f32 %v4089_v18, %v2367_v60 }
 0x2d2   :  { %2613 = vmatmul.mubr.msk.bf16.gmra.mxu1 %vm1102_vm9, %v1888_v49 }
 0x2d3   :  { %2616 = vmatprep.mubr.msk.bf16.mxu1 %vm1102_vm9, %v1891_v41  ;;  %v2352_v41 = vadd.f32 %v4089_v18, %v2351_v6 }
 0x2da   :  { %2617 = vmatmul.mubr.msk.bf16.gmra.mxu1 %vm1102_vm9, %v1894_v51 }
 0x2db   :  { %2620 = vmatprep.mubr.msk.bf16.mxu1 %vm1102_vm9, %v1897_v16  ;;  %v2114_v16 = vadd.f32 %v2542_v31, %v4098_v22 }
 0x2e2   :  { %2621 = vmatmul.mubr.msk.bf16.gmra.mxu1 %vm1102_vm9, %v1900_v54 }
 0x2e3   :  { %v2543_v57 = vpop.f32.mrf.mxu1 }
 0x2e5   :  { %v2544_v5 = vpop.f32.mrf.mxu1 }
 0x2e6   :  { %v2545_v45 = vadd.f32 %v2544_v5, %v2543_v57 }
 0x2e7   :  { %v2546_v26 = vpop.f32.mrf.mxu1 }
 0x2e8   :  { %v2119_v48 = vadd.f32 %v2545_v45, %v4098_v22 }
 0x2e9   :  { %v2547_v27 = vpop.f32.mrf.mxu1 }
 0x2ea   :  { %v2548_v23 = vadd.f32 %v2547_v27, %v2546_v26 }
 0x2ec   :  { %v2122_v29 = vadd.f32 %v2548_v23, %v4098_v22 }
 0x300   :  { %v2549_v30 = vpop.f32.mrf.mxu1 }
 0x302   :  { %v2550_v58 = vpop.f32.mrf.mxu1 }
 0x303   :  { %v2551_v51 = vadd.f32 %v2550_v58, %v2549_v30 }
 0x304   :  { %v4052_v14 = vpop.f32.mrf.mxu1 }
 0x305   :  { %v2127_v35 = vadd.f32 %v2551_v51, %v4098_v22 }
 0x306   :  { %v4054_v43 = vpop.f32.mrf.mxu1 }
 0x311   :  { %v2555_v44 = vpop.f32.mrf.mxu1 }
 0x313   :  { %v2556_v46 = vpop.f32.mrf.mxu1 }
 0x314   :  { %v2557_v49 = vadd.f32 %v2556_v46, %v2555_v44  ;;  %v2554_v44 = vadd.f32 %v4054_v43, %v4052_v14 }
 0x315   :  { %v2558_v61 = vpop.f32.mrf.mxu1 }
 0x316   :  { %v2135_v5 = vadd.f32 %v2557_v49, %v4098_v22  ;;  %v2130_v31 = vadd.f32 %v2554_v44, %v4098_v22  ;;  %v2392_v49 = vadd.f32 %v2636_v17, %v4089_v18 }
 0x317   :  { %v2559_v33 = vpop.f32.mrf.mxu1 }
 0x318   :  { %v2560_v26 = vadd.f32 %v2559_v33, %v2558_v61 }
 0x31a   :  { %v2138_v23 = vadd.f32 %v2560_v26, %v4098_v22 }
 0x337   :  { %v4056_v25 = vpop.f32.mrf.mxu1 }
 0x339   :  { %v4058_v62 = vpop.f32.mrf.mxu1 }
 0x33b   :  { %v4060_v1 = vpop.f32.mrf.mxu1 }
 0x33d   :  { %v4062_v2 = vpop.f32.mrf.mxu1 }
 0x33e   :  { %v2566_v17 = vadd.f32 %v4062_v2, %v4060_v1 }
 0x354   :  { %v4064_v7 = vpop.f32.mrf.mxu1 }
 0x356   :  { %v4066_v9 = vpop.f32.mrf.mxu1 }
 0x357   :  { %v2569_v12 = vadd.f32 %v4066_v9, %v4064_v7  ;;  %v2386_v7 = vpop.f32.mrf.mxu0  ;;  %v2379_v9 = vadd.f32 %v4082_v28, %v4089_v18 }
 0x358   :  { %v4068_v10 = vpop.f32.mrf.mxu1  ;;  %v2387_v26 = vadd.f32 %v4089_v18, %v2386_v7 }
 0x35a   :  { %v4070_v20 = vpop.f32.mrf.mxu1 }
 0x36f   :  { %v4072_v3 = vpop.f32.mrf.mxu1 }
 0x371   :  { %v4074_v13 = vpop.f32.mrf.mxu1 }
 0x373   :  { %v4076_v40 = vpop.f32.mrf.mxu1 }
 0x375   :  { %v4078_v0 = vpop.f32.mrf.mxu1 }
 0x382   :  { %v4080_v63 = vpop.f32.mrf.mxu1 }
 0x384   :  { %v4084_v8 = vpop.f32.mrf.mxu1 }
 0x386   :  { %v4091_v53 = vpop.f32.mrf.mxu1 }
 0x388   :  { %v4093_v21 = vpop.f32.mrf.mxu1 }
 0x38a   :  { %v2610_v32 = vpop.f32.mrf.mxu1 }
 0x38b   :  { %v2216_v36 = vadd.f32 %v2610_v32, %v2119_v48 }
 0x38c   :  { %v2207_v39 = vpop.f32.mrf.mxu1 }
 0x38d   :  { %v2416_v24 = vadd.f32 %v2360_v50, %v2216_v36  ;;  %v2208_v42 = vadd.f32 %v2207_v39, %v2111_v38  ;;  %v2563_v50 = vadd.f32 %v4058_v62, %v4056_v25  ;;  %v2371_v38 = vadd.f32 %v4089_v18, %v2370_v4  ;;  %v2640_v4 = vpop.f32.mrf.mxu0 }
 0x38e   :  { %v2611_v52 = vpop.f32.mrf.mxu1  ;;  %v2151_v62 = vadd.f32 %v2569_v12, %v4098_v22  ;;  %v2572_v39 = vadd.f32 %v4070_v20, %v4068_v10 }
 0x38f   :  { %v2432_v54 = vmax.f32 %v2416_v24, 0.0  ;;  %v2414_v59 = vadd.f32 %v2352_v41, %v2208_v42  ;;  %v2219_v11 = vadd.f32 %v2611_v52, %v2122_v29  ;;  %v2143_v29 = vadd.f32 %v2563_v50, %v4098_v22 }
 0x390   :  { %v2210_v57 = vpop.f32.mrf.mxu1  ;;  %v2581_v52 = vadd.f32 %v4084_v8, %v4080_v63  ;;  %v2399_v63 = vpop.f32.mrf.mxu0 }
 0x391   :  { %2448 = vst.msk [vmem:[%s4222_s7 + $0x10] sm:$0xff] %vm1102_vm9, %v2432_v54  ;;  %v2430_v27 = vmax.f32 %v2414_v59, 0.0  ;;  %v2417_v30 = vadd.f32 %v2363_v47, %v2219_v11  ;;  %v2211_v58 = vadd.f32 %v2210_v57, %v2114_v16  ;;  %v2384_v16 = vadd.f32 %v4089_v18, %v2383_v37 }
 0x392   :  { %v2614_v46 = vpop.f32.mrf.mxu1  ;;  %v2154_v59 = vadd.f32 %v2572_v39, %v4098_v22  ;;  %v2575_v11 = vadd.f32 %v4074_v13, %v4072_v3  ;;  %v2167_v3 = vadd.f32 %v2581_v52, %v4098_v22  ;;  %v2584_v13 = vadd.f32 %v4093_v21, %v4091_v53 }
 0x393   :  { %2446 = vst.msk [vmem:[%s4222_s7] sm:$0xff] %vm1102_vm9, %v2430_v27  ;;  %v2433_v6 = vmax.f32 %v2417_v30, 0.0  ;;  %v2415_v61 = vadd.f32 %v2355_v55, %v2211_v58  ;;  %v2232_v33 = vadd.f32 %v2614_v46, %v2135_v5  ;;  %v2395_v55 = vadd.f32 %v2637_v34, %v4089_v18  ;;  %v2641_v34 = vpop.f32.mrf.mxu0 }
 0x394   :  { %v2223_v45 = vpop.f32.mrf.mxu1  ;;  %v2146_v5 = vadd.f32 %v2566_v17, %v4098_v22  ;;  %v2408_v27 = vadd.f32 %v2640_v4, %v4089_v18  ;;  %v2400_v12 = vadd.f32 %v4089_v18, %v2399_v63 }
 0x395   :  { %2449 = vst.msk [vmem:[%s4222_s7 + $0x18] sm:$0xff] %vm1102_vm9, %v2433_v6  ;;  %v2431_v14 = vmax.f32 %v2415_v61, 0.0  ;;  %v2420_v43 = vadd.f32 %v2376_v56, %v2232_v33  ;;  %v2224_v19 = vadd.f32 %v2223_v45, %v2127_v35  ;;  %v2159_v61 = vadd.f32 %v2575_v11, %v4098_v22 }
 0x396   :  { %v2615_v48 = vpop.f32.mrf.mxu1  ;;  %v2578_v33 = vadd.f32 %v4078_v0, %v4076_v40  ;;  %v2170_v40 = vadd.f32 %v2584_v13, %v4098_v22  ;;  %v2411_v0 = vadd.f32 %v2641_v34, %v4089_v18 }
 0x397   :  { %2447 = vst.msk [vmem:[%s4222_s7 + $0x8] sm:$0xff] %vm1102_vm9, %v2431_v14  ;;  %v2436_v60 = vmax.f32 %v2420_v43, 0.0  ;;  %v2418_v32 = vadd.f32 %v2368_v15, %v2224_v19  ;;  %v2235_v36 = vadd.f32 %v2615_v48, %v2138_v23  ;;  %v2402_v19 = vpop.f32.mrf.mxu0 }
 0x398   :  { %v2226_v25 = vpop.f32.mrf.mxu1  ;;  %v2162_v7 = vadd.f32 %v2578_v33, %v4098_v22 }
 0x399   :  { %2452 = vst.msk [vmem:[%s4222_s7 + $0x30] sm:$0xff] %vm1102_vm9, %v2436_v60  ;;  %v2434_v41 = vmax.f32 %v2418_v32, 0.0  ;;  %v2421_v28 = vadd.f32 %v2379_v9, %v2235_v36  ;;  %v2227_v24 = vadd.f32 %v2226_v25, %v2130_v31  ;;  %v2403_v60 = vadd.f32 %v4089_v18, %v2402_v19 }
 0x39a   :  { %v2618_v42 = vpop.f32.mrf.mxu1 }
 0x39b   :  { %2450 = vst.msk [vmem:[%s4222_s7 + $0x20] sm:$0xff] %vm1102_vm9, %v2434_v41  ;;  %v2437_v10 = vmax.f32 %v2421_v28, 0.0  ;;  %v2419_v20 = vadd.f32 %v2371_v38, %v2227_v24  ;;  %v2248_v51 = vadd.f32 %v2618_v42, %v2151_v62 }
 0x39c   :  { %v2239_v47 = vpop.f32.mrf.mxu1 }
 0x39d   :  { %2453 = vst.msk [vmem:[%s4222_s7 + $0x38] sm:$0xff] %vm1102_vm9, %v2437_v10  ;;  %v2435_v1 = vmax.f32 %v2419_v20, 0.0  ;;  %v2424_v2 = vadd.f32 %v2392_v49, %v2248_v51  ;;  %v2240_v54 = vadd.f32 %v2239_v47, %v2143_v29 }
 0x39e   :  { %v2619_v56 = vpop.f32.mrf.mxu1 }
 0x39f   :  { %2451 = vst.msk [vmem:[%s4222_s7 + $0x28] sm:$0xff] %vm1102_vm9, %v2435_v1  ;;  %v2440_v8 = vmax.f32 %v2424_v2, 0.0  ;;  %v2422_v37 = vadd.f32 %v2384_v16, %v2240_v54  ;;  %v2251_v57 = vadd.f32 %v2619_v56, %v2154_v59 }
 0x3a0   :  { %v2242_v30 = vpop.f32.mrf.mxu1 }
 0x3a1   :  { %2456 = vst.msk [vmem:[%s4222_s7 + $0x50] sm:$0xff] %vm1102_vm9, %v2440_v8  ;;  %v2438_v58 = vmax.f32 %v2422_v37, 0.0  ;;  %v2425_v44 = vadd.f32 %v2395_v55, %v2251_v57  ;;  %v2243_v46 = vadd.f32 %v2242_v30, %v2146_v5 }
 0x3a2   :  { %v2622_v6 = vpop.f32.mrf.mxu1 }
 0x3a3   :  { %2454 = vst.msk [vmem:[%s4222_s7 + $0x40] sm:$0xff] %vm1102_vm9, %v2438_v58  ;;  %v2441_v53 = vmax.f32 %v2425_v44, 0.0  ;;  %v2423_v21 = vadd.f32 %v2387_v26, %v2243_v46  ;;  %v2264_v35 = vadd.f32 %v2622_v6, %v2167_v3 }
 0x3a4   :  { %v2255_v15 = vpop.f32.mrf.mxu1 }
 0x3a5   :  { %2457 = vst.msk [vmem:[%s4222_s7 + $0x58] sm:$0xff] %vm1102_vm9, %v2441_v53  ;;  %v2439_v45 = vmax.f32 %v2423_v21, 0.0  ;;  %v2428_v14 = vadd.f32 %v2408_v27, %v2264_v35  ;;  %v2256_v43 = vadd.f32 %v2255_v15, %v2159_v61 }
 0x3a6   :  { %v2623_v23 = vpop.f32.mrf.mxu1 }
 0x3a7   :  { %2455 = vst.msk [vmem:[%s4222_s7 + $0x48] sm:$0xff] %vm1102_vm9, %v2439_v45  ;;  %v2444_v50 = vmax.f32 %v2428_v14, 0.0  ;;  %v2426_v48 = vadd.f32 %v2400_v12, %v2256_v43  ;;  %v2267_v31 = vadd.f32 %v2623_v23, %v2170_v40 }
 0x3a8   :  { %v2258_v9 = vpop.f32.mrf.mxu1 }
 0x3a9   :  { %2460 = vst.msk [vmem:[%s4222_s7 + $0x70] sm:$0xff] %vm1102_vm9, %v2444_v50  ;;  %v2442_v32 = vmax.f32 %v2426_v48, 0.0  ;;  %v2429_v36 = vadd.f32 %v2411_v0, %v2267_v31  ;;  %v2259_v38 = vadd.f32 %v2258_v9, %v2162_v7 }
 0x3ab   :  { %2458 = vst.msk [vmem:[%s4222_s7 + $0x60] sm:$0xff] %vm1102_vm9, %v2442_v32  ;;  %v2445_v49 = vmax.f32 %v2429_v36, 0.0  ;;  %v2427_v25 = vadd.f32 %v2403_v60, %v2259_v38 }
 0x3ad   :  { %2461 = vst.msk [vmem:[%s4222_s7 + $0x78] sm:$0xff] %vm1102_vm9, %v2445_v49  ;;  %v2443_v22 = vmax.f32 %v2427_v25, 0.0 }
 0x3af   :  { %2459 = vst.msk [vmem:[%s4222_s7 + $0x68] sm:$0xff] %vm1102_vm9, %v2443_v22 }

</bundles_post_ra>
